<compile_context>
chip_gen: v7x
topology: tpu7x:2x2x1
jax: 0.10.0
libtpu: 0.0.40
codegen_flags: <defaults>
</compile_context>

<pallas_src>
import math
import functools

import jax
import jax.numpy as jnp
from jax.experimental import pallas as pl
from jax.experimental.pallas import tpu as pltpu

# Explicit scoped-VMEM limit: leaves headroom under v7x's 64 MiB physical VMEM
# and is well above any tile budget used below.
_VMEM_LIMIT = 48 * 1024 * 1024


# ----------------------------- tiling helpers ------------------------------


def _pick_tile(dim, cap, aligns):
    """Largest tile <= cap that divides `dim`, preferring larger alignments.

    Falls back to the full dimension when no aligned divisor exists (toy
    shapes) -- correctness over peak performance in that case."""
    if dim <= cap:
        return dim
    for align in aligns:
        t = (cap // align) * align
        while t >= align:
            if dim % t == 0:
                return t
            t -= align
    return dim


# ------------------------- generic tiled matmul ------------------------------
# out = epilogue( x @ w (+ bias) (gelu) (+ residual) ),  optional fused
# LayerNorm second output when the full N (=H) fits in one tile.
# x: [M, K]  w: [K, N]  bias: [1, N]  residual: [M, N]  gamma/beta: [1, N].
# f32 accumulation in VMEM scratch; K is the innermost ("arbitrary") grid axis;
# M/N axes are "parallel" (megacore-shardable).


def _make_matmul_kernel(has_bias, has_residual, activation, fuse_ln, ln_eps):
    def kernel(*refs):
        idx = 0
        x_ref = refs[idx]; idx += 1
        w_ref = refs[idx]; idx += 1
        b_ref = refs[idx] if has_bias else None; idx += int(has_bias)
        r_ref = refs[idx] if has_residual else None; idx += int(has_residual)
        g_ref = refs[idx] if fuse_ln else None; idx += int(fuse_ln)
        be_ref = refs[idx] if fuse_ln else None; idx += int(fuse_ln)
        o_ref = refs[idx]; idx += 1
        ln_ref = refs[idx] if fuse_ln else None; idx += int(fuse_ln)
        acc_ref = refs[idx]

        @pl.when(pl.program_id(2) == 0)
        def _():
            acc_ref[...] = jnp.zeros_like(acc_ref)

        acc_ref[...] += jnp.dot(x_ref[...], w_ref[...],
                                preferred_element_type=jnp.float32)

        @pl.when(pl.program_id(2) == pl.num_programs(2) - 1)
        def _():
            out = acc_ref[...]
            if has_bias:
                out = out + b_ref[...].astype(jnp.float32)
            if activation == "gelu":
                # TODO(synk): PyTorch nn.GELU defaults to exact erf.
                out = jax.nn.gelu(out, approximate=True)
            if has_residual:
                out = out + r_ref[...].astype(jnp.float32)
            o_ref[...] = out.astype(o_ref.dtype)
            if fuse_ln:
                # Full row (tn == N == H) is resident in f32 -> LayerNorm here,
                # saving a separate [M, H] HBM read+write round trip.
                mu = jnp.mean(out, axis=-1, keepdims=True)
                xc = out - mu
                var = jnp.mean(xc * xc, axis=-1, keepdims=True)
                y = xc * jax.lax.rsqrt(var + ln_eps)
                ln_ref[...] = (y * g_ref[...].astype(jnp.float32)
                               + be_ref[...].astype(jnp.float32)).astype(ln_ref.dtype)

    return kernel


def tiled_matmul(x, w, bias=None, residual=None, activation=None,
                 ln_gamma=None, ln_beta=None, ln_eps=1e-5,
                 out_dtype=None, tm_cap=512, tn_cap=1024, tk_cap=1024):
    M, K = x.shape
    K2, N = w.shape
    assert K == K2, (x.shape, w.shape)
    out_dtype = out_dtype or x.dtype
    fuse_ln = ln_gamma is not None

    tm = _pick_tile(M, tm_cap, (128, 16, 8))      # 16-multiple for bf16 packing
    tn = _pick_tile(N, tn_cap, (256, 128))        # 256 -> fills v6e/v7x MXU
    tk = _pick_tile(K, tk_cap, (256, 128))
    if fuse_ln:
        assert tn == N, "fused LayerNorm requires the full hidden dim in one N tile"
    grid = (M // tm, N // tn, K // tk)

    in_specs = [pl.BlockSpec((tm, tk), lambda i, j, k: (i, k)),
                pl.BlockSpec((tk, tn), lambda i, j, k: (k, j))]
    operands = [x, w]
    if bias is not None:
        in_specs.append(pl.BlockSpec((1, tn), lambda i, j, k: (0, j)))
        operands.append(bias)
    if residual is not None:
        in_specs.append(pl.BlockSpec((tm, tn), lambda i, j, k: (i, j)))
        operands.append(residual)
    if fuse_ln:
        in_specs.append(pl.BlockSpec((1, tn), lambda i, j, k: (0, j)))
        in_specs.append(pl.BlockSpec((1, tn), lambda i, j, k: (0, j)))
        operands.append(ln_gamma)
        operands.append(ln_beta)

    out_block = pl.BlockSpec((tm, tn), lambda i, j, k: (i, j))
    if fuse_ln:
        out_shape = (jax.ShapeDtypeStruct((M, N), out_dtype),
                     jax.ShapeDtypeStruct((M, N), out_dtype))
        out_specs = (out_block, pl.BlockSpec((tm, tn), lambda i, j, k: (i, j)))
    else:
        out_shape = jax.ShapeDtypeStruct((M, N), out_dtype)
        out_specs = out_block

    kernel = _make_matmul_kernel(bias is not None, residual is not None,
                                 activation, fuse_ln, ln_eps)

    return pl.pallas_call(
        kernel,
        out_shape=out_shape,
        grid=grid,
        in_specs=in_specs,
        out_specs=out_specs,
        scratch_shapes=[pltpu.VMEM((tm, tn), jnp.float32)],
        compiler_params=pltpu.CompilerParams(
            dimension_semantics=("parallel", "parallel", "arbitrary"),
            vmem_limit_bytes=_VMEM_LIMIT),
    )(*operands)


# ------------------------------ LayerNorm ------------------------------------
# Standalone LN is only used for the very first pre-norm (all other LNs are
# fused into the preceding residual-matmul epilogue).


def _layernorm_kernel(x_ref, g_ref, b_ref, o_ref, *, eps):
    x = x_ref[...].astype(jnp.float32)
    mu = jnp.mean(x, axis=-1, keepdims=True)
    xc = x - mu
    var = jnp.mean(xc * xc, axis=-1, keepdims=True)
    y = xc * jax.lax.rsqrt(var + eps)
    o_ref[...] = (y * g_ref[...].astype(jnp.float32)
                  + b_ref[...].astype(jnp.float32)).astype(o_ref.dtype)


def layernorm_pallas(x, gamma, beta, eps=1e-5):
    """x: [M, H] (bf16), gamma/beta: [1, H] (f32). Tiled over rows."""
    M, H = x.shape
    tm = _pick_tile(M, 256, (8,))
    # keep >=2 row blocks when possible so both v7x TensorCores get work
    if tm == M and M >= 16 and (M // 2) % 8 == 0:
        tm = M // 2
    return pl.pallas_call(
        functools.partial(_layernorm_kernel, eps=eps),
        out_shape=jax.ShapeDtypeStruct((M, H), x.dtype),
        grid=(M // tm,),
        in_specs=[pl.BlockSpec((tm, H), lambda i: (i, 0)),
                  pl.BlockSpec((1, H), lambda i: (0, 0)),
                  pl.BlockSpec((1, H), lambda i: (0, 0))],
        out_specs=pl.BlockSpec((tm, H), lambda i: (i, 0)),
        compiler_params=pltpu.CompilerParams(
            dimension_semantics=("parallel",), vmem_limit_bytes=_VMEM_LIMIT),
    )(x, gamma, beta)


# --------------------------- flash attention ---------------------------------
# Grid (B, heads, q_blocks, kv_blocks); q/k/v (Tq|Tk, Dh) tiles are sliced
# straight out of the flat [B*S, 3H] fused projection output via BlockSpec
# index maps (no head-split transposes).  Online softmax over the KV axis.


def _flash_attn_kernel(q_ref, k_ref, v_ref, o_ref, m_sc, l_sc, acc_sc,
                       *, scale, tq, tk):
    qi = pl.program_id(2)
    ki = pl.program_id(3)
    nk = pl.num_programs(3)
    q_start = qi * tq
    k_start = ki * tk

    @pl.when(ki == 0)
    def _():
        m_sc[...] = jnp.full(m_sc.shape, -1e30, jnp.float32)
        l_sc[...] = jnp.zeros_like(l_sc)
        acc_sc[...] = jnp.zeros_like(acc_sc)

    # Skip KV blocks that are entirely above the causal diagonal.
    @pl.when(k_start < q_start + tq)
    def _():
        # scale Q (Tq*Dh ops) instead of the [Tq, Tk] score tile
        q = (q_ref[...].astype(jnp.float32) * scale).astype(q_ref.dtype)
        s = jax.lax.dot_general(                       # contract Dh (no k.T copy)
            q, k_ref[...],
            dimension_numbers=(((1,), (1,)), ((), ())),
            preferred_element_type=jnp.float32)        # [Tq, Tk] f32
        row = q_start + jax.lax.broadcasted_iota(jnp.int32, (tq, tk), 0)
        col = k_start + jax.lax.broadcasted_iota(jnp.int32, (tq, tk), 1)
        s = jnp.where(col > row, jnp.float32(-1e30), s)

        m_prev = m_sc[...]
        m_new = jnp.maximum(m_prev, jnp.max(s, axis=-1, keepdims=True))
        alpha = jnp.exp(m_prev - m_new)
        p = jnp.exp(s - m_new)
        l_sc[...] = alpha * l_sc[...] + jnp.sum(p, axis=-1, keepdims=True)
        acc_sc[...] = alpha * acc_sc[...] + jnp.dot(
            p.astype(v_ref.dtype), v_ref[...], preferred_element_type=jnp.float32)
        m_sc[...] = m_new

    @pl.when(ki == nk - 1)
    def _():
        o_ref[...] = (acc_sc[...] * pl.reciprocal(l_sc[...], approx=False)
                      ).astype(o_ref.dtype)


def attention_pallas(qkv, seq_len, num_heads):
    """qkv: [B*S, 3H] fused projection output.  Returns [B*S, H]."""
    M, H3 = qkv.shape
    H = H3 // 3
    Dh = H // num_heads
    S = seq_len
    B = M // S
    assert M % S == 0
    assert S % 8 == 0, "seq_len must be a multiple of 8 for this layout"
    assert Dh % 128 == 0 or num_heads == 1, \
        "head_dim must be a multiple of 128 (or a single head) for strided head slicing"
    scale = 1.0 / math.sqrt(Dh)

    tq = _pick_tile(S, 256, (128, 8))
    tk = _pick_tile(S, 256, (128, 8))
    nq = S // tq
    nk = S // tk

    q_spec = pl.BlockSpec((tq, Dh), lambda b, h, qi, ki: (b * nq + qi, h))
    k_spec = pl.BlockSpec((tk, Dh), lambda b, h, qi, ki: (b * nk + ki, num_heads + h))
    v_spec = pl.BlockSpec((tk, Dh), lambda b, h, qi, ki: (b * nk + ki, 2 * num_heads + h))
    o_spec = pl.BlockSpec((tq, Dh), lambda b, h, qi, ki: (b * nq + qi, h))

    return pl.pallas_call(
        functools.partial(_flash_attn_kernel, scale=scale, tq=tq, tk=tk),
        out_shape=jax.ShapeDtypeStruct((M, H), qkv.dtype),
        grid=(B, num_heads, nq, nk),
        in_specs=[q_spec, k_spec, v_spec],
        out_specs=o_spec,
        scratch_shapes=[pltpu.VMEM((tq, 1), jnp.float32),     # m
                        pltpu.VMEM((tq, 1), jnp.float32),     # l
                        pltpu.VMEM((tq, Dh), jnp.float32)],   # acc
        compiler_params=pltpu.CompilerParams(
            dimension_semantics=("parallel", "parallel", "parallel", "arbitrary"),
            vmem_limit_bytes=_VMEM_LIMIT),
    )(qkv, qkv, qkv)


# ----------------------------- model wrapper -------------------------------


def sinusoidal_pos_embedding(seq_len, hidden):
    pos = jnp.arange(seq_len, dtype=jnp.float32)[:, None]            # [S, 1]
    i = jnp.arange(hidden // 2, dtype=jnp.float32)[None, :]          # [1, H/2]
    angles = pos / jnp.power(10000.0, (2.0 * i) / hidden)            # [S, H/2]
    pe = jnp.zeros((seq_len, hidden), dtype=jnp.float32)
    pe = pe.at[:, 0::2].set(jnp.sin(angles))
    pe = pe.at[:, 1::2].set(jnp.cos(angles))
    return pe                                                        # [S, H]


def init_params(key, vocab_size, hidden, num_layers, num_heads, ffn_size):
    keys = jax.random.split(key, 1 + num_layers * 4)
    scale = 0.02
    wdt = jnp.bfloat16
    params = {
        "token_emb": (jax.random.normal(keys[0], (vocab_size, hidden), jnp.float32)
                      * scale).astype(wdt),
        "final_ln_g": jnp.ones((1, hidden), jnp.float32),
        "final_ln_b": jnp.zeros((1, hidden), jnp.float32),
        "layers": [],
    }
    for l in range(num_layers):
        k = keys[1 + l * 4: 1 + (l + 1) * 4]
        layer = {
            "ln1_g": jnp.ones((1, hidden), jnp.float32),
            "ln1_b": jnp.zeros((1, hidden), jnp.float32),
            # fused QKV projection weight [H, 3H]
            "wqkv": (jax.random.normal(k[0], (hidden, 3 * hidden), jnp.float32)
                     * scale).astype(wdt),
            "bqkv": jnp.zeros((1, 3 * hidden), wdt),
            "wo": (jax.random.normal(k[1], (hidden, hidden), jnp.float32)
                   * scale).astype(wdt),
            "bo": jnp.zeros((1, hidden), wdt),
            "ln2_g": jnp.ones((1, hidden), jnp.float32),
            "ln2_b": jnp.zeros((1, hidden), jnp.float32),
            "w1": (jax.random.normal(k[2], (hidden, ffn_size), jnp.float32)
                   * scale).astype(wdt),
            "b1": jnp.zeros((1, ffn_size), wdt),
            "w2": (jax.random.normal(k[3], (ffn_size, hidden), jnp.float32)
                   * scale).astype(wdt),
            "b2": jnp.zeros((1, hidden), wdt),
        }
        params["layers"].append(layer)
    return params


def _proj_residual_ln(inp, w, b, residual, gamma, beta, fuse):
    """x_new = inp @ w + b + residual ;  h = LayerNorm(x_new).
    When `fuse`, the LN runs inside the matmul epilogue (one pallas_call)."""
    if fuse:
        return tiled_matmul(inp, w, bias=b, residual=residual,
                            ln_gamma=gamma, ln_beta=beta)
    x_new = tiled_matmul(inp, w, bias=b, residual=residual)
    return x_new, layernorm_pallas(x_new, gamma, beta)


def transformer_lm_forward(params, input_ids, *, num_heads):
    B, S = input_ids.shape
    emb = params["token_emb"]                     # [V, H] bf16
    V, H = emb.shape
    fuse_ln = (H <= 1024) and (H % 128 == 0)

    # embeddings (glue: gather + constant positional table; pos table is
    # constant-folded under jit).
    x = jnp.take(emb, input_ids, axis=0).astype(jnp.float32)          # [B, S, H]
    x = x + sinusoidal_pos_embedding(S, H)[None, :, :]
    x = x.astype(jnp.bfloat16).reshape(B * S, H)                      # [M, H]

    layers = params["layers"]
    n_layers = len(layers)

    # First pre-norm is standalone; all subsequent LNs are fused into the
    # preceding residual-matmul epilogue.
    if n_layers:
        h = layernorm_pallas(x, layers[0]["ln1_g"], layers[0]["ln1_b"])
    else:
        h = layernorm_pallas(x, params["final_ln_g"], params["final_ln_b"])

    for li, layer in enumerate(layers):
        # --- attention sub-block (pre-norm); LN2 fused into Wo epilogue ---
        qkv = tiled_matmul(h, layer["wqkv"], bias=layer["bqkv"])       # [M, 3H]
        attn = attention_pallas(qkv, S, num_heads)                     # [M, H]
        x, h = _proj_residual_ln(attn, layer["wo"], layer["bo"], x,
                                 layer["ln2_g"], layer["ln2_b"], fuse_ln)

        # --- FFN sub-block; next-layer LN1 (or final LN) fused into FFN2 ---
        ff = tiled_matmul(h, layer["w1"], bias=layer["b1"], activation="gelu")
        if li + 1 < n_layers:
            ng, nb = layers[li + 1]["ln1_g"], layers[li + 1]["ln1_b"]
        else:
            ng, nb = params["final_ln_g"], params["final_ln_b"]
        x, h = _proj_residual_ln(ff, layer["w2"], layer["b2"], x, ng, nb, fuse_ln)

    # tied lm_head (no bias): transpose emb once to [H, V] and pad V to a lane
    # multiple so the matmul streams a plain weight with lane-dense stores.
    emb_t = jnp.transpose(emb)                                        # [H, V]
    pad = (-V) % 128
    if pad:
        emb_t = jnp.pad(emb_t, ((0, 0), (0, pad)))
    logits = tiled_matmul(h, emb_t, out_dtype=jnp.float32)            # [M, Vp]
    if pad:
        logits = logits[:, :V]
    return logits.reshape(B, S, V)


# --------------------------------- driver -----------------------------------

if __name__ == "__main__":
    VOCAB = 512
    SEQ = 8
    HIDDEN = 256
    LAYERS = 2
    HEADS = 2       # head_dim = 128 -> lane-aligned head slices via BlockSpec
    FFN = 512
    BATCH = 2

    key = jax.random.PRNGKey(0)
    pkey, ikey = jax.random.split(key)
    params = init_params(pkey, VOCAB, HIDDEN, LAYERS, HEADS, FFN)
    input_ids = jax.random.randint(ikey, (BATCH, SEQ), 0, VOCAB, dtype=jnp.int32)

    fwd = jax.jit(functools.partial(transformer_lm_forward, num_heads=HEADS))
    logits = fwd(params, input_ids)
    jax.block_until_ready(logits)

    assert logits.shape == (BATCH, SEQ, VOCAB), logits.shape
    assert bool(jnp.all(jnp.isfinite(logits)))
    print("KERNEL_OK")
</pallas_src>

<mosaic_0001>
module attributes {stable_mosaic.version = 11 : i64} {
  func.func @_layernorm_kernel(%arg0: i32, %arg1: memref<8x256xbf16, #tpu.memory_space<vmem>>, %arg2: memref<1x256xf32, #tpu.memory_space<vmem>>, %arg3: memref<1x256xf32, #tpu.memory_space<vmem>>, %arg4: memref<8x256xbf16, #tpu.memory_space<vmem>>) attributes {dimension_semantics = [#tpu.dimension_semantics<parallel>], iteration_bounds = array<i64: 2>, scalar_prefetch = 0 : i64, scratch_operands = 0 : i64, tpu.core_type = #tpu.core_type<tc>, window_params = [{transform_indices = @transform_0, window_bounds = array<i64: 8, 256>}, {pipeline_mode = #tpu.pipeline_mode<synchronous>, transform_indices = @transform_1, window_bounds = array<i64: 1, 256>}, {pipeline_mode = #tpu.pipeline_mode<synchronous>, transform_indices = @transform_2, window_bounds = array<i64: 1, 256>}, {transform_indices = @transform_3, window_bounds = array<i64: 8, 256>}]} {
    %c0 = arith.constant 0 : index
    %c0_0 = arith.constant 0 : index
    %0 = vector.load %arg1[%c0, %c0_0] : memref<8x256xbf16, #tpu.memory_space<vmem>>, vector<8x256xbf16>
    %1 = arith.extf %0 : vector<8x256xbf16> to vector<8x256xf32>
    %cst = arith.constant dense<0.000000e+00> : vector<8xf32>
    %2 = vector.multi_reduction <add>, %1, %cst [1] : vector<8x256xf32> to vector<8xf32>
    %3 = vector.shape_cast %2 : vector<8xf32> to vector<8x1xf32>
    %cst_1 = arith.constant 2.560000e+02 : f32
    %4 = vector.broadcast %cst_1 : f32 to vector<8x1xf32>
    %5 = arith.divf %3, %4 : vector<8x1xf32>
    %6 = vector.broadcast %5 : vector<8x1xf32> to vector<8x256xf32>
    %7 = arith.subf %1, %6 : vector<8x256xf32>
    %8 = arith.mulf %7, %7 : vector<8x256xf32>
    %cst_2 = arith.constant dense<0.000000e+00> : vector<8xf32>
    %9 = vector.multi_reduction <add>, %8, %cst_2 [1] : vector<8x256xf32> to vector<8xf32>
    %10 = vector.shape_cast %9 : vector<8xf32> to vector<8x1xf32>
    %cst_3 = arith.constant 2.560000e+02 : f32
    %11 = vector.broadcast %cst_3 : f32 to vector<8x1xf32>
    %12 = arith.divf %10, %11 : vector<8x1xf32>
    %cst_4 = arith.constant 9.99999974E-6 : f32
    %13 = vector.broadcast %cst_4 : f32 to vector<8x1xf32>
    %14 = arith.addf %12, %13 : vector<8x1xf32>
    %15 = math.rsqrt %14 : vector<8x1xf32>
    %16 = vector.broadcast %15 : vector<8x1xf32> to vector<8x256xf32>
    %17 = arith.mulf %7, %16 : vector<8x256xf32>
    %c0_5 = arith.constant 0 : index
    %c0_6 = arith.constant 0 : index
    %18 = vector.load %arg2[%c0_5, %c0_6] : memref<1x256xf32, #tpu.memory_space<vmem>>, vector<1x256xf32>
    %19 = vector.broadcast %18 : vector<1x256xf32> to vector<8x256xf32>
    %20 = arith.mulf %17, %19 : vector<8x256xf32>
    %c0_7 = arith.constant 0 : index
    %c0_8 = arith.constant 0 : index
    %21 = vector.load %arg3[%c0_7, %c0_8] : memref<1x256xf32, #tpu.memory_space<vmem>>, vector<1x256xf32>
    %22 = vector.broadcast %21 : vector<1x256xf32> to vector<8x256xf32>
    %23 = arith.addf %20, %22 : vector<8x256xf32>
    %24 = arith.truncf %23 : vector<8x256xf32> to vector<8x256xbf16>
    %c0_9 = arith.constant 0 : index
    %c0_10 = arith.constant 0 : index
    %25 = vector.load %arg4[%c0_9, %c0_10] : memref<8x256xbf16, #tpu.memory_space<vmem>>, vector<8x256xbf16>
    tpu.vector_store %arg4[%c0_9, %c0_10], %24 {strides = array<i32>} : memref<8x256xbf16, #tpu.memory_space<vmem>>, vector<8x256xbf16>,
    return
  }
  func.func @transform_0(%arg0: i32) -> (i32, i32) {
    %c0_i32 = arith.constant 0 : i32
    %c0_i32_0 = arith.constant 0 : i32
    return %arg0, %c0_i32 : i32, i32
  }
  func.func @transform_1(%arg0: i32) -> (i32, i32) {
    %c0_i32 = arith.constant 0 : i32
    %c0_i32_0 = arith.constant 0 : i32
    %c0_i32_1 = arith.constant 0 : i32
    return %c0_i32, %c0_i32_0 : i32, i32
  }
  func.func @transform_2(%arg0: i32) -> (i32, i32) {
    %c0_i32 = arith.constant 0 : i32
    %c0_i32_0 = arith.constant 0 : i32
    %c0_i32_1 = arith.constant 0 : i32
    return %c0_i32, %c0_i32_0 : i32, i32
  }
  func.func @transform_3(%arg0: i32) -> (i32, i32) {
    %c0_i32 = arith.constant 0 : i32
    %c0_i32_0 = arith.constant 0 : i32
    return %arg0, %c0_i32 : i32, i32
  }
}

module attributes {stable_mosaic.version = 11 : i64} {
  func.func @kernel(%arg0: i32, %arg1: i32, %arg2: i32, %arg3: memref<16x256xbf16, #tpu.memory_space<vmem>>, %arg4: memref<256x768xbf16, #tpu.memory_space<vmem>>, %arg5: memref<1x768xbf16, #tpu.memory_space<vmem>>, %arg6: memref<16x768xbf16, #tpu.memory_space<vmem>>, %arg7: memref<16x768xf32, #tpu.memory_space<vmem>>) attributes {dimension_semantics = [#tpu.dimension_semantics<parallel>, #tpu.dimension_semantics<parallel>, #tpu.dimension_semantics<arbitrary>], iteration_bounds = array<i64: 1, 1, 1>, scalar_prefetch = 0 : i64, scratch_operands = 1 : i64, tpu.core_type = #tpu.core_type<tc>, window_params = [{transform_indices = @transform_0, window_bounds = array<i64: 16, 256>}, {transform_indices = @transform_1, window_bounds = array<i64: 256, 768>}, {transform_indices = @transform_2, window_bounds = array<i64: 1, 768>}, {transform_indices = @transform_3, window_bounds = array<i64: 16, 768>}]} {
    %c0_i32 = arith.constant 0 : i32
    %0 = arith.cmpi eq, %arg2, %c0_i32 : i32
    %1 = arith.extui %0 : i1 to i32
    %c0_i32_0 = arith.constant 0 : i32
    %2 = arith.cmpi ne, %1, %c0_i32_0 : i32
    scf.if %2 {
      %cst_10 = arith.constant 0.000000e+00 : f32
      %12 = vector.broadcast %cst_10 : f32 to vector<16x768xf32>
      %c0_11 = arith.constant 0 : index
      %c0_12 = arith.constant 0 : index
      %13 = vector.load %arg7[%c0_11, %c0_12] : memref<16x768xf32, #tpu.memory_space<vmem>>, vector<16x768xf32>
      tpu.vector_store %arg7[%c0_11, %c0_12], %12 {strides = array<i32>} : memref<16x768xf32, #tpu.memory_space<vmem>>, vector<16x768xf32>,
    } else {
    }
    %c0 = arith.constant 0 : index
    %c0_1 = arith.constant 0 : index
    %3 = vector.load %arg7[%c0, %c0_1] : memref<16x768xf32, #tpu.memory_space<vmem>>, vector<16x768xf32>
    %c0_2 = arith.constant 0 : index
    %c0_3 = arith.constant 0 : index
    %4 = vector.load %arg3[%c0_2, %c0_3] : memref<16x256xbf16, #tpu.memory_space<vmem>>, vector<16x256xbf16>
    %c0_4 = arith.constant 0 : index
    %c0_5 = arith.constant 0 : index
    %5 = vector.load %arg4[%c0_4, %c0_5] : memref<256x768xbf16, #tpu.memory_space<vmem>>, vector<256x768xbf16>
    %cst = arith.constant dense<0.000000e+00> : vector<16x768xf32>
    %6 = tpu.matmul %4, %5, %cst {dimension_numbers = #tpu.dot_dimension_numbers<[1], [0], [0], [1], [0, 0, 1, 1], [], []>} : vector<16x256xbf16>, vector<256x768xbf16>, vector<16x768xf32> -> vector<16x768xf32>
    %7 = arith.addf %3, %6 : vector<16x768xf32>
    %c0_6 = arith.constant 0 : index
    %c0_7 = arith.constant 0 : index
    %8 = vector.load %arg7[%c0_6, %c0_7] : memref<16x768xf32, #tpu.memory_space<vmem>>, vector<16x768xf32>
    tpu.vector_store %arg7[%c0_6, %c0_7], %7 {strides = array<i32>} : memref<16x768xf32, #tpu.memory_space<vmem>>, vector<16x768xf32>,
    %c0_i32_8 = arith.constant 0 : i32
    %9 = arith.cmpi eq, %arg2, %c0_i32_8 : i32
    %10 = arith.extui %9 : i1 to i32
    %c0_i32_9 = arith.constant 0 : i32
    %11 = arith.cmpi ne, %10, %c0_i32_9 : i32
    scf.if %11 {
      %c0_10 = arith.constant 0 : index
      %c0_11 = arith.constant 0 : index
      %12 = vector.load %arg7[%c0_10, %c0_11] : memref<16x768xf32, #tpu.memory_space<vmem>>, vector<16x768xf32>
      %c0_12 = arith.constant 0 : index
      %c0_13 = arith.constant 0 : index
      %13 = vector.load %arg5[%c0_12, %c0_13] : memref<1x768xbf16, #tpu.memory_space<vmem>>, vector<1x768xbf16>
      %14 = arith.extf %13 : vector<1x768xbf16> to vector<1x768xf32>
      %15 = vector.broadcast %14 : vector<1x768xf32> to vector<16x768xf32>
      %16 = arith.addf %12, %15 : vector<16x768xf32>
      %17 = arith.truncf %16 : vector<16x768xf32> to vector<16x768xbf16>
      %c0_14 = arith.constant 0 : index
      %c0_15 = arith.constant 0 : index
      %18 = vector.load %arg6[%c0_14, %c0_15] : memref<16x768xbf16, #tpu.memory_space<vmem>>, vector<16x768xbf16>
      tpu.vector_store %arg6[%c0_14, %c0_15], %17 {strides = array<i32>} : memref<16x768xbf16, #tpu.memory_space<vmem>>, vector<16x768xbf16>,
    } else {
    }
    return
  }
  func.func @transform_0(%arg0: i32, %arg1: i32, %arg2: i32) -> (i32, i32) {
    %c0_i32 = arith.constant 0 : i32
    return %arg0, %arg2 : i32, i32
  }
  func.func @transform_1(%arg0: i32, %arg1: i32, %arg2: i32) -> (i32, i32) {
    %c0_i32 = arith.constant 0 : i32
    return %arg2, %arg1 : i32, i32
  }
  func.func @transform_2(%arg0: i32, %arg1: i32, %arg2: i32) -> (i32, i32) {
    %c0_i32 = arith.constant 0 : i32
    %c0_i32_0 = arith.constant 0 : i32
    return %c0_i32, %arg1 : i32, i32
  }
  func.func @transform_3(%arg0: i32, %arg1: i32, %arg2: i32) -> (i32, i32) {
    %c0_i32 = arith.constant 0 : i32
    return %arg0, %arg1 : i32, i32
  }
}

module attributes {stable_mosaic.version = 11 : i64} {
  func.func @_flash_attn_kernel(%arg0: i32, %arg1: i32, %arg2: i32, %arg3: i32, %arg4: memref<8x128xbf16, #tpu.memory_space<vmem>>, %arg5: memref<8x128xbf16, #tpu.memory_space<vmem>>, %arg6: memref<8x128xbf16, #tpu.memory_space<vmem>>, %arg7: memref<8x128xbf16, #tpu.memory_space<vmem>>, %arg8: memref<8x1xf32, #tpu.memory_space<vmem>>, %arg9: memref<8x1xf32, #tpu.memory_space<vmem>>, %arg10: memref<8x128xf32, #tpu.memory_space<vmem>>) attributes {dimension_semantics = [#tpu.dimension_semantics<parallel>, #tpu.dimension_semantics<parallel>, #tpu.dimension_semantics<parallel>, #tpu.dimension_semantics<arbitrary>], iteration_bounds = array<i64: 2, 2, 1, 1>, scalar_prefetch = 0 : i64, scratch_operands = 3 : i64, tpu.core_type = #tpu.core_type<tc>, window_params = [{transform_indices = @transform_0, window_bounds = array<i64: 8, 128>}, {transform_indices = @transform_1, window_bounds = array<i64: 8, 128>}, {transform_indices = @transform_2, window_bounds = array<i64: 8, 128>}, {transform_indices = @transform_3, window_bounds = array<i64: 8, 128>}]} {
    %c8_i32 = arith.constant 8 : i32
    %0 = arith.muli %arg2, %c8_i32 : i32
    %c8_i32_0 = arith.constant 8 : i32
    %1 = arith.muli %arg3, %c8_i32_0 : i32
    %c0_i32 = arith.constant 0 : i32
    %2 = arith.cmpi eq, %arg3, %c0_i32 : i32
    %3 = arith.extui %2 : i1 to i32
    %c0_i32_1 = arith.constant 0 : i32
    %4 = arith.cmpi ne, %3, %c0_i32_1 : i32
    scf.if %4 {
      %cst = arith.constant -1.000000e+30 : f32
      %12 = vector.broadcast %cst : f32 to vector<8x1xf32>
      %c0 = arith.constant 0 : index
      %c0_6 = arith.constant 0 : index
      %13 = vector.load %arg8[%c0, %c0_6] : memref<8x1xf32, #tpu.memory_space<vmem>>, vector<8x1xf32>
      tpu.vector_store %arg8[%c0, %c0_6], %12 {strides = array<i32>} : memref<8x1xf32, #tpu.memory_space<vmem>>, vector<8x1xf32>,
      %cst_7 = arith.constant 0.000000e+00 : f32
      %14 = vector.broadcast %cst_7 : f32 to vector<8x1xf32>
      %c0_8 = arith.constant 0 : index
      %c0_9 = arith.constant 0 : index
      %15 = vector.load %arg9[%c0_8, %c0_9] : memref<8x1xf32, #tpu.memory_space<vmem>>, vector<8x1xf32>
      tpu.vector_store %arg9[%c0_8, %c0_9], %14 {strides = array<i32>} : memref<8x1xf32, #tpu.memory_space<vmem>>, vector<8x1xf32>,
      %cst_10 = arith.constant 0.000000e+00 : f32
      %16 = vector.broadcast %cst_10 : f32 to vector<8x128xf32>
      %c0_11 = arith.constant 0 : index
      %c0_12 = arith.constant 0 : index
      %17 = vector.load %arg10[%c0_11, %c0_12] : memref<8x128xf32, #tpu.memory_space<vmem>>, vector<8x128xf32>
      tpu.vector_store %arg10[%c0_11, %c0_12], %16 {strides = array<i32>} : memref<8x128xf32, #tpu.memory_space<vmem>>, vector<8x128xf32>,
    } else {
    }
    %c8_i32_2 = arith.constant 8 : i32
    %5 = arith.addi %0, %c8_i32_2 : i32
    %6 = arith.cmpi slt, %1, %5 : i32
    %7 = arith.extui %6 : i1 to i32
    %c0_i32_3 = arith.constant 0 : i32
    %8 = arith.cmpi ne, %7, %c0_i32_3 : i32
    scf.if %8 {
      %c0 = arith.constant 0 : index
      %c0_6 = arith.constant 0 : index
      %12 = vector.load %arg4[%c0, %c0_6] : memref<8x128xbf16, #tpu.memory_space<vmem>>, vector<8x128xbf16>
      %13 = arith.extf %12 : vector<8x128xbf16> to vector<8x128xf32>
      %cst = arith.constant 0.0883883461 : f32
      %14 = vector.broadcast %cst : f32 to vector<8x128xf32>
      %15 = arith.mulf %13, %14 : vector<8x128xf32>
      %16 = arith.truncf %15 : vector<8x128xf32> to vector<8x128xbf16>
      %c0_7 = arith.constant 0 : index
      %c0_8 = arith.constant 0 : index
      %17 = vector.load %arg5[%c0_7, %c0_8] : memref<8x128xbf16, #tpu.memory_space<vmem>>, vector<8x128xbf16>
      %cst_9 = arith.constant dense<0.000000e+00> : vector<8x8xf32>
      %18 = tpu.matmul %16, %17, %cst_9 {dimension_numbers = #tpu.dot_dimension_numbers<[1], [1], [0], [0], [0, 0, 1, 0], [], []>} : vector<8x128xbf16>, vector<8x128xbf16>, vector<8x8xf32> -> vector<8x8xf32>
      %19 = tpu.iota {dimensions = array<i32: 0>} : vector<8x8xi32>
      %20 = vector.broadcast %0 : i32 to vector<8x8xi32>
      %21 = arith.addi %20, %19 : vector<8x8xi32>
      %22 = tpu.iota {dimensions = array<i32: 1>} : vector<8x8xi32>
      %23 = vector.broadcast %1 : i32 to vector<8x8xi32>
      %24 = arith.addi %23, %22 : vector<8x8xi32>
      %25 = arith.cmpi sgt, %24, %21 : vector<8x8xi32>
      %cst_10 = arith.constant -1.000000e+30 : f32
      %26 = vector.broadcast %cst_10 : f32 to vector<8x8xf32>
      %27 = arith.select %25, %26, %18 : vector<8x8xi1>, vector<8x8xf32>
      %c0_11 = arith.constant 0 : index
      %c0_12 = arith.constant 0 : index
      %28 = vector.load %arg8[%c0_11, %c0_12] : memref<8x1xf32, #tpu.memory_space<vmem>>, vector<8x1xf32>
      %cst_13 = arith.constant dense<0xFF800000> : vector<8xf32>
      %29 = vector.multi_reduction <maximumf>, %27, %cst_13 [1] : vector<8x8xf32> to vector<8xf32>
      %30 = vector.shape_cast %29 : vector<8xf32> to vector<8x1xf32>
      %31 = arith.maximumf %28, %30 : vector<8x1xf32>
      %32 = arith.subf %28, %31 : vector<8x1xf32>
      %33 = math.exp %32 : vector<8x1xf32>
      %34 = vector.broadcast %31 : vector<8x1xf32> to vector<8x8xf32>
      %35 = arith.subf %27, %34 : vector<8x8xf32>
      %36 = math.exp %35 : vector<8x8xf32>
      %c0_14 = arith.constant 0 : index
      %c0_15 = arith.constant 0 : index
      %37 = vector.load %arg9[%c0_14, %c0_15] : memref<8x1xf32, #tpu.memory_space<vmem>>, vector<8x1xf32>
      %38 = arith.mulf %33, %37 : vector<8x1xf32>
      %cst_16 = arith.constant dense<0.000000e+00> : vector<8xf32>
      %39 = vector.multi_reduction <add>, %36, %cst_16 [1] : vector<8x8xf32> to vector<8xf32>
      %40 = vector.shape_cast %39 : vector<8xf32> to vector<8x1xf32>
      %41 = arith.addf %38, %40 : vector<8x1xf32>
      %c0_17 = arith.constant 0 : index
      %c0_18 = arith.constant 0 : index
      %42 = vector.load %arg9[%c0_17, %c0_18] : memref<8x1xf32, #tpu.memory_space<vmem>>, vector<8x1xf32>
      tpu.vector_store %arg9[%c0_17, %c0_18], %41 {strides = array<i32>} : memref<8x1xf32, #tpu.memory_space<vmem>>, vector<8x1xf32>,
      %c0_19 = arith.constant 0 : index
      %c0_20 = arith.constant 0 : index
      %43 = vector.load %arg10[%c0_19, %c0_20] : memref<8x128xf32, #tpu.memory_space<vmem>>, vector<8x128xf32>
      %44 = vector.broadcast %33 : vector<8x1xf32> to vector<8x128xf32>
      %45 = arith.mulf %44, %43 : vector<8x128xf32>
      %46 = arith.truncf %36 : vector<8x8xf32> to vector<8x8xbf16>
      %c0_21 = arith.constant 0 : index
      %c0_22 = arith.constant 0 : index
      %47 = vector.load %arg6[%c0_21, %c0_22] : memref<8x128xbf16, #tpu.memory_space<vmem>>, vector<8x128xbf16>
      %cst_23 = arith.constant dense<0.000000e+00> : vector<8x128xf32>
      %48 = tpu.matmul %46, %47, %cst_23 {dimension_numbers = #tpu.dot_dimension_numbers<[1], [0], [0], [1], [0, 0, 1, 1], [], []>} : vector<8x8xbf16>, vector<8x128xbf16>, vector<8x128xf32> -> vector<8x128xf32>
      %49 = arith.addf %45, %48 : vector<8x128xf32>
      %c0_24 = arith.constant 0 : index
      %c0_25 = arith.constant 0 : index
      %50 = vector.load %arg10[%c0_24, %c0_25] : memref<8x128xf32, #tpu.memory_space<vmem>>, vector<8x128xf32>
      tpu.vector_store %arg10[%c0_24, %c0_25], %49 {strides = array<i32>} : memref<8x128xf32, #tpu.memory_space<vmem>>, vector<8x128xf32>,
      %c0_26 = arith.constant 0 : index
      %c0_27 = arith.constant 0 : index
      %51 = vector.load %arg8[%c0_26, %c0_27] : memref<8x1xf32, #tpu.memory_space<vmem>>, vector<8x1xf32>
      tpu.vector_store %arg8[%c0_26, %c0_27], %31 {strides = array<i32>} : memref<8x1xf32, #tpu.memory_space<vmem>>, vector<8x1xf32>,
    } else {
    }
    %c0_i32_4 = arith.constant 0 : i32
    %9 = arith.cmpi eq, %arg3, %c0_i32_4 : i32
    %10 = arith.extui %9 : i1 to i32
    %c0_i32_5 = arith.constant 0 : i32
    %11 = arith.cmpi ne, %10, %c0_i32_5 : i32
    scf.if %11 {
      %c0 = arith.constant 0 : index
      %c0_6 = arith.constant 0 : index
      %12 = vector.load %arg10[%c0, %c0_6] : memref<8x128xf32, #tpu.memory_space<vmem>>, vector<8x128xf32>
      %c0_7 = arith.constant 0 : index
      %c0_8 = arith.constant 0 : index
      %13 = vector.load %arg9[%c0_7, %c0_8] : memref<8x1xf32, #tpu.memory_space<vmem>>, vector<8x1xf32>
      %14 = tpu.reciprocal %13 : vector<8x1xf32> -> vector<8x1xf32>
      %15 = vector.broadcast %14 : vector<8x1xf32> to vector<8x128xf32>
      %16 = arith.mulf %12, %15 : vector<8x128xf32>
      %17 = arith.truncf %16 : vector<8x128xf32> to vector<8x128xbf16>
      %c0_9 = arith.constant 0 : index
      %c0_10 = arith.constant 0 : index
      %18 = vector.load %arg7[%c0_9, %c0_10] : memref<8x128xbf16, #tpu.memory_space<vmem>>, vector<8x128xbf16>
      tpu.vector_store %arg7[%c0_9, %c0_10], %17 {strides = array<i32>} : memref<8x128xbf16, #tpu.memory_space<vmem>>, vector<8x128xbf16>,
    } else {
    }
    return
  }
  func.func @transform_0(%arg0: i32, %arg1: i32, %arg2: i32, %arg3: i32) -> (i32, i32) {
    %c1_i32 = arith.constant 1 : i32
    %0 = arith.muli %arg0, %c1_i32 : i32
    %1 = arith.addi %0, %arg2 : i32
    %c0_i32 = arith.constant 0 : i32
    return %1, %arg1 : i32, i32
  }
  func.func @transform_1(%arg0: i32, %arg1: i32, %arg2: i32, %arg3: i32) -> (i32, i32) {
    %c1_i32 = arith.constant 1 : i32
    %0 = arith.muli %arg0, %c1_i32 : i32
    %1 = arith.addi %0, %arg3 : i32
    %c2_i32 = arith.constant 2 : i32
    %2 = arith.addi %c2_i32, %arg1 : i32
    %c0_i32 = arith.constant 0 : i32
    return %1, %2 : i32, i32
  }
  func.func @transform_2(%arg0: i32, %arg1: i32, %arg2: i32, %arg3: i32) -> (i32, i32) {
    %c1_i32 = arith.constant 1 : i32
    %0 = arith.muli %arg0, %c1_i32 : i32
    %1 = arith.addi %0, %arg3 : i32
    %c4_i32 = arith.constant 4 : i32
    %2 = arith.addi %c4_i32, %arg1 : i32
    %c0_i32 = arith.constant 0 : i32
    return %1, %2 : i32, i32
  }
  func.func @transform_3(%arg0: i32, %arg1: i32, %arg2: i32, %arg3: i32) -> (i32, i32) {
    %c1_i32 = arith.constant 1 : i32
    %0 = arith.muli %arg0, %c1_i32 : i32
    %1 = arith.addi %0, %arg2 : i32
    %c0_i32 = arith.constant 0 : i32
    return %1, %arg1 : i32, i32
  }
}

module attributes {stable_mosaic.version = 11 : i64} {
  func.func @kernel(%arg0: i32, %arg1: i32, %arg2: i32, %arg3: memref<16x256xbf16, #tpu.memory_space<vmem>>, %arg4: memref<256x512xbf16, #tpu.memory_space<vmem>>, %arg5: memref<1x512xbf16, #tpu.memory_space<vmem>>, %arg6: memref<16x512xbf16, #tpu.memory_space<vmem>>, %arg7: memref<16x512xf32, #tpu.memory_space<vmem>>) attributes {dimension_semantics = [#tpu.dimension_semantics<parallel>, #tpu.dimension_semantics<parallel>, #tpu.dimension_semantics<arbitrary>], iteration_bounds = array<i64: 1, 1, 1>, scalar_prefetch = 0 : i64, scratch_operands = 1 : i64, tpu.core_type = #tpu.core_type<tc>, window_params = [{transform_indices = @transform_0, window_bounds = array<i64: 16, 256>}, {transform_indices = @transform_1, window_bounds = array<i64: 256, 512>}, {transform_indices = @transform_2, window_bounds = array<i64: 1, 512>}, {transform_indices = @transform_3, window_bounds = array<i64: 16, 512>}]} {
    %c0_i32 = arith.constant 0 : i32
    %0 = arith.cmpi eq, %arg2, %c0_i32 : i32
    %1 = arith.extui %0 : i1 to i32
    %c0_i32_0 = arith.constant 0 : i32
    %2 = arith.cmpi ne, %1, %c0_i32_0 : i32
    scf.if %2 {
      %cst_10 = arith.constant 0.000000e+00 : f32
      %12 = vector.broadcast %cst_10 : f32 to vector<16x512xf32>
      %c0_11 = arith.constant 0 : index
      %c0_12 = arith.constant 0 : index
      %13 = vector.load %arg7[%c0_11, %c0_12] : memref<16x512xf32, #tpu.memory_space<vmem>>, vector<16x512xf32>
      tpu.vector_store %arg7[%c0_11, %c0_12], %12 {strides = array<i32>} : memref<16x512xf32, #tpu.memory_space<vmem>>, vector<16x512xf32>,
    } else {
    }
    %c0 = arith.constant 0 : index
    %c0_1 = arith.constant 0 : index
    %3 = vector.load %arg7[%c0, %c0_1] : memref<16x512xf32, #tpu.memory_space<vmem>>, vector<16x512xf32>
    %c0_2 = arith.constant 0 : index
    %c0_3 = arith.constant 0 : index
    %4 = vector.load %arg3[%c0_2, %c0_3] : memref<16x256xbf16, #tpu.memory_space<vmem>>, vector<16x256xbf16>
    %c0_4 = arith.constant 0 : index
    %c0_5 = arith.constant 0 : index
    %5 = vector.load %arg4[%c0_4, %c0_5] : memref<256x512xbf16, #tpu.memory_space<vmem>>, vector<256x512xbf16>
    %cst = arith.constant dense<0.000000e+00> : vector<16x512xf32>
    %6 = tpu.matmul %4, %5, %cst {dimension_numbers = #tpu.dot_dimension_numbers<[1], [0], [0], [1], [0, 0, 1, 1], [], []>} : vector<16x256xbf16>, vector<256x512xbf16>, vector<16x512xf32> -> vector<16x512xf32>
    %7 = arith.addf %3, %6 : vector<16x512xf32>
    %c0_6 = arith.constant 0 : index
    %c0_7 = arith.constant 0 : index
    %8 = vector.load %arg7[%c0_6, %c0_7] : memref<16x512xf32, #tpu.memory_space<vmem>>, vector<16x512xf32>
    tpu.vector_store %arg7[%c0_6, %c0_7], %7 {strides = array<i32>} : memref<16x512xf32, #tpu.memory_space<vmem>>, vector<16x512xf32>,
    %c0_i32_8 = arith.constant 0 : i32
    %9 = arith.cmpi eq, %arg2, %c0_i32_8 : i32
    %10 = arith.extui %9 : i1 to i32
    %c0_i32_9 = arith.constant 0 : i32
    %11 = arith.cmpi ne, %10, %c0_i32_9 : i32
    scf.if %11 {
      %c0_10 = arith.constant 0 : index
      %c0_11 = arith.constant 0 : index
      %12 = vector.load %arg7[%c0_10, %c0_11] : memref<16x512xf32, #tpu.memory_space<vmem>>, vector<16x512xf32>
      %c0_12 = arith.constant 0 : index
      %c0_13 = arith.constant 0 : index
      %13 = vector.load %arg5[%c0_12, %c0_13] : memref<1x512xbf16, #tpu.memory_space<vmem>>, vector<1x512xbf16>
      %14 = arith.extf %13 : vector<1x512xbf16> to vector<1x512xf32>
      %15 = vector.broadcast %14 : vector<1x512xf32> to vector<16x512xf32>
      %16 = arith.addf %12, %15 : vector<16x512xf32>
      %17 = arith.mulf %16, %16 : vector<16x512xf32>
      %18 = arith.mulf %16, %17 : vector<16x512xf32>
      %cst_14 = arith.constant 4.471500e-02 : f32
      %19 = vector.broadcast %cst_14 : f32 to vector<16x512xf32>
      %20 = arith.mulf %19, %18 : vector<16x512xf32>
      %21 = arith.addf %16, %20 : vector<16x512xf32>
      %cst_15 = arith.constant 0.797884583 : f32
      %22 = vector.broadcast %cst_15 : f32 to vector<16x512xf32>
      %23 = arith.mulf %22, %21 : vector<16x512xf32>
      %24 = math.tanh %23 : vector<16x512xf32>
      %cst_16 = arith.constant 1.000000e+00 : f32
      %25 = vector.broadcast %cst_16 : f32 to vector<16x512xf32>
      %26 = arith.addf %25, %24 : vector<16x512xf32>
      %cst_17 = arith.constant 5.000000e-01 : f32
      %27 = vector.broadcast %cst_17 : f32 to vector<16x512xf32>
      %28 = arith.mulf %27, %26 : vector<16x512xf32>
      %29 = arith.mulf %16, %28 : vector<16x512xf32>
      %30 = arith.truncf %29 : vector<16x512xf32> to vector<16x512xbf16>
      %c0_18 = arith.constant 0 : index
      %c0_19 = arith.constant 0 : index
      %31 = vector.load %arg6[%c0_18, %c0_19] : memref<16x512xbf16, #tpu.memory_space<vmem>>, vector<16x512xbf16>
      tpu.vector_store %arg6[%c0_18, %c0_19], %30 {strides = array<i32>} : memref<16x512xbf16, #tpu.memory_space<vmem>>, vector<16x512xbf16>,
    } else {
    }
    return
  }
  func.func @transform_0(%arg0: i32, %arg1: i32, %arg2: i32) -> (i32, i32) {
    %c0_i32 = arith.constant 0 : i32
    return %arg0, %arg2 : i32, i32
  }
  func.func @transform_1(%arg0: i32, %arg1: i32, %arg2: i32) -> (i32, i32) {
    %c0_i32 = arith.constant 0 : i32
    return %arg2, %arg1 : i32, i32
  }
  func.func @transform_2(%arg0: i32, %arg1: i32, %arg2: i32) -> (i32, i32) {
    %c0_i32 = arith.constant 0 : i32
    %c0_i32_0 = arith.constant 0 : i32
    return %c0_i32, %arg1 : i32, i32
  }
  func.func @transform_3(%arg0: i32, %arg1: i32, %arg2: i32) -> (i32, i32) {
    %c0_i32 = arith.constant 0 : i32
    return %arg0, %arg1 : i32, i32
  }
}

module attributes {stable_mosaic.version = 11 : i64} {
  func.func @kernel(%arg0: i32, %arg1: i32, %arg2: i32, %arg3: memref<16x512xbf16, #tpu.memory_space<vmem>>, %arg4: memref<512x256xbf16, #tpu.memory_space<vmem>>, %arg5: memref<1x256xbf16, #tpu.memory_space<vmem>>, %arg6: memref<16x256xbf16, #tpu.memory_space<vmem>>, %arg7: memref<1x256xf32, #tpu.memory_space<vmem>>, %arg8: memref<1x256xf32, #tpu.memory_space<vmem>>, %arg9: memref<16x256xbf16, #tpu.memory_space<vmem>>, %arg10: memref<16x256xbf16, #tpu.memory_space<vmem>>, %arg11: memref<16x256xf32, #tpu.memory_space<vmem>>) attributes {dimension_semantics = [#tpu.dimension_semantics<parallel>, #tpu.dimension_semantics<parallel>, #tpu.dimension_semantics<arbitrary>], iteration_bounds = array<i64: 1, 1, 1>, scalar_prefetch = 0 : i64, scratch_operands = 1 : i64, tpu.core_type = #tpu.core_type<tc>, window_params = [{transform_indices = @transform_0, window_bounds = array<i64: 16, 512>}, {transform_indices = @transform_1, window_bounds = array<i64: 512, 256>}, {transform_indices = @transform_2, window_bounds = array<i64: 1, 256>}, {transform_indices = @transform_3, window_bounds = array<i64: 16, 256>}, {transform_indices = @transform_4, window_bounds = array<i64: 1, 256>}, {transform_indices = @transform_5, window_bounds = array<i64: 1, 256>}, {transform_indices = @transform_6, window_bounds = array<i64: 16, 256>}, {transform_indices = @transform_7, window_bounds = array<i64: 16, 256>}]} {
    %c0_i32 = arith.constant 0 : i32
    %0 = arith.cmpi eq, %arg2, %c0_i32 : i32
    %1 = arith.extui %0 : i1 to i32
    %c0_i32_0 = arith.constant 0 : i32
    %2 = arith.cmpi ne, %1, %c0_i32_0 : i32
    scf.if %2 {
      %cst_10 = arith.constant 0.000000e+00 : f32
      %12 = vector.broadcast %cst_10 : f32 to vector<16x256xf32>
      %c0_11 = arith.constant 0 : index
      %c0_12 = arith.constant 0 : index
      %13 = vector.load %arg11[%c0_11, %c0_12] : memref<16x256xf32, #tpu.memory_space<vmem>>, vector<16x256xf32>
      tpu.vector_store %arg11[%c0_11, %c0_12], %12 {strides = array<i32>} : memref<16x256xf32, #tpu.memory_space<vmem>>, vector<16x256xf32>,
    } else {
    }
    %c0 = arith.constant 0 : index
    %c0_1 = arith.constant 0 : index
    %3 = vector.load %arg11[%c0, %c0_1] : memref<16x256xf32, #tpu.memory_space<vmem>>, vector<16x256xf32>
    %c0_2 = arith.constant 0 : index
    %c0_3 = arith.constant 0 : index
    %4 = vector.load %arg3[%c0_2, %c0_3] : memref<16x512xbf16, #tpu.memory_space<vmem>>, vector<16x512xbf16>
    %c0_4 = arith.constant 0 : index
    %c0_5 = arith.constant 0 : index
    %5 = vector.load %arg4[%c0_4, %c0_5] : memref<512x256xbf16, #tpu.memory_space<vmem>>, vector<512x256xbf16>
    %cst = arith.constant dense<0.000000e+00> : vector<16x256xf32>
    %6 = tpu.matmul %4, %5, %cst {dimension_numbers = #tpu.dot_dimension_numbers<[1], [0], [0], [1], [0, 0, 1, 1], [], []>} : vector<16x512xbf16>, vector<512x256xbf16>, vector<16x256xf32> -> vector<16x256xf32>
    %7 = arith.addf %3, %6 : vector<16x256xf32>
    %c0_6 = arith.constant 0 : index
    %c0_7 = arith.constant 0 : index
    %8 = vector.load %arg11[%c0_6, %c0_7] : memref<16x256xf32, #tpu.memory_space<vmem>>, vector<16x256xf32>
    tpu.vector_store %arg11[%c0_6, %c0_7], %7 {strides = array<i32>} : memref<16x256xf32, #tpu.memory_space<vmem>>, vector<16x256xf32>,
    %c0_i32_8 = arith.constant 0 : i32
    %9 = arith.cmpi eq, %arg2, %c0_i32_8 : i32
    %10 = arith.extui %9 : i1 to i32
    %c0_i32_9 = arith.constant 0 : i32
    %11 = arith.cmpi ne, %10, %c0_i32_9 : i32
    scf.if %11 {
      %c0_10 = arith.constant 0 : index
      %c0_11 = arith.constant 0 : index
      %12 = vector.load %arg11[%c0_10, %c0_11] : memref<16x256xf32, #tpu.memory_space<vmem>>, vector<16x256xf32>
      %c0_12 = arith.constant 0 : index
      %c0_13 = arith.constant 0 : index
      %13 = vector.load %arg5[%c0_12, %c0_13] : memref<1x256xbf16, #tpu.memory_space<vmem>>, vector<1x256xbf16>
      %14 = arith.extf %13 : vector<1x256xbf16> to vector<1x256xf32>
      %15 = vector.broadcast %14 : vector<1x256xf32> to vector<16x256xf32>
      %16 = arith.addf %12, %15 : vector<16x256xf32>
      %c0_14 = arith.constant 0 : index
      %c0_15 = arith.constant 0 : index
      %17 = vector.load %arg6[%c0_14, %c0_15] : memref<16x256xbf16, #tpu.memory_space<vmem>>, vector<16x256xbf16>
      %18 = arith.extf %17 : vector<16x256xbf16> to vector<16x256xf32>
      %19 = arith.addf %16, %18 : vector<16x256xf32>
      %20 = arith.truncf %19 : vector<16x256xf32> to vector<16x256xbf16>
      %c0_16 = arith.constant 0 : index
      %c0_17 = arith.constant 0 : index
      %21 = vector.load %arg9[%c0_16, %c0_17] : memref<16x256xbf16, #tpu.memory_space<vmem>>, vector<16x256xbf16>
      tpu.vector_store %arg9[%c0_16, %c0_17], %20 {strides = array<i32>} : memref<16x256xbf16, #tpu.memory_space<vmem>>, vector<16x256xbf16>,
      %cst_18 = arith.constant dense<0.000000e+00> : vector<16xf32>
      %22 = vector.multi_reduction <add>, %19, %cst_18 [1] : vector<16x256xf32> to vector<16xf32>
      %23 = vector.shape_cast %22 : vector<16xf32> to vector<16x1xf32>
      %cst_19 = arith.constant 2.560000e+02 : f32
      %24 = vector.broadcast %cst_19 : f32 to vector<16x1xf32>
      %25 = arith.divf %23, %24 : vector<16x1xf32>
      %26 = vector.broadcast %25 : vector<16x1xf32> to vector<16x256xf32>
      %27 = arith.subf %19, %26 : vector<16x256xf32>
      %28 = arith.mulf %27, %27 : vector<16x256xf32>
      %cst_20 = arith.constant dense<0.000000e+00> : vector<16xf32>
      %29 = vector.multi_reduction <add>, %28, %cst_20 [1] : vector<16x256xf32> to vector<16xf32>
      %30 = vector.shape_cast %29 : vector<16xf32> to vector<16x1xf32>
      %cst_21 = arith.constant 2.560000e+02 : f32
      %31 = vector.broadcast %cst_21 : f32 to vector<16x1xf32>
      %32 = arith.divf %30, %31 : vector<16x1xf32>
      %cst_22 = arith.constant 9.99999974E-6 : f32
      %33 = vector.broadcast %cst_22 : f32 to vector<16x1xf32>
      %34 = arith.addf %32, %33 : vector<16x1xf32>
      %35 = math.rsqrt %34 : vector<16x1xf32>
      %36 = vector.broadcast %35 : vector<16x1xf32> to vector<16x256xf32>
      %37 = arith.mulf %27, %36 : vector<16x256xf32>
      %c0_23 = arith.constant 0 : index
      %c0_24 = arith.constant 0 : index
      %38 = vector.load %arg7[%c0_23, %c0_24] : memref<1x256xf32, #tpu.memory_space<vmem>>, vector<1x256xf32>
      %39 = vector.broadcast %38 : vector<1x256xf32> to vector<16x256xf32>
      %40 = arith.mulf %37, %39 : vector<16x256xf32>
      %c0_25 = arith.constant 0 : index
      %c0_26 = arith.constant 0 : index
      %41 = vector.load %arg8[%c0_25, %c0_26] : memref<1x256xf32, #tpu.memory_space<vmem>>, vector<1x256xf32>
      %42 = vector.broadcast %41 : vector<1x256xf32> to vector<16x256xf32>
      %43 = arith.addf %40, %42 : vector<16x256xf32>
      %44 = arith.truncf %43 : vector<16x256xf32> to vector<16x256xbf16>
      %c0_27 = arith.constant 0 : index
      %c0_28 = arith.constant 0 : index
      %45 = vector.load %arg10[%c0_27, %c0_28] : memref<16x256xbf16, #tpu.memory_space<vmem>>, vector<16x256xbf16>
      tpu.vector_store %arg10[%c0_27, %c0_28], %44 {strides = array<i32>} : memref<16x256xbf16, #tpu.memory_space<vmem>>, vector<16x256xbf16>,
    } else {
    }
    return
  }
  func.func @transform_0(%arg0: i32, %arg1: i32, %arg2: i32) -> (i32, i32) {
    %c0_i32 = arith.constant 0 : i32
    return %arg0, %arg2 : i32, i32
  }
  func.func @transform_1(%arg0: i32, %arg1: i32, %arg2: i32) -> (i32, i32) {
    %c0_i32 = arith.constant 0 : i32
    return %arg2, %arg1 : i32, i32
  }
  func.func @transform_2(%arg0: i32, %arg1: i32, %arg2: i32) -> (i32, i32) {
    %c0_i32 = arith.constant 0 : i32
    %c0_i32_0 = arith.constant 0 : i32
    return %c0_i32, %arg1 : i32, i32
  }
  func.func @transform_3(%arg0: i32, %arg1: i32, %arg2: i32) -> (i32, i32) {
    %c0_i32 = arith.constant 0 : i32
    return %arg0, %arg1 : i32, i32
  }
  func.func @transform_4(%arg0: i32, %arg1: i32, %arg2: i32) -> (i32, i32) {
    %c0_i32 = arith.constant 0 : i32
    %c0_i32_0 = arith.constant 0 : i32
    return %c0_i32, %arg1 : i32, i32
  }
  func.func @transform_5(%arg0: i32, %arg1: i32, %arg2: i32) -> (i32, i32) {
    %c0_i32 = arith.constant 0 : i32
    %c0_i32_0 = arith.constant 0 : i32
    return %c0_i32, %arg1 : i32, i32
  }
  func.func @transform_6(%arg0: i32, %arg1: i32, %arg2: i32) -> (i32, i32) {
    %c0_i32 = arith.constant 0 : i32
    return %arg0, %arg1 : i32, i32
  }
  func.func @transform_7(%arg0: i32, %arg1: i32, %arg2: i32) -> (i32, i32) {
    %c0_i32 = arith.constant 0 : i32
    return %arg0, %arg1 : i32, i32
  }
}

module attributes {stable_mosaic.version = 11 : i64} {
  func.func @kernel(%arg0: i32, %arg1: i32, %arg2: i32, %arg3: memref<16x256xbf16, #tpu.memory_space<vmem>>, %arg4: memref<256x256xbf16, #tpu.memory_space<vmem>>, %arg5: memref<1x256xbf16, #tpu.memory_space<vmem>>, %arg6: memref<16x256xbf16, #tpu.memory_space<vmem>>, %arg7: memref<1x256xf32, #tpu.memory_space<vmem>>, %arg8: memref<1x256xf32, #tpu.memory_space<vmem>>, %arg9: memref<16x256xbf16, #tpu.memory_space<vmem>>, %arg10: memref<16x256xbf16, #tpu.memory_space<vmem>>, %arg11: memref<16x256xf32, #tpu.memory_space<vmem>>) attributes {dimension_semantics = [#tpu.dimension_semantics<parallel>, #tpu.dimension_semantics<parallel>, #tpu.dimension_semantics<arbitrary>], iteration_bounds = array<i64: 1, 1, 1>, scalar_prefetch = 0 : i64, scratch_operands = 1 : i64, tpu.core_type = #tpu.core_type<tc>, window_params = [{transform_indices = @transform_0, window_bounds = array<i64: 16, 256>}, {transform_indices = @transform_1, window_bounds = array<i64: 256, 256>}, {transform_indices = @transform_2, window_bounds = array<i64: 1, 256>}, {transform_indices = @transform_3, window_bounds = array<i64: 16, 256>}, {transform_indices = @transform_4, window_bounds = array<i64: 1, 256>}, {transform_indices = @transform_5, window_bounds = array<i64: 1, 256>}, {transform_indices = @transform_6, window_bounds = array<i64: 16, 256>}, {transform_indices = @transform_7, window_bounds = array<i64: 16, 256>}]} {
    %c0_i32 = arith.constant 0 : i32
    %0 = arith.cmpi eq, %arg2, %c0_i32 : i32
    %1 = arith.extui %0 : i1 to i32
    %c0_i32_0 = arith.constant 0 : i32
    %2 = arith.cmpi ne, %1, %c0_i32_0 : i32
    scf.if %2 {
      %cst_10 = arith.constant 0.000000e+00 : f32
      %12 = vector.broadcast %cst_10 : f32 to vector<16x256xf32>
      %c0_11 = arith.constant 0 : index
      %c0_12 = arith.constant 0 : index
      %13 = vector.load %arg11[%c0_11, %c0_12] : memref<16x256xf32, #tpu.memory_space<vmem>>, vector<16x256xf32>
      tpu.vector_store %arg11[%c0_11, %c0_12], %12 {strides = array<i32>} : memref<16x256xf32, #tpu.memory_space<vmem>>, vector<16x256xf32>,
    } else {
    }
    %c0 = arith.constant 0 : index
    %c0_1 = arith.constant 0 : index
    %3 = vector.load %arg11[%c0, %c0_1] : memref<16x256xf32, #tpu.memory_space<vmem>>, vector<16x256xf32>
    %c0_2 = arith.constant 0 : index
    %c0_3 = arith.constant 0 : index
    %4 = vector.load %arg3[%c0_2, %c0_3] : memref<16x256xbf16, #tpu.memory_space<vmem>>, vector<16x256xbf16>
    %c0_4 = arith.constant 0 : index
    %c0_5 = arith.constant 0 : index
    %5 = vector.load %arg4[%c0_4, %c0_5] : memref<256x256xbf16, #tpu.memory_space<vmem>>, vector<256x256xbf16>
    %cst = arith.constant dense<0.000000e+00> : vector<16x256xf32>
    %6 = tpu.matmul %4, %5, %cst {dimension_numbers = #tpu.dot_dimension_numbers<[1], [0], [0], [1], [0, 0, 1, 1], [], []>} : vector<16x256xbf16>, vector<256x256xbf16>, vector<16x256xf32> -> vector<16x256xf32>
    %7 = arith.addf %3, %6 : vector<16x256xf32>
    %c0_6 = arith.constant 0 : index
    %c0_7 = arith.constant 0 : index
    %8 = vector.load %arg11[%c0_6, %c0_7] : memref<16x256xf32, #tpu.memory_space<vmem>>, vector<16x256xf32>
    tpu.vector_store %arg11[%c0_6, %c0_7], %7 {strides = array<i32>} : memref<16x256xf32, #tpu.memory_space<vmem>>, vector<16x256xf32>,
    %c0_i32_8 = arith.constant 0 : i32
    %9 = arith.cmpi eq, %arg2, %c0_i32_8 : i32
    %10 = arith.extui %9 : i1 to i32
    %c0_i32_9 = arith.constant 0 : i32
    %11 = arith.cmpi ne, %10, %c0_i32_9 : i32
    scf.if %11 {
      %c0_10 = arith.constant 0 : index
      %c0_11 = arith.constant 0 : index
      %12 = vector.load %arg11[%c0_10, %c0_11] : memref<16x256xf32, #tpu.memory_space<vmem>>, vector<16x256xf32>
      %c0_12 = arith.constant 0 : index
      %c0_13 = arith.constant 0 : index
      %13 = vector.load %arg5[%c0_12, %c0_13] : memref<1x256xbf16, #tpu.memory_space<vmem>>, vector<1x256xbf16>
      %14 = arith.extf %13 : vector<1x256xbf16> to vector<1x256xf32>
      %15 = vector.broadcast %14 : vector<1x256xf32> to vector<16x256xf32>
      %16 = arith.addf %12, %15 : vector<16x256xf32>
      %c0_14 = arith.constant 0 : index
      %c0_15 = arith.constant 0 : index
      %17 = vector.load %arg6[%c0_14, %c0_15] : memref<16x256xbf16, #tpu.memory_space<vmem>>, vector<16x256xbf16>
      %18 = arith.extf %17 : vector<16x256xbf16> to vector<16x256xf32>
      %19 = arith.addf %16, %18 : vector<16x256xf32>
      %20 = arith.truncf %19 : vector<16x256xf32> to vector<16x256xbf16>
      %c0_16 = arith.constant 0 : index
      %c0_17 = arith.constant 0 : index
      %21 = vector.load %arg9[%c0_16, %c0_17] : memref<16x256xbf16, #tpu.memory_space<vmem>>, vector<16x256xbf16>
      tpu.vector_store %arg9[%c0_16, %c0_17], %20 {strides = array<i32>} : memref<16x256xbf16, #tpu.memory_space<vmem>>, vector<16x256xbf16>,
      %cst_18 = arith.constant dense<0.000000e+00> : vector<16xf32>
      %22 = vector.multi_reduction <add>, %19, %cst_18 [1] : vector<16x256xf32> to vector<16xf32>
      %23 = vector.shape_cast %22 : vector<16xf32> to vector<16x1xf32>
      %cst_19 = arith.constant 2.560000e+02 : f32
      %24 = vector.broadcast %cst_19 : f32 to vector<16x1xf32>
      %25 = arith.divf %23, %24 : vector<16x1xf32>
      %26 = vector.broadcast %25 : vector<16x1xf32> to vector<16x256xf32>
      %27 = arith.subf %19, %26 : vector<16x256xf32>
      %28 = arith.mulf %27, %27 : vector<16x256xf32>
      %cst_20 = arith.constant dense<0.000000e+00> : vector<16xf32>
      %29 = vector.multi_reduction <add>, %28, %cst_20 [1] : vector<16x256xf32> to vector<16xf32>
      %30 = vector.shape_cast %29 : vector<16xf32> to vector<16x1xf32>
      %cst_21 = arith.constant 2.560000e+02 : f32
      %31 = vector.broadcast %cst_21 : f32 to vector<16x1xf32>
      %32 = arith.divf %30, %31 : vector<16x1xf32>
      %cst_22 = arith.constant 9.99999974E-6 : f32
      %33 = vector.broadcast %cst_22 : f32 to vector<16x1xf32>
      %34 = arith.addf %32, %33 : vector<16x1xf32>
      %35 = math.rsqrt %34 : vector<16x1xf32>
      %36 = vector.broadcast %35 : vector<16x1xf32> to vector<16x256xf32>
      %37 = arith.mulf %27, %36 : vector<16x256xf32>
      %c0_23 = arith.constant 0 : index
      %c0_24 = arith.constant 0 : index
      %38 = vector.load %arg7[%c0_23, %c0_24] : memref<1x256xf32, #tpu.memory_space<vmem>>, vector<1x256xf32>
      %39 = vector.broadcast %38 : vector<1x256xf32> to vector<16x256xf32>
      %40 = arith.mulf %37, %39 : vector<16x256xf32>
      %c0_25 = arith.constant 0 : index
      %c0_26 = arith.constant 0 : index
      %41 = vector.load %arg8[%c0_25, %c0_26] : memref<1x256xf32, #tpu.memory_space<vmem>>, vector<1x256xf32>
      %42 = vector.broadcast %41 : vector<1x256xf32> to vector<16x256xf32>
      %43 = arith.addf %40, %42 : vector<16x256xf32>
      %44 = arith.truncf %43 : vector<16x256xf32> to vector<16x256xbf16>
      %c0_27 = arith.constant 0 : index
      %c0_28 = arith.constant 0 : index
      %45 = vector.load %arg10[%c0_27, %c0_28] : memref<16x256xbf16, #tpu.memory_space<vmem>>, vector<16x256xbf16>
      tpu.vector_store %arg10[%c0_27, %c0_28], %44 {strides = array<i32>} : memref<16x256xbf16, #tpu.memory_space<vmem>>, vector<16x256xbf16>,
    } else {
    }
    return
  }
  func.func @transform_0(%arg0: i32, %arg1: i32, %arg2: i32) -> (i32, i32) {
    %c0_i32 = arith.constant 0 : i32
    return %arg0, %arg2 : i32, i32
  }
  func.func @transform_1(%arg0: i32, %arg1: i32, %arg2: i32) -> (i32, i32) {
    %c0_i32 = arith.constant 0 : i32
    return %arg2, %arg1 : i32, i32
  }
  func.func @transform_2(%arg0: i32, %arg1: i32, %arg2: i32) -> (i32, i32) {
    %c0_i32 = arith.constant 0 : i32
    %c0_i32_0 = arith.constant 0 : i32
    return %c0_i32, %arg1 : i32, i32
  }
  func.func @transform_3(%arg0: i32, %arg1: i32, %arg2: i32) -> (i32, i32) {
    %c0_i32 = arith.constant 0 : i32
    return %arg0, %arg1 : i32, i32
  }
  func.func @transform_4(%arg0: i32, %arg1: i32, %arg2: i32) -> (i32, i32) {
    %c0_i32 = arith.constant 0 : i32
    %c0_i32_0 = arith.constant 0 : i32
    return %c0_i32, %arg1 : i32, i32
  }
  func.func @transform_5(%arg0: i32, %arg1: i32, %arg2: i32) -> (i32, i32) {
    %c0_i32 = arith.constant 0 : i32
    %c0_i32_0 = arith.constant 0 : i32
    return %c0_i32, %arg1 : i32, i32
  }
  func.func @transform_6(%arg0: i32, %arg1: i32, %arg2: i32) -> (i32, i32) {
    %c0_i32 = arith.constant 0 : i32
    return %arg0, %arg1 : i32, i32
  }
  func.func @transform_7(%arg0: i32, %arg1: i32, %arg2: i32) -> (i32, i32) {
    %c0_i32 = arith.constant 0 : i32
    return %arg0, %arg1 : i32, i32
  }
}

module attributes {stable_mosaic.version = 11 : i64} {
  func.func @kernel(%arg0: i32, %arg1: i32, %arg2: i32, %arg3: memref<16x512xbf16, #tpu.memory_space<vmem>>, %arg4: memref<512x256xbf16, #tpu.memory_space<vmem>>, %arg5: memref<1x256xbf16, #tpu.memory_space<vmem>>, %arg6: memref<16x256xbf16, #tpu.memory_space<vmem>>, %arg7: memref<1x256xf32, #tpu.memory_space<vmem>>, %arg8: memref<1x256xf32, #tpu.memory_space<vmem>>, %arg9: memref<16x256xbf16, #tpu.memory_space<vmem>>, %arg10: memref<16x256xbf16, #tpu.memory_space<vmem>>, %arg11: memref<16x256xf32, #tpu.memory_space<vmem>>) attributes {dimension_semantics = [#tpu.dimension_semantics<parallel>, #tpu.dimension_semantics<parallel>, #tpu.dimension_semantics<arbitrary>], iteration_bounds = array<i64: 1, 1, 1>, scalar_prefetch = 0 : i64, scratch_operands = 1 : i64, tpu.core_type = #tpu.core_type<tc>, window_params = [{transform_indices = @transform_0, window_bounds = array<i64: 16, 512>}, {transform_indices = @transform_1, window_bounds = array<i64: 512, 256>}, {transform_indices = @transform_2, window_bounds = array<i64: 1, 256>}, {transform_indices = @transform_3, window_bounds = array<i64: 16, 256>}, {transform_indices = @transform_4, window_bounds = array<i64: 1, 256>}, {transform_indices = @transform_5, window_bounds = array<i64: 1, 256>}, {transform_indices = @transform_6, window_bounds = array<i64: 16, 256>}, {transform_indices = @transform_7, window_bounds = array<i64: 16, 256>}]} {
    %c0_i32 = arith.constant 0 : i32
    %0 = arith.cmpi eq, %arg2, %c0_i32 : i32
    %1 = arith.extui %0 : i1 to i32
    %c0_i32_0 = arith.constant 0 : i32
    %2 = arith.cmpi ne, %1, %c0_i32_0 : i32
    scf.if %2 {
      %cst_10 = arith.constant 0.000000e+00 : f32
      %12 = vector.broadcast %cst_10 : f32 to vector<16x256xf32>
      %c0_11 = arith.constant 0 : index
      %c0_12 = arith.constant 0 : index
      %13 = vector.load %arg11[%c0_11, %c0_12] : memref<16x256xf32, #tpu.memory_space<vmem>>, vector<16x256xf32>
      tpu.vector_store %arg11[%c0_11, %c0_12], %12 {strides = array<i32>} : memref<16x256xf32, #tpu.memory_space<vmem>>, vector<16x256xf32>,
    } else {
    }
    %c0 = arith.constant 0 : index
    %c0_1 = arith.constant 0 : index
    %3 = vector.load %arg11[%c0, %c0_1] : memref<16x256xf32, #tpu.memory_space<vmem>>, vector<16x256xf32>
    %c0_2 = arith.constant 0 : index
    %c0_3 = arith.constant 0 : index
    %4 = vector.load %arg3[%c0_2, %c0_3] : memref<16x512xbf16, #tpu.memory_space<vmem>>, vector<16x512xbf16>
    %c0_4 = arith.constant 0 : index
    %c0_5 = arith.constant 0 : index
    %5 = vector.load %arg4[%c0_4, %c0_5] : memref<512x256xbf16, #tpu.memory_space<vmem>>, vector<512x256xbf16>
    %cst = arith.constant dense<0.000000e+00> : vector<16x256xf32>
    %6 = tpu.matmul %4, %5, %cst {dimension_numbers = #tpu.dot_dimension_numbers<[1], [0], [0], [1], [0, 0, 1, 1], [], []>} : vector<16x512xbf16>, vector<512x256xbf16>, vector<16x256xf32> -> vector<16x256xf32>
    %7 = arith.addf %3, %6 : vector<16x256xf32>
    %c0_6 = arith.constant 0 : index
    %c0_7 = arith.constant 0 : index
    %8 = vector.load %arg11[%c0_6, %c0_7] : memref<16x256xf32, #tpu.memory_space<vmem>>, vector<16x256xf32>
    tpu.vector_store %arg11[%c0_6, %c0_7], %7 {strides = array<i32>} : memref<16x256xf32, #tpu.memory_space<vmem>>, vector<16x256xf32>,
    %c0_i32_8 = arith.constant 0 : i32
    %9 = arith.cmpi eq, %arg2, %c0_i32_8 : i32
    %10 = arith.extui %9 : i1 to i32
    %c0_i32_9 = arith.constant 0 : i32
    %11 = arith.cmpi ne, %10, %c0_i32_9 : i32
    scf.if %11 {
      %c0_10 = arith.constant 0 : index
      %c0_11 = arith.constant 0 : index
      %12 = vector.load %arg11[%c0_10, %c0_11] : memref<16x256xf32, #tpu.memory_space<vmem>>, vector<16x256xf32>
      %c0_12 = arith.constant 0 : index
      %c0_13 = arith.constant 0 : index
      %13 = vector.load %arg5[%c0_12, %c0_13] : memref<1x256xbf16, #tpu.memory_space<vmem>>, vector<1x256xbf16>
      %14 = arith.extf %13 : vector<1x256xbf16> to vector<1x256xf32>
      %15 = vector.broadcast %14 : vector<1x256xf32> to vector<16x256xf32>
      %16 = arith.addf %12, %15 : vector<16x256xf32>
      %c0_14 = arith.constant 0 : index
      %c0_15 = arith.constant 0 : index
      %17 = vector.load %arg6[%c0_14, %c0_15] : memref<16x256xbf16, #tpu.memory_space<vmem>>, vector<16x256xbf16>
      %18 = arith.extf %17 : vector<16x256xbf16> to vector<16x256xf32>
      %19 = arith.addf %16, %18 : vector<16x256xf32>
      %20 = arith.truncf %19 : vector<16x256xf32> to vector<16x256xbf16>
      %c0_16 = arith.constant 0 : index
      %c0_17 = arith.constant 0 : index
      %21 = vector.load %arg9[%c0_16, %c0_17] : memref<16x256xbf16, #tpu.memory_space<vmem>>, vector<16x256xbf16>
      tpu.vector_store %arg9[%c0_16, %c0_17], %20 {strides = array<i32>} : memref<16x256xbf16, #tpu.memory_space<vmem>>, vector<16x256xbf16>,
      %cst_18 = arith.constant dense<0.000000e+00> : vector<16xf32>
      %22 = vector.multi_reduction <add>, %19, %cst_18 [1] : vector<16x256xf32> to vector<16xf32>
      %23 = vector.shape_cast %22 : vector<16xf32> to vector<16x1xf32>
      %cst_19 = arith.constant 2.560000e+02 : f32
      %24 = vector.broadcast %cst_19 : f32 to vector<16x1xf32>
      %25 = arith.divf %23, %24 : vector<16x1xf32>
      %26 = vector.broadcast %25 : vector<16x1xf32> to vector<16x256xf32>
      %27 = arith.subf %19, %26 : vector<16x256xf32>
      %28 = arith.mulf %27, %27 : vector<16x256xf32>
      %cst_20 = arith.constant dense<0.000000e+00> : vector<16xf32>
      %29 = vector.multi_reduction <add>, %28, %cst_20 [1] : vector<16x256xf32> to vector<16xf32>
      %30 = vector.shape_cast %29 : vector<16xf32> to vector<16x1xf32>
      %cst_21 = arith.constant 2.560000e+02 : f32
      %31 = vector.broadcast %cst_21 : f32 to vector<16x1xf32>
      %32 = arith.divf %30, %31 : vector<16x1xf32>
      %cst_22 = arith.constant 9.99999974E-6 : f32
      %33 = vector.broadcast %cst_22 : f32 to vector<16x1xf32>
      %34 = arith.addf %32, %33 : vector<16x1xf32>
      %35 = math.rsqrt %34 : vector<16x1xf32>
      %36 = vector.broadcast %35 : vector<16x1xf32> to vector<16x256xf32>
      %37 = arith.mulf %27, %36 : vector<16x256xf32>
      %c0_23 = arith.constant 0 : index
      %c0_24 = arith.constant 0 : index
      %38 = vector.load %arg7[%c0_23, %c0_24] : memref<1x256xf32, #tpu.memory_space<vmem>>, vector<1x256xf32>
      %39 = vector.broadcast %38 : vector<1x256xf32> to vector<16x256xf32>
      %40 = arith.mulf %37, %39 : vector<16x256xf32>
      %c0_25 = arith.constant 0 : index
      %c0_26 = arith.constant 0 : index
      %41 = vector.load %arg8[%c0_25, %c0_26] : memref<1x256xf32, #tpu.memory_space<vmem>>, vector<1x256xf32>
      %42 = vector.broadcast %41 : vector<1x256xf32> to vector<16x256xf32>
      %43 = arith.addf %40, %42 : vector<16x256xf32>
      %44 = arith.truncf %43 : vector<16x256xf32> to vector<16x256xbf16>
      %c0_27 = arith.constant 0 : index
      %c0_28 = arith.constant 0 : index
      %45 = vector.load %arg10[%c0_27, %c0_28] : memref<16x256xbf16, #tpu.memory_space<vmem>>, vector<16x256xbf16>
      tpu.vector_store %arg10[%c0_27, %c0_28], %44 {strides = array<i32>} : memref<16x256xbf16, #tpu.memory_space<vmem>>, vector<16x256xbf16>,
    } else {
    }
    return
  }
  func.func @transform_0(%arg0: i32, %arg1: i32, %arg2: i32) -> (i32, i32) {
    %c0_i32 = arith.constant 0 : i32
    return %arg0, %arg2 : i32, i32
  }
  func.func @transform_1(%arg0: i32, %arg1: i32, %arg2: i32) -> (i32, i32) {
    %c0_i32 = arith.constant 0 : i32
    return %arg2, %arg1 : i32, i32
  }
  func.func @transform_2(%arg0: i32, %arg1: i32, %arg2: i32) -> (i32, i32) {
    %c0_i32 = arith.constant 0 : i32
    %c0_i32_0 = arith.constant 0 : i32
    return %c0_i32, %arg1 : i32, i32
  }
  func.func @transform_3(%arg0: i32, %arg1: i32, %arg2: i32) -> (i32, i32) {
    %c0_i32 = arith.constant 0 : i32
    return %arg0, %arg1 : i32, i32
  }
  func.func @transform_4(%arg0: i32, %arg1: i32, %arg2: i32) -> (i32, i32) {
    %c0_i32 = arith.constant 0 : i32
    %c0_i32_0 = arith.constant 0 : i32
    return %c0_i32, %arg1 : i32, i32
  }
  func.func @transform_5(%arg0: i32, %arg1: i32, %arg2: i32) -> (i32, i32) {
    %c0_i32 = arith.constant 0 : i32
    %c0_i32_0 = arith.constant 0 : i32
    return %c0_i32, %arg1 : i32, i32
  }
  func.func @transform_6(%arg0: i32, %arg1: i32, %arg2: i32) -> (i32, i32) {
    %c0_i32 = arith.constant 0 : i32
    return %arg0, %arg1 : i32, i32
  }
  func.func @transform_7(%arg0: i32, %arg1: i32, %arg2: i32) -> (i32, i32) {
    %c0_i32 = arith.constant 0 : i32
    return %arg0, %arg1 : i32, i32
  }
}

module attributes {stable_mosaic.version = 11 : i64} {
  func.func @kernel(%arg0: i32, %arg1: i32, %arg2: i32, %arg3: memref<16x256xbf16, #tpu.memory_space<vmem>>, %arg4: memref<256x512xbf16, #tpu.memory_space<vmem>>, %arg5: memref<16x512xf32, #tpu.memory_space<vmem>>, %arg6: memref<16x512xf32, #tpu.memory_space<vmem>>) attributes {dimension_semantics = [#tpu.dimension_semantics<parallel>, #tpu.dimension_semantics<parallel>, #tpu.dimension_semantics<arbitrary>], iteration_bounds = array<i64: 1, 1, 1>, scalar_prefetch = 0 : i64, scratch_operands = 1 : i64, tpu.core_type = #tpu.core_type<tc>, window_params = [{transform_indices = @transform_0, window_bounds = array<i64: 16, 256>}, {transform_indices = @transform_1, window_bounds = array<i64: 256, 512>}, {transform_indices = @transform_2, window_bounds = array<i64: 16, 512>}]} {
    %c0_i32 = arith.constant 0 : i32
    %0 = arith.cmpi eq, %arg2, %c0_i32 : i32
    %1 = arith.extui %0 : i1 to i32
    %c0_i32_0 = arith.constant 0 : i32
    %2 = arith.cmpi ne, %1, %c0_i32_0 : i32
    scf.if %2 {
      %cst_10 = arith.constant 0.000000e+00 : f32
      %12 = vector.broadcast %cst_10 : f32 to vector<16x512xf32>
      %c0_11 = arith.constant 0 : index
      %c0_12 = arith.constant 0 : index
      %13 = vector.load %arg6[%c0_11, %c0_12] : memref<16x512xf32, #tpu.memory_space<vmem>>, vector<16x512xf32>
      tpu.vector_store %arg6[%c0_11, %c0_12], %12 {strides = array<i32>} : memref<16x512xf32, #tpu.memory_space<vmem>>, vector<16x512xf32>,
    } else {
    }
    %c0 = arith.constant 0 : index
    %c0_1 = arith.constant 0 : index
    %3 = vector.load %arg6[%c0, %c0_1] : memref<16x512xf32, #tpu.memory_space<vmem>>, vector<16x512xf32>
    %c0_2 = arith.constant 0 : index
    %c0_3 = arith.constant 0 : index
    %4 = vector.load %arg3[%c0_2, %c0_3] : memref<16x256xbf16, #tpu.memory_space<vmem>>, vector<16x256xbf16>
    %c0_4 = arith.constant 0 : index
    %c0_5 = arith.constant 0 : index
    %5 = vector.load %arg4[%c0_4, %c0_5] : memref<256x512xbf16, #tpu.memory_space<vmem>>, vector<256x512xbf16>
    %cst = arith.constant dense<0.000000e+00> : vector<16x512xf32>
    %6 = tpu.matmul %4, %5, %cst {dimension_numbers = #tpu.dot_dimension_numbers<[1], [0], [0], [1], [0, 0, 1, 1], [], []>} : vector<16x256xbf16>, vector<256x512xbf16>, vector<16x512xf32> -> vector<16x512xf32>
    %7 = arith.addf %3, %6 : vector<16x512xf32>
    %c0_6 = arith.constant 0 : index
    %c0_7 = arith.constant 0 : index
    %8 = vector.load %arg6[%c0_6, %c0_7] : memref<16x512xf32, #tpu.memory_space<vmem>>, vector<16x512xf32>
    tpu.vector_store %arg6[%c0_6, %c0_7], %7 {strides = array<i32>} : memref<16x512xf32, #tpu.memory_space<vmem>>, vector<16x512xf32>,
    %c0_i32_8 = arith.constant 0 : i32
    %9 = arith.cmpi eq, %arg2, %c0_i32_8 : i32
    %10 = arith.extui %9 : i1 to i32
    %c0_i32_9 = arith.constant 0 : i32
    %11 = arith.cmpi ne, %10, %c0_i32_9 : i32
    scf.if %11 {
      %c0_10 = arith.constant 0 : index
      %c0_11 = arith.constant 0 : index
      %12 = vector.load %arg6[%c0_10, %c0_11] : memref<16x512xf32, #tpu.memory_space<vmem>>, vector<16x512xf32>
      %c0_12 = arith.constant 0 : index
      %c0_13 = arith.constant 0 : index
      %13 = vector.load %arg5[%c0_12, %c0_13] : memref<16x512xf32, #tpu.memory_space<vmem>>, vector<16x512xf32>
      tpu.vector_store %arg5[%c0_12, %c0_13], %12 {strides = array<i32>} : memref<16x512xf32, #tpu.memory_space<vmem>>, vector<16x512xf32>,
    } else {
    }
    return
  }
  func.func @transform_0(%arg0: i32, %arg1: i32, %arg2: i32) -> (i32, i32) {
    %c0_i32 = arith.constant 0 : i32
    return %arg0, %arg2 : i32, i32
  }
  func.func @transform_1(%arg0: i32, %arg1: i32, %arg2: i32) -> (i32, i32) {
    %c0_i32 = arith.constant 0 : i32
    return %arg2, %arg1 : i32, i32
  }
  func.func @transform_2(%arg0: i32, %arg1: i32, %arg2: i32) -> (i32, i32) {
    %c0_i32 = arith.constant 0 : i32
    return %arg0, %arg1 : i32, i32
  }
}

</mosaic_0001>

<bundles_post_ra>
// kernel: transformer_lm_forward.12
= control target key start
LH: loop header
LB: loop body
LE: loop exit
PB: predicated region body
PF: predicated region fallthrough
CT: control target
= control target key end

     0   :  { %s336_s12 = smov 0   ;;  %s366_s0 = inlined_call_operand.vmem [shape: bf16[16,256], index: 0, kind: input, shape index: {}]   ;;  %s367_s1 = inlined_call_operand.vmem [shape: f32[1,256], index: 1, kind: input, shape index: {}]   ;;  %s368_s2 = inlined_call_operand.vmem [shape: f32[1,256], index: 2, kind: input, shape index: {}]   ;;  %s369_s3 = inlined_call_operand.vmem [shape: bf16[16,256], index: 3, kind: output, shape index: {}]  }
   0x1 LB: > { %s283_s13 = sadd.s32 4294967295, %s314_s12   ;;  %p287_p0 = scmp.ge.s32.totalorder %s314_s12, 1  ;;  %s314_s12 = sphi %s336_s12, %s13_s12  }
   0x2   : > { %p137_p1 = scmp.lt.s32.totalorder %s314_s12, 3 }
   0x4   : > { %p138_p2 = pnand %p287_p0, %p137_p1 }
   0x5   : > { %p161_p3 = scmp.lt.s32.totalorder (!%p138_p2), %s283_s13, 1  ;;  %v193_v13 = vlaneseq (!%p138_p2)  ;;  %v191_v18 = vld [vmem:[%s367_s1] sm:$0x3] (!%p138_p2) }
   0x6   : > { %141 = sbr.rel (%p138_p2) target bundleno = 337 (0x151), region = 32  ;;  %v205_v19 = vld [vmem:[%s368_s2] sm:$0x3] (!%p138_p2) }
   0x7   : > { %v194_v15 = vshrl.u32 (!%p138_p2), %v193_v13, 7 }
   0x9   : > { %v195_v16 = vsub.s32 (!%p138_p2), 0, %v194_v15  ;;  %v199_v17 = vsub.s32 (!%p138_p2), 1, %v194_v15 }
   0xb   : > { %v196_v20 = vrot.slane (!%p138_p2), %v191_v18, %v195_v16  ;;  %v200_v21 = vrot.slane (!%p138_p2), %v191_v18, %v199_v17  ;;  %v210_v23 = vrot.slane (!%p138_p2), %v205_v19, %v195_v16  ;;  %v214_v24 = vrot.slane (!%p138_p2), %v205_v19, %v199_v17 }
   0xd   : > { %s371_s13 = smov (!%p161_p3, %s283_s13), 1 }
   0xe   : > { %s295_s14 = sshll.u32 %s371_s13, 3 }
   0xf   : > { %s165_s17 = scalar_lea.vmem %s366_s0, %s295_s14  ;;  %s170_s24 = scalar_lea.vmem %s369_s3, %s295_s14 }
  0x10   : > { %v171_v0 = vld [vmem:[%s165_s17] sm:$0xff] }
  0x11   : > { %v172_v1 = vunpack.c.l.bf16 %v171_v0  ;;  %v173_v2 = vunpack.c.h.bf16 %v171_v0 }
  0x13   : > { %v174_v3 = vadd.f32 %v173_v2, %v172_v1 }
  0x15   : > { %175 = vadd.xlane.f32.xlu0 %v174_v3 }
  0xa2   : > { %v176_v4 = vpop.xlane.xlu0 %175 }
  0xa3   : > { %v178_v5 = vmul.f32 0.00390625, %v176_v4 }
  0xa5   : > { %v179_v6 = vsub.f32 %v172_v1, %v178_v5  ;;  %v180_v7 = vsub.f32 %v173_v2, %v178_v5 }
  0xa7   : > { %v181_v8 = vmul.f32 %v179_v6, %v179_v6  ;;  %v182_v9 = vmul.f32 %v180_v7, %v180_v7 }
  0xa9   : > { %v183_v10 = vadd.f32 %v182_v9, %v181_v8 }
  0xab   : > { %184 = vadd.xlane.f32.xlu0 %v183_v10 }
 0x138   : > { %v185_v11 = vpop.xlane.xlu0 %184 }
 0x139   : > { %v186_v12 = vmul.f32 0.00390625, %v185_v11 }
 0x13b   : > { %v187_v14 = vadd.f32 1e-05, %v186_v12 }
 0x13d   : > { %306 = vrsqrt.f32 %v187_v14 }
 0x147   : > { %v307_v22 = vpop.eup %306 }
 0x148   : > { %v189_v25 = vmul.f32 %v307_v22, %v179_v6  ;;  %v190_v26 = vmul.f32 %v307_v22, %v180_v7 }
 0x14a   : > { %v203_v27 = vmul.f32 %v196_v20, %v189_v25  ;;  %v204_v28 = vmul.f32 %v200_v21, %v190_v26 }
 0x14c   : > { %v217_v29 = vadd.f32 %v210_v23, %v203_v27  ;;  %v218_v30 = vadd.f32 %v214_v24, %v204_v28 }
 0x14e   : > { %v297_v31 = vpack.c.bf16 %v218_v30, %v217_v29 }
 0x150   : > { %227 = vst [vmem:[%s170_s24] sm:$0xff] %v297_v31 }
 0x151 PF: > { %s13_s12 = sadd.s32 1, %s314_s12  }
 0x152   : > { %p10_p4 = scmp.ge.s32.totalorder %s13_s12, 4  }
 0x154   :  { %12 = sbr.rel (!%p10_p4) target bundleno = 1 (0x1), region = 62 }

// kernel: transformer_lm_forward.13
= control target key start
LH: loop header
LB: loop body
LE: loop exit
PB: predicated region body
PF: predicated region fallthrough
CT: control target
= control target key end

     0   :  { %s1517_s1 = inlined_call_operand.vmem [shape: bf16[256,768], index: 1, kind: input, shape index: {}]   ;;  %s1518_s0 = inlined_call_operand.vmem [shape: bf16[16,256], index: 0, kind: input, shape index: {}]   ;;  %s1519_s2 = inlined_call_operand.vmem [shape: bf16[1,768], index: 2, kind: input, shape index: {}]   ;;  %s1520_s3 = inlined_call_operand.vmem [shape: bf16[16,768], index: 3, kind: output, shape index: {}]  }
   0x1   :  { %v1025_v0 = vld [vmem:[%s1517_s1 + $0x4] ss:$24 sps:$4 sm:$0xff]   ;;  %v1027_v1 = vld [vmem:[%s1517_s1] ss:$24 sps:$4 sm:$0xff]   ;;  %v1028_v2 = vld [vmem:[%s1517_s1 + $0x34] ss:$24 sps:$4 sm:$0xff]  }
   0x2   :  { %630 = vmatprep.subr.bf16.mxu0 %v1025_v0  ;;  %v1030_v3 = vld [vmem:[%s1517_s1 + $0x30] ss:$24 sps:$4 sm:$0xff]   ;;  %v1031_v4 = vld [vmem:[%s1517_s1 + $0x64] ss:$24 sps:$4 sm:$0xff]   ;;  %v1033_v5 = vld [vmem:[%s1517_s1 + $0x60] ss:$24 sps:$4 sm:$0xff]  }
   0x3   :  { %631 = vmatpush1.bf16.msra.mxu0 %v1027_v1  ;;  %v1034_v6 = vld [vmem:[%s1517_s1 + $0x94] ss:$24 sps:$4 sm:$0xff]   ;;  %v1036_v7 = vld [vmem:[%s1517_s1 + $0x90] ss:$24 sps:$4 sm:$0xff]   ;;  %v1037_v8 = vld [vmem:[%s1517_s1 + $0xc4] ss:$24 sps:$4 sm:$0xff]  }
   0x4   :  { %632 = vmatprep.subr.bf16.mxu0 %v1028_v2  ;;  %v1039_v9 = vld [vmem:[%s1517_s1 + $0xc0] ss:$24 sps:$4 sm:$0xff]   ;;  %v1040_v10 = vld [vmem:[%s1517_s1 + $0xf4] ss:$24 sps:$4 sm:$0xff]   ;;  %v1042_v11 = vld [vmem:[%s1517_s1 + $0xf0] ss:$24 sps:$4 sm:$0xff]  }
   0x5   :  { %v1043_v12 = vld [vmem:[%s1517_s1 + $0x124] ss:$24 sps:$4 sm:$0xff]   ;;  %v1075_v14 = vld [vmem:[%s1517_s1 + $0x8] ss:$24 sps:$4 sm:$0xff]   ;;  %v1046_v17 = vld [vmem:[%s1517_s1 + $0x154] ss:$24 sps:$4 sm:$0xff]  }
   0x6   :  { %v1073_v13 = vld [vmem:[%s1517_s1 + $0xc] ss:$24 sps:$4 sm:$0xff]   ;;  %v1045_v15 = vld [vmem:[%s1517_s1 + $0x120] ss:$24 sps:$4 sm:$0xff]   ;;  %v1082_v18 = vld [vmem:[%s1517_s1 + $0x3c] ss:$24 sps:$4 sm:$0xff]  }
   0x7   :  { %633 = vmatpush1.bf16.msra.mxu0 %v1030_v3  ;;  %v1243_v16 = vld [vmem:[%s1518_s0 + $0x4] ss:$8 sps:$4 sm:$0xff]   ;;  %673 = vmatprep.subr.bf16.mxu1 %v1073_v13  ;;  %v1084_v19 = vld [vmem:[%s1517_s1 + $0x38] ss:$24 sps:$4 sm:$0xff]   ;;  %v1090_v23 = vld [vmem:[%s1517_s1 + $0x68] ss:$24 sps:$4 sm:$0xff]  }
   0x8   :  { %634 = vmatprep.subr.bf16.mxu0 %v1031_v4  ;;  %674 = vmatpush1.bf16.msra.mxu1 %v1075_v14  ;;  %v1048_v20 = vld [vmem:[%s1517_s1 + $0x150] ss:$24 sps:$4 sm:$0xff]   ;;  %v1049_v21 = vld [vmem:[%s1517_s1 + $0x184] ss:$24 sps:$4 sm:$0xff]   ;;  %v1051_v24 = vld [vmem:[%s1517_s1 + $0x180] ss:$24 sps:$4 sm:$0xff]  }
   0x9   :  { %662 = vmatprep.mubr.bf16.mxu0 %v1243_v16  ;;  %705 = vmatprep.mubr.bf16.mxu1 %v1243_v16  ;;  %v1088_v22 = vld [vmem:[%s1517_s1 + $0x6c] ss:$24 sps:$4 sm:$0xff]   ;;  %v1094_v25 = vld [vmem:[%s1517_s1 + $0x9c] ss:$24 sps:$4 sm:$0xff]   ;;  %v1096_v27 = vld [vmem:[%s1517_s1 + $0x98] ss:$24 sps:$4 sm:$0xff]  }
   0xa   :  { %675 = vmatprep.subr.bf16.mxu1 %v1082_v18  ;;  %v1052_v26 = vld [vmem:[%s1517_s1 + $0x1b4] ss:$24 sps:$4 sm:$0xff]   ;;  %v1054_v29 = vld [vmem:[%s1517_s1 + $0x1b0] ss:$24 sps:$4 sm:$0xff]   ;;  %v1055_v30 = vld [vmem:[%s1517_s1 + $0x1e4] ss:$24 sps:$4 sm:$0xff]  }
   0xb   :  { %635 = vmatpush1.bf16.msra.mxu0 %v1033_v5  ;;  %v1100_v28 = vld [vmem:[%s1517_s1 + $0xcc] ss:$24 sps:$4 sm:$0xff]   ;;  %v1102_v31 = vld [vmem:[%s1517_s1 + $0xc8] ss:$24 sps:$4 sm:$0xff]   ;;  %v1106_v32 = vld [vmem:[%s1517_s1 + $0xfc] ss:$24 sps:$4 sm:$0xff]  }
   0xc   :  { %636 = vmatprep.subr.bf16.mxu0 %v1034_v6  ;;  %676 = vmatpush1.bf16.msra.mxu1 %v1084_v19  ;;  %v1057_v33 = vld [vmem:[%s1517_s1 + $0x1e0] ss:$24 sps:$4 sm:$0xff]   ;;  %v1058_v34 = vld [vmem:[%s1517_s1 + $0x214] ss:$24 sps:$4 sm:$0xff]   ;;  %v1060_v37 = vld [vmem:[%s1517_s1 + $0x210] ss:$24 sps:$4 sm:$0xff]  }
   0xd   :  { %677 = vmatprep.subr.bf16.mxu1 %v1088_v22  ;;  %v1108_v35 = vld [vmem:[%s1517_s1 + $0xf8] ss:$24 sps:$4 sm:$0xff]   ;;  %v1112_v36 = vld [vmem:[%s1517_s1 + $0x12c] ss:$24 sps:$4 sm:$0xff]   ;;  %v1114_v39 = vld [vmem:[%s1517_s1 + $0x128] ss:$24 sps:$4 sm:$0xff]  }
   0xe   :  { %v1061_v38 = vld [vmem:[%s1517_s1 + $0x244] ss:$24 sps:$4 sm:$0xff]   ;;  %v1063_v41 = vld [vmem:[%s1517_s1 + $0x240] ss:$24 sps:$4 sm:$0xff]   ;;  %v1064_v42 = vld [vmem:[%s1517_s1 + $0x274] ss:$24 sps:$4 sm:$0xff]  }
   0xf   :  { %637 = vmatpush1.bf16.msra.mxu0 %v1036_v7  ;;  %v1118_v40 = vld [vmem:[%s1517_s1 + $0x15c] ss:$24 sps:$4 sm:$0xff]   ;;  %v1120_v43 = vld [vmem:[%s1517_s1 + $0x158] ss:$24 sps:$4 sm:$0xff]   ;;  %v1124_v44 = vld [vmem:[%s1517_s1 + $0x18c] ss:$24 sps:$4 sm:$0xff]  }
  0x10   :  { %638 = vmatprep.subr.bf16.mxu0 %v1037_v8  ;;  %678 = vmatpush1.bf16.msra.mxu1 %v1090_v23  ;;  %v1066_v45 = vld [vmem:[%s1517_s1 + $0x270] ss:$24 sps:$4 sm:$0xff]   ;;  %v1067_v46 = vld [vmem:[%s1517_s1 + $0x2a4] ss:$24 sps:$4 sm:$0xff]   ;;  %v1069_v49 = vld [vmem:[%s1517_s1 + $0x2a0] ss:$24 sps:$4 sm:$0xff]  }
  0x11   :  { %679 = vmatprep.subr.bf16.mxu1 %v1094_v25  ;;  %v1126_v47 = vld [vmem:[%s1517_s1 + $0x188] ss:$24 sps:$4 sm:$0xff]   ;;  %v1130_v48 = vld [vmem:[%s1517_s1 + $0x1bc] ss:$24 sps:$4 sm:$0xff]   ;;  %v1132_v51 = vld [vmem:[%s1517_s1 + $0x1b8] ss:$24 sps:$4 sm:$0xff]  }
  0x12   :  { %v1070_v50 = vld [vmem:[%s1517_s1 + $0x2d4] ss:$24 sps:$4 sm:$0xff]   ;;  %v1072_v53 = vld [vmem:[%s1517_s1 + $0x2d0] ss:$24 sps:$4 sm:$0xff]   ;;  %v1087_v59 = vld [vmem:[%s1517_s1 + $0x44] ss:$24 sps:$4 sm:$0xff]  }
  0x13   :  { %639 = vmatpush1.bf16.msra.mxu0 %v1039_v9  ;;  %v1136_v52 = vld [vmem:[%s1517_s1 + $0x1ec] ss:$24 sps:$4 sm:$0xff]   ;;  %v1138_v55 = vld [vmem:[%s1517_s1 + $0x1e8] ss:$24 sps:$4 sm:$0xff]   ;;  %v1142_v57 = vld [vmem:[%s1517_s1 + $0x21c] ss:$24 sps:$4 sm:$0xff]  }
  0x14   :  { %640 = vmatprep.subr.bf16.mxu0 %v1040_v10  ;;  %680 = vmatpush1.bf16.msra.mxu1 %v1096_v27  ;;  %v1081_v54 = vld [vmem:[%s1517_s1 + $0x14] ss:$24 sps:$4 sm:$0xff]   ;;  %v1367_v56 = vld [vmem:[%s1518_s0] ss:$8 sps:$4 sm:$0xff]   ;;  %v1144_v60 = vld [vmem:[%s1517_s1 + $0x218] ss:$24 sps:$4 sm:$0xff]  }
  0x15   :  { %681 = vmatprep.subr.bf16.mxu1 %v1100_v28  ;;  %v1079_v58 = vld [vmem:[%s1517_s1 + $0x10] ss:$24 sps:$4 sm:$0xff]   ;;  %v1148_v61 = vld [vmem:[%s1517_s1 + $0x24c] ss:$24 sps:$4 sm:$0xff]   ;;  %v1085_v62 = vld [vmem:[%s1517_s1 + $0x40] ss:$24 sps:$4 sm:$0xff]  }
  0x16   :  { %v1093_v63 = vld [vmem:[%s1517_s1 + $0x74] ss:$24 sps:$4 sm:$0xff]   ;;  %v1150_v0 = vld [vmem:[%s1517_s1 + $0x248] ss:$24 sps:$4 sm:$0xff]   ;;  %v1099_v3 = vld [vmem:[%s1517_s1 + $0xa4] ss:$24 sps:$4 sm:$0xff]  }
  0x17   :  { %641 = vmatpush1.bf16.msra.mxu0 %v1042_v11  ;;  %v1154_v1 = vld [vmem:[%s1517_s1 + $0x27c] ss:$24 sps:$4 sm:$0xff]   ;;  %v1091_v2 = vld [vmem:[%s1517_s1 + $0x70] ss:$24 sps:$4 sm:$0xff]   ;;  %v1160_v5 = vld [vmem:[%s1517_s1 + $0x2ac] ss:$24 sps:$4 sm:$0xff]  }
  0x18   :  { %642 = vmatprep.subr.bf16.mxu0 %v1043_v12  ;;  %682 = vmatpush1.bf16.msra.mxu1 %v1102_v31  ;;  %v1156_v4 = vld [vmem:[%s1517_s1 + $0x278] ss:$24 sps:$4 sm:$0xff]   ;;  %v1105_v7 = vld [vmem:[%s1517_s1 + $0xd4] ss:$24 sps:$4 sm:$0xff]   ;;  %v1162_v8 = vld [vmem:[%s1517_s1 + $0x2a8] ss:$24 sps:$4 sm:$0xff]  }
  0x19   :  { %683 = vmatprep.subr.bf16.mxu1 %v1106_v32  ;;  %v1097_v6 = vld [vmem:[%s1517_s1 + $0xa0] ss:$24 sps:$4 sm:$0xff]   ;;  %v1166_v9 = vld [vmem:[%s1517_s1 + $0x2dc] ss:$24 sps:$4 sm:$0xff]   ;;  %v1103_v10 = vld [vmem:[%s1517_s1 + $0xd0] ss:$24 sps:$4 sm:$0xff]  }
  0x1a   :  { %v1111_v11 = vld [vmem:[%s1517_s1 + $0x104] ss:$24 sps:$4 sm:$0xff]   ;;  %v1168_v12 = vld [vmem:[%s1517_s1 + $0x2d8] ss:$24 sps:$4 sm:$0xff]   ;;  %v1117_v14 = vld [vmem:[%s1517_s1 + $0x134] ss:$24 sps:$4 sm:$0xff]  }
  0x1b   :  { %643 = vmatpush1.bf16.msra.mxu0 %v1045_v15  ;;  %v1109_v13 = vld [vmem:[%s1517_s1 + $0x100] ss:$24 sps:$4 sm:$0xff]   ;;  %v1115_v15 = vld [vmem:[%s1517_s1 + $0x130] ss:$24 sps:$4 sm:$0xff]   ;;  %v1129_v18 = vld [vmem:[%s1517_s1 + $0x194] ss:$24 sps:$4 sm:$0xff]  }
  0x1c   :  { %644 = vmatprep.subr.bf16.mxu0 %v1046_v17  ;;  %684 = vmatpush1.bf16.msra.mxu1 %v1108_v35  ;;  %v1121_v17 = vld [vmem:[%s1517_s1 + $0x160] ss:$24 sps:$4 sm:$0xff]   ;;  %v1127_v19 = vld [vmem:[%s1517_s1 + $0x190] ss:$24 sps:$4 sm:$0xff]   ;;  %v1141_v22 = vld [vmem:[%s1517_s1 + $0x1f4] ss:$24 sps:$4 sm:$0xff]  }
  0x1d   :  { %685 = vmatprep.subr.bf16.mxu1 %v1112_v36  ;;  %v1139_v23 = vld [vmem:[%s1517_s1 + $0x1f0] ss:$24 sps:$4 sm:$0xff]   ;;  %v1145_v25 = vld [vmem:[%s1517_s1 + $0x220] ss:$24 sps:$4 sm:$0xff]   ;;  %v1159_v28 = vld [vmem:[%s1517_s1 + $0x284] ss:$24 sps:$4 sm:$0xff]  }
  0x1e   :  { %v1151_v27 = vld [vmem:[%s1517_s1 + $0x250] ss:$24 sps:$4 sm:$0xff]   ;;  %v1171_v32 = vld [vmem:[%s1517_s1 + $0x2e4] ss:$24 sps:$4 sm:$0xff]  }
  0x1f   :  { %645 = vmatpush1.bf16.msra.mxu0 %v1048_v20  ;;  %v1135_v20 = vld [vmem:[%s1517_s1 + $0x1c4] ss:$24 sps:$4 sm:$0xff]   ;;  %v1163_v31 = vld [vmem:[%s1517_s1 + $0x2b0] ss:$24 sps:$4 sm:$0xff]  }
  0x20   :  { %646 = vmatprep.subr.bf16.mxu0 %v1049_v21  ;;  %686 = vmatpush1.bf16.msra.mxu1 %v1114_v39  ;;  %v1133_v21 = vld [vmem:[%s1517_s1 + $0x1c0] ss:$24 sps:$4 sm:$0xff]  }
  0x21   :  { %687 = vmatprep.subr.bf16.mxu1 %v1118_v40  ;;  %v798_v36 = vld [vmem:[%s1519_s2] sm:$0x3f] }
  0x22   :  { %v799_v40 = vunpack.c.l.bf16 %v798_v36 }
  0x23   :  { %647 = vmatpush1.bf16.msra.mxu0 %v1051_v24  ;;  %v1147_v24 = vld [vmem:[%s1517_s1 + $0x224] ss:$24 sps:$4 sm:$0xff]  }
  0x24   :  { %648 = vmatprep.subr.bf16.mxu0 %v1052_v26  ;;  %688 = vmatpush1.bf16.msra.mxu1 %v1120_v43  ;;  %v1153_v26 = vld [vmem:[%s1517_s1 + $0x254] ss:$24 sps:$4 sm:$0xff]  }
  0x25   :  { %689 = vmatprep.subr.bf16.mxu1 %v1124_v44 }
  0x27   :  { %649 = vmatpush1.bf16.msra.mxu0 %v1054_v29  ;;  %v1157_v29 = vld [vmem:[%s1517_s1 + $0x280] ss:$24 sps:$4 sm:$0xff]  }
  0x28   :  { %650 = vmatprep.subr.bf16.mxu0 %v1055_v30  ;;  %690 = vmatpush1.bf16.msra.mxu1 %v1126_v47  ;;  %v1165_v30 = vld [vmem:[%s1517_s1 + $0x2b4] ss:$24 sps:$4 sm:$0xff]  }
  0x29   :  { %691 = vmatprep.subr.bf16.mxu1 %v1130_v48 }
  0x2b   :  { %651 = vmatpush1.bf16.msra.mxu0 %v1057_v33  ;;  %v1169_v33 = vld [vmem:[%s1517_s1 + $0x2e0] ss:$24 sps:$4 sm:$0xff]  }
  0x2c   :  { %652 = vmatprep.subr.bf16.mxu0 %v1058_v34  ;;  %692 = vmatpush1.bf16.msra.mxu1 %v1132_v51  ;;  %v803_v34 = vlaneseq }
  0x2d   :  { %693 = vmatprep.subr.bf16.mxu1 %v1136_v52 }
  0x2e   :  { %v804_v35 = vshrl.u32 %v803_v34, 7 }
  0x2f   :  { %653 = vmatpush1.bf16.msra.mxu0 %v1060_v37  ;;  %v800_v37 = vunpack.c.h.bf16 %v798_v36 }
  0x30   :  { %654 = vmatprep.subr.bf16.mxu0 %v1061_v38  ;;  %694 = vmatpush1.bf16.msra.mxu1 %v1138_v55  ;;  %v809_v38 = vsub.s32 2, %v804_v35 }
  0x31   :  { %695 = vmatprep.subr.bf16.mxu1 %v1142_v57  ;;  %v817_v57 = vsub.s32 6, %v804_v35 }
  0x32   :  { %v826_v39 = vrot.slane %v800_v37, %v809_v38  ;;  %v810_v43 = vrot.slane %v799_v40, %v809_v38 }
  0x33   :  { %655 = vmatpush1.bf16.msra.mxu0 %v1063_v41  ;;  %v805_v41 = vsub.s32 0, %v804_v35 }
  0x34   :  { %656 = vmatprep.subr.bf16.mxu0 %v1064_v42  ;;  %696 = vmatpush1.bf16.msra.mxu1 %v1144_v60 }
  0x35   :  { %697 = vmatprep.subr.bf16.mxu1 %v1148_v61  ;;  %v806_v42 = vrot.slane %v799_v40, %v805_v41 }
  0x37   :  { %657 = vmatpush1.bf16.msra.mxu0 %v1066_v45  ;;  %v836_v44 = vrot.slane %v806_v42, %v805_v41  ;;  %v840_v45 = vrot.slane %v810_v43, %v805_v41 }
  0x38   :  { %658 = vmatprep.subr.bf16.mxu0 %v1067_v46  ;;  %698 = vmatpush1.bf16.msra.mxu1 %v1150_v0 }
  0x39   :  { %699 = vmatprep.subr.bf16.mxu1 %v1154_v1 }
  0x3b   :  { %659 = vmatpush1.bf16.msra.mxu0 %v1069_v49 }
  0x3c   :  { %660 = vmatprep.subr.bf16.mxu0 %v1070_v50  ;;  %700 = vmatpush1.bf16.msra.mxu1 %v1156_v4 }
  0x3d   :  { %701 = vmatprep.subr.bf16.mxu1 %v1160_v5 }
  0x3f   :  { %661 = vmatpush1.bf16.msra.mxu0 %v1072_v53 }
  0x40   :  { %716 = vmatprep.subr.bf16.mxu0 %v1081_v54  ;;  %702 = vmatpush1.bf16.msra.mxu1 %v1162_v8  ;;  %v822_v8 = vrot.slane %v800_v37, %v805_v41 }
  0x41   :  { %703 = vmatprep.subr.bf16.mxu1 %v1166_v9 }
  0x42   :  { %663 = vmatmul.mubr.bf16.vlgmr.msra.gmra.mrb[0].mxu0 %v1367_v56  ;;  %v852_v9 = vrot.slane %v822_v8, %v805_v41 }
  0x43   :  { %717 = vmatpush1.bf16.msra.mxu0 %v1079_v58  ;;  %748 = vmatprep.mubr.bf16.mxu0 %v1243_v16  ;;  %v1123_v16 = vld [vmem:[%s1517_s1 + $0x164] ss:$24 sps:$4 sm:$0xff]  }
  0x44   :  { %718 = vmatprep.subr.bf16.mxu0 %v1087_v59  ;;  %704 = vmatpush1.bf16.msra.mxu1 %v1168_v12  ;;  %v818_v59 = vrot.slane %v799_v40, %v817_v57 }
  0x46   :  { %v848_v61 = vrot.slane %v818_v59, %v805_v41 }
  0x47   :  { %719 = vmatpush1.bf16.msra.mxu0 %v1085_v62  ;;  %706 = vmatmul.mubr.bf16.vlgmr.msra.gmra.mrb[0].mxu1 %v1367_v56 }
  0x48   :  { %720 = vmatprep.subr.bf16.mxu0 %v1093_v63 }
  0x4b   :  { %721 = vmatpush1.bf16.msra.mxu0 %v1091_v2 }
  0x4c   :  { %722 = vmatprep.subr.bf16.mxu0 %v1099_v3 }
  0x4f   :  { %723 = vmatpush1.bf16.msra.mxu0 %v1097_v6 }
  0x50   :  { %724 = vmatprep.subr.bf16.mxu0 %v1105_v7 }
  0x53   :  { %725 = vmatpush1.bf16.msra.mxu0 %v1103_v10  ;;  %v856_v10 = vrot.slane %v826_v39, %v805_v41 }
  0x54   :  { %726 = vmatprep.subr.bf16.mxu0 %v1111_v11 }
  0x57   :  { %727 = vmatpush1.bf16.msra.mxu0 %v1109_v13 }
  0x58   :  { %728 = vmatprep.subr.bf16.mxu0 %v1117_v14 }
  0x5b   :  { %729 = vmatpush1.bf16.msra.mxu0 %v1115_v15 }
  0x5c   :  { %730 = vmatprep.subr.bf16.mxu0 %v1123_v16 }
  0x5f   :  { %731 = vmatpush1.bf16.msra.mxu0 %v1121_v17 }
  0x60   :  { %732 = vmatprep.subr.bf16.mxu0 %v1129_v18 }
  0x63   :  { %733 = vmatpush1.bf16.msra.mxu0 %v1127_v19 }
  0x64   :  { %734 = vmatprep.subr.bf16.mxu0 %v1135_v20 }
  0x67   :  { %735 = vmatpush1.bf16.msra.mxu0 %v1133_v21 }
  0x68   :  { %736 = vmatprep.subr.bf16.mxu0 %v1141_v22 }
  0x6b   :  { %737 = vmatpush1.bf16.msra.mxu0 %v1139_v23 }
  0x6c   :  { %738 = vmatprep.subr.bf16.mxu0 %v1147_v24 }
  0x6f   :  { %739 = vmatpush1.bf16.msra.mxu0 %v1145_v25 }
  0x70   :  { %740 = vmatprep.subr.bf16.mxu0 %v1153_v26 }
  0x73   :  { %741 = vmatpush1.bf16.msra.mxu0 %v1151_v27 }
  0x74   :  { %742 = vmatprep.subr.bf16.mxu0 %v1159_v28 }
  0x77   :  { %743 = vmatpush1.bf16.msra.mxu0 %v1157_v29 }
  0x78   :  { %744 = vmatprep.subr.bf16.mxu0 %v1165_v30 }
  0x7b   :  { %745 = vmatpush1.bf16.msra.mxu0 %v1163_v31 }
  0x7c   :  { %746 = vmatprep.subr.bf16.mxu0 %v1171_v32 }
  0x7f   :  { %747 = vmatpush1.bf16.msra.mxu0 %v1169_v33 }
  0x82   :  { %749 = vmatmul.mubr.bf16.vlgmr.msra.gmra.mrb[4].mxu0 %v1367_v56  ;;  %v813_v56 = vsub.s32 4, %v804_v35 }
  0x84   :  { %v814_v58 = vrot.slane %v799_v40, %v813_v56 }
  0x86   :  { %v844_v60 = vrot.slane %v814_v58, %v805_v41 }
 0x115   :  { %v664_v46 = vpop.f32.mrb[0].mxu0 }
 0x116   :  { %v857_v47 = vadd.f32 %v836_v44, %v664_v46  ;;  %v666_v48 = vpop.f32.mrb[1].mxu0 }
 0x117   :  { %v858_v49 = vadd.f32 %v840_v45, %v666_v48  ;;  %v668_v50 = vpop.f32.mrb[2].mxu0 }
 0x118   :  { %v863_v51 = vadd.f32 %v836_v44, %v668_v50  ;;  %v670_v52 = vpop.f32.mrb[3].mxu0 }
 0x119   :  { %v1019_v53 = vpack.c.bf16 %v858_v49, %v857_v47  ;;  %v864_v54 = vadd.f32 %v840_v45, %v670_v52 }
 0x11a   :  { %v707_v62 = vpop.f32.mrb[0].mxu1 }
 0x11b   :  { %905 = vst [vmem:[%s1520_s3] sm:$0xff] %v1019_v53  ;;  %v1022_v55 = vpack.c.bf16 %v864_v54, %v863_v51  ;;  %v859_v63 = vadd.f32 %v844_v60, %v707_v62  ;;  %v709_v0 = vpop.f32.mrb[1].mxu1 }
 0x11c   :  { %v860_v1 = vadd.f32 %v848_v61, %v709_v0  ;;  %v711_v2 = vpop.f32.mrb[2].mxu1 }
 0x11d   :  { %908 = vst [vmem:[%s1520_s3 + $0x18] sm:$0xff] %v1022_v55  ;;  %v865_v3 = vadd.f32 %v844_v60, %v711_v2  ;;  %v713_v4 = vpop.f32.mrb[3].mxu1 }
 0x11e   :  { %v1020_v5 = vpack.c.bf16 %v860_v1, %v859_v63  ;;  %v866_v6 = vadd.f32 %v848_v61, %v713_v4 }
 0x120   :  { %906 = vst [vmem:[%s1520_s3 + $0x8] sm:$0xff] %v1020_v5  ;;  %v1023_v7 = vpack.c.bf16 %v866_v6, %v865_v3 }
 0x122   :  { %909 = vst [vmem:[%s1520_s3 + $0x20] sm:$0xff] %v1023_v7 }
 0x155   :  { %v750_v11 = vpop.f32.mrb[4].mxu0 }
 0x156   :  { %v861_v12 = vadd.f32 %v852_v9, %v750_v11  ;;  %v752_v13 = vpop.f32.mrb[5].mxu0 }
 0x157   :  { %v862_v14 = vadd.f32 %v856_v10, %v752_v13  ;;  %v754_v15 = vpop.f32.mrb[6].mxu0 }
 0x158   :  { %v867_v16 = vadd.f32 %v852_v9, %v754_v15  ;;  %v756_v17 = vpop.f32.mrb[7].mxu0 }
 0x159   :  { %v1021_v18 = vpack.c.bf16 %v862_v14, %v861_v12  ;;  %v868_v19 = vadd.f32 %v856_v10, %v756_v17 }
 0x15b   :  { %907 = vst [vmem:[%s1520_s3 + $0x10] sm:$0xff] %v1021_v18  ;;  %v1024_v20 = vpack.c.bf16 %v868_v19, %v867_v16 }
 0x15d   :  { %910 = vst [vmem:[%s1520_s3 + $0x28] sm:$0xff] %v1024_v20 }

// kernel: transformer_lm_forward.14
= control target key start
LH: loop header
LB: loop body
LE: loop exit
PB: predicated region body
PF: predicated region fallthrough
CT: control target
= control target key end

     0   :  { %s765_s12 = smov 0   ;;  %s767_s13 = smov 0   ;;  %s846_s0 = inlined_call_operand.vmem [shape: bf16[16,768], index: 0, kind: input, shape index: {}, may-alias: {0,1,2}]   ;;  %s847_s1 = inlined_call_operand.vmem [shape: bf16[16,768], index: 1, kind: input, shape index: {}, may-alias: {0,1,2}]   ;;  %s848_s2 = inlined_call_operand.vmem [shape: bf16[16,768], index: 2, kind: input, shape index: {}, may-alias: {0,1,2}]   ;;  %s849_s3 = inlined_call_operand.vmem [shape: bf16[16,256], index: 3, kind: output, shape index: {}]  }
   0x1   :  { %s769_s14 = smov 0   ;;  %s771_s15 = smov 0  }
   0x2   :  { %s773_s16 = smov 0  }
   0x3 LB: > { %s35_s17 = sadd.s32 1, %s731_s14  ;;  %s39_s18 = sadd.s32 1, %s735_s15  ;;  %s739_s16 = sphi %s773_s16, %s13_s16   ;;  %s735_s15 = sphi %s771_s15, %s853_s15   ;;  %s731_s14 = sphi %s769_s14, %s852_s14   ;;  %s727_s13 = sphi %s767_s13, %s851_s13   ;;  %s723_s12 = sphi %s765_s12, %s850_s12  }
   0x4   : > { %p37_p0 = scmp.ge.s32.totalorder %s35_s17, 2  ;;  %p623_p1 = scmp.ge.s32.totalorder %s739_s16, 1 }
   0x5   : > { %p222_p2 = scmp.lt.s32.totalorder %s739_s16, 5 }
   0x6   : > { %s855_s17 = smov (%p37_p0, %s35_s17), 0  ;;  %s857_s18 = smov (!%p37_p0, %s39_s18), %s735_s15 }
   0x7   : > { %p223_p3 = pnand %p623_p1, %p222_p2  ;;  %p41_p4 = scmp.ge.s32.totalorder %s857_s18, 2 }
   0x8   : > { %p275_p5 = scmp.lt.s32.totalorder (!%p223_p3), %s727_s13, 1  ;;  %s285_s19 = sadd.s32 (!%p223_p3), 2, %s723_s12  ;;  %v741_v0 = vmov (!%p223_p3), 0.0   ;;  %vm742_vm0 = vmmov (!%p223_p3), 0   ;;  %vm325_vm1 = vcmask (!%p223_p3), 7168   ;;  %v379_v7 = vlaneseq (!%p223_p3) }
   0x9   : > { %s859_s18 = smov (%p41_p4, %s857_s18), 0  ;;  %226 = sbr.rel (%p223_p3) target bundleno = 828 (0x33c), region = 32 }
   0xa   : > { %636 = vmatprep.subr.bf16.mxu0 (!%p223_p3), %v741_v0  ;;  %p288_p6 = scmp.lt.s32.totalorder (!%p223_p3), %s285_s19, 5  ;;  %638 = vmatprep.mubr.msk.bf16.mxu0 (!%p223_p3), %vm742_vm0, %v741_v0  ;;  %p277_p7 = scmp.lt.s32.totalorder (!%p223_p3), %s723_s12, 5  ;;  %v743_v6 = vmov (!%p223_p3), -1e+30   ;;  %327 = vst.msk [vmem:[#allocation3] sm:$0xff] (!%p223_p3), %vm325_vm1, %v741_v0  ;;  %v380_v8 = vshrl.u32 (!%p223_p3), %v379_v7, 7 }
   0xb   : > { %642 = vmatprep.subr.bf16.mxu1 (!%p223_p3), %v741_v0  ;;  %644 = vmatprep.mubr.msk.bf16.mxu1 (!%p223_p3), %vm742_vm0, %v741_v0  ;;  %326 = vst.msk [vmem:[#allocation2] sm:$0xff] (!%p223_p3), %vm325_vm1, %v743_v6  ;;  %v384_v9 = vand.u32 (!%p223_p3), 127, %v379_v7  ;;  %vm390_vm3 = vcmask (!%p223_p3), 64512   ;;  %v744_v16 = vmov (!%p223_p3), 0   ;;  %s297_s5 = sadd.s32 (!%p223_p3), 4, %s723_s12  ;;  %vm426_vm4 = vcmask (!%p223_p3), 1043456  }
   0xc   : > { %693 = vset.pattern.permute.xlu0 (!%p223_p3), %v744_v16  ;;  %694 = vset.pattern.permute.xlu1 (!%p223_p3), %v744_v16  ;;  %p300_p8 = scmp.lt.s32.totalorder (!%p223_p3), %s297_s5, 5  ;;  %p311_p9 = scmp.lt.s32.totalorder (!%p223_p3), %s723_s12, 1 }
   0xd   : > { %vm387_vm2 = vcmp.gt.s32.totalorder (!%p223_p3), %v384_v9, %v380_v8 }
  0x10   : > { %s861_s13 = smov (!%p275_p5, %s727_s13), 1  ;;  %s863_s19 = smov (!%p288_p6, %s285_s19), 5 }
  0x11   : > { %s802_s20 = smul.u32 6, %s861_s13  ;;  %s865_s5 = smov (!%p300_p8, %s297_s5), 5  ;;  %v406_v31 = vld [vmem:[#allocation3] sm:$0xff] }
  0x12   : > { %s278_s21 = scalar_select %p277_p7, %s723_s12, 5  ;;  %v389_v17 = vld [vmem:[#allocation2] sm:$0xff] }
  0x13   : > { %s291_s22 = sadd.s32 %s802_s20, %s863_s19  ;;  %s303_s6 = sadd.s32 %s802_s20, %s865_s5 }
  0x14   : > { %s625_s23 = sshll.u32 %s291_s22, 2  ;;  %s280_s24 = sadd.s32 %s802_s20, %s278_s21 }
  0x15   : > { %s293_s27 = scalar_lea.vmem %s847_s1, %s625_s23  ;;  %s624_s28 = sshll.u32 %s280_s24, 2 }
  0x16   : > { %v338_v1 = vld [vmem:[%s293_s27] sm:$0xf]  ;;  %s282_s4 = scalar_lea.vmem %s846_s0, %s624_s28  ;;  %s626_s7 = sshll.u32 %s303_s6, 2 }
  0x17   : > { %637 = vmatpush3.bf16.xpose.msra.mxu0 %v338_v1  ;;  %v334_v2 = vld [vmem:[%s282_s4] sm:$0xf]  ;;  %s305_s10 = scalar_lea.vmem %s848_s2, %s626_s7  ;;  %s867_s12 = smov (!%p311_p9, %s723_s12), 1 }
  0x18   : > { %v335_v3 = vunpack.c.l.bf16 %v334_v2  ;;  %v422_v21 = vld [vmem:[%s305_s10] sm:$0xf]  ;;  %s627_s11 = sshll.u32 %s861_s13, 1 }
  0x19   : > { %v428_v22 = vsel %vm426_vm4, %v422_v21, 0  ;;  %s314_s19 = sadd.s32 %s627_s11, %s867_s12 }
  0x1a   : > { %v336_v4 = vmul.f32 0.088388346, %v335_v3  ;;  %643 = vmatpush3.bf16.msra.mxu1 %v428_v22  ;;  %s628_s20 = sshll.u32 %s314_s19, 2 }
  0x1b   : > { %s316_s23 = scalar_lea.vmem %s849_s3, %s628_s20 }
  0x1c   : > { %v337_v5 = vpack.c.bf16 %v336_v4, %v336_v4 }
  0x1e   : > { %639 = vmatmul.mubr.bf16.vlgmr.msra.gmra.mrb[0].mxu0 %v337_v5 }
  0xf1   : > { %v373_v10 = vpop.f32.mrb[0].mxu0 }
  0xf2   : > { %v388_v11 = vsel %vm387_vm2, -1e+30, %v373_v10  ;;  %v640_v12 = vpop.f32.mrb[1].mxu0 }
  0xf3   : > { %v376_v13 = vpop.f32.mrb[2].mxu0  ;;  %v391_v14 = vsel %vm390_vm3, %v388_v11, -inf }
  0xf4   : > { %392 = vmax.xlane.f32.xlu0 %v391_v14  ;;  %v641_v15 = vpop.f32.mrb[3].mxu0 }
 0x181   : > { %v393_v18 = vpop.xlane.xlu0 %392 }
 0x182   : > { %v394_v19 = vmax.f32 %v389_v17, %v393_v18 }
 0x184   : > { %v395_v20 = vsub.f32 %v389_v17, %v394_v19  ;;  %472 = vst.msk [vmem:[#allocation2] sm:$0xff] %vm325_vm1, %v394_v19  ;;  %400 = vperm.xlu0 %693, %v394_v19  }
 0x186   : > { %v396_v29 = vmul.f32 1.442695, %v395_v20 }
 0x203   : > { %v401_v23 = vpop.permute.xlu0 %400 }
 0x204   : > { %v403_v24 = vsub.f32 %v388_v11, %v401_v23 }
 0x206   : > { %v404_v25 = vmul.f32 1.442695, %v403_v24 }
 0x208   : > { %695 = vpow2.f32 %v404_v25 }
 0x209   : > { %697 = vpow2.f32 %v396_v29 }
 0x212   : > { %v696_v26 = vpop.eup %695 }
 0x213   : > { %v408_v27 = vsel %vm390_vm3, %v696_v26, 0.0  ;;  %v421_v28 = vpack.c.bf16 %v696_v26, %v696_v26  ;;  %v698_v30 = vpop.eup %697 }
 0x214   : > { %409 = vadd.xlane.f32.xlu1 %v408_v27  ;;  %v407_v32 = vmul.f32 %v698_v30, %v406_v31 }
 0x215   : > { %645 = vmatmul.mubr.msk.bf16.vlgmr.msra.gmra.mrb[0].mxu1 %vm390_vm3, %v421_v28 }
 0x225   : > { %417 = vperm.xlu1 %694, %v698_v30  }
 0x2a1   : > { %v410_v33 = vpop.xlane.xlu1 %409 }
 0x2a2   : > { %v411_v34 = vadd.f32 %v410_v33, %v407_v32 }
 0x2a4   : > { %413 = vst.msk [vmem:[#allocation3] sm:$0xff] %vm325_vm1, %v411_v34 }
 0x2a5   : > { %v418_v41 = vpop.permute.xlu1 %417 }
 0x2a6   : > { %v420_v42 = vmul.f32 0.0, %v418_v41 }
 0x2ab   : > { %v477_v35 = vld [vmem:[#allocation3] sm:$0xff] }
 0x2ac   : > { %699 = vrcp.f32 %v477_v35 }
 0x2b6   : > { %v700_v36 = vpop.eup %699 }
 0x2b7   : > { %481 = vperm.xlu1 %694, %v700_v36  }
 0x2e8   : > { %v464_v37 = vpop.f32.mrb[0].mxu1 }
 0x2e9   : > { %v646_v38 = vpop.f32.mrb[1].mxu1  ;;  %v470_v43 = vadd.f32 %v464_v37, %v420_v42 }
 0x2ea   : > { %v467_v39 = vpop.f32.mrb[2].mxu1 }
 0x2eb   : > { %v647_v40 = vpop.f32.mrb[3].mxu1 }
 0x336   : > { %v482_v44 = vpop.permute.xlu1 %481 }
 0x337   : > { %v484_v45 = vmul.f32 %v482_v44, %v470_v43 }
 0x339   : > { %v485_v46 = vpack.c.bf16 %v484_v45, %v484_v45 }
 0x33b   : > { %486 = vst [vmem:[%s316_s23] sm:$0xf] %v485_v46 }
 0x33c PF: > { %s13_s16 = sadd.s32 1, %s739_s16   ;;  %s850_s12 = smov %s731_s14 }
 0x33d   : > { %p10_p10 = scmp.ge.s32.totalorder %s13_s16, 6   ;;  %s851_s13 = smov %s735_s15 }
 0x33e   : > { %s852_s14 = smov %s855_s17  ;;  %s853_s15 = smov %s859_s18 }
 0x33f   :  { %12 = sbr.rel (!%p10_p10) target bundleno = 3 (0x3), region = 80 }

// kernel: transformer_lm_forward.16
= control target key start
LH: loop header
LB: loop body
LE: loop exit
PB: predicated region body
PF: predicated region fallthrough
CT: control target
= control target key end

     0   :  { %s1172_s1 = inlined_call_operand.vmem [shape: bf16[256,512], index: 1, kind: input, shape index: {}]   ;;  %s1173_s0 = inlined_call_operand.vmem [shape: bf16[16,256], index: 0, kind: input, shape index: {}]   ;;  %s1174_s2 = inlined_call_operand.vmem [shape: bf16[1,512], index: 2, kind: input, shape index: {}]   ;;  %s1175_s3 = inlined_call_operand.vmem [shape: bf16[16,512], index: 3, kind: output, shape index: {}]  }
   0x1   :  { %v768_v0 = vld [vmem:[%s1172_s1 + $0x4] ss:$16 sps:$4 sm:$0xff]   ;;  %v770_v1 = vld [vmem:[%s1172_s1 + $0xc] ss:$16 sps:$4 sm:$0xff]   ;;  %v772_v2 = vld [vmem:[%s1172_s1] ss:$16 sps:$4 sm:$0xff]  }
   0x2   :  { %430 = vmatprep.subr.bf16.mxu0 %v768_v0  ;;  %v773_v3 = vld [vmem:[%s1172_s1 + $0x8] ss:$16 sps:$4 sm:$0xff]   ;;  %473 = vmatprep.subr.bf16.mxu1 %v770_v1  ;;  %v774_v4 = vld [vmem:[%s1172_s1 + $0x24] ss:$16 sps:$4 sm:$0xff]   ;;  %v776_v5 = vld [vmem:[%s1172_s1 + $0x2c] ss:$16 sps:$4 sm:$0xff]  }
   0x3   :  { %431 = vmatpush1.bf16.msra.mxu0 %v772_v2  ;;  %474 = vmatpush1.bf16.msra.mxu1 %v773_v3  ;;  %v778_v6 = vld [vmem:[%s1172_s1 + $0x20] ss:$16 sps:$4 sm:$0xff]   ;;  %v779_v7 = vld [vmem:[%s1172_s1 + $0x28] ss:$16 sps:$4 sm:$0xff]   ;;  %v780_v8 = vld [vmem:[%s1172_s1 + $0x44] ss:$16 sps:$4 sm:$0xff]   ;;  %v546_v2 = vlaneseq }
   0x4   :  { %432 = vmatprep.subr.bf16.mxu0 %v774_v4  ;;  %475 = vmatprep.subr.bf16.mxu1 %v776_v5  ;;  %v782_v9 = vld [vmem:[%s1172_s1 + $0x4c] ss:$16 sps:$4 sm:$0xff]   ;;  %v784_v10 = vld [vmem:[%s1172_s1 + $0x40] ss:$16 sps:$4 sm:$0xff]   ;;  %v785_v11 = vld [vmem:[%s1172_s1 + $0x48] ss:$16 sps:$4 sm:$0xff]  }
   0x5   :  { %v786_v12 = vld [vmem:[%s1172_s1 + $0x64] ss:$16 sps:$4 sm:$0xff]   ;;  %v788_v13 = vld [vmem:[%s1172_s1 + $0x6c] ss:$16 sps:$4 sm:$0xff]   ;;  %v790_v14 = vld [vmem:[%s1172_s1 + $0x60] ss:$16 sps:$4 sm:$0xff]  }
   0x6   :  { %v791_v15 = vld [vmem:[%s1172_s1 + $0x68] ss:$16 sps:$4 sm:$0xff]   ;;  %v792_v16 = vld [vmem:[%s1172_s1 + $0x84] ss:$16 sps:$4 sm:$0xff]   ;;  %v794_v17 = vld [vmem:[%s1172_s1 + $0x8c] ss:$16 sps:$4 sm:$0xff]  }
   0x7   :  { %433 = vmatpush1.bf16.msra.mxu0 %v778_v6  ;;  %476 = vmatpush1.bf16.msra.mxu1 %v779_v7  ;;  %v796_v18 = vld [vmem:[%s1172_s1 + $0x80] ss:$16 sps:$4 sm:$0xff]   ;;  %v797_v19 = vld [vmem:[%s1172_s1 + $0x88] ss:$16 sps:$4 sm:$0xff]   ;;  %v798_v20 = vld [vmem:[%s1172_s1 + $0xa4] ss:$16 sps:$4 sm:$0xff]  }
   0x8   :  { %434 = vmatprep.subr.bf16.mxu0 %v780_v8  ;;  %477 = vmatprep.subr.bf16.mxu1 %v782_v9  ;;  %v800_v21 = vld [vmem:[%s1172_s1 + $0xac] ss:$16 sps:$4 sm:$0xff]   ;;  %v802_v22 = vld [vmem:[%s1172_s1 + $0xa0] ss:$16 sps:$4 sm:$0xff]   ;;  %v803_v23 = vld [vmem:[%s1172_s1 + $0xa8] ss:$16 sps:$4 sm:$0xff]  }
   0x9   :  { %v804_v24 = vld [vmem:[%s1172_s1 + $0xc4] ss:$16 sps:$4 sm:$0xff]   ;;  %v806_v25 = vld [vmem:[%s1172_s1 + $0xcc] ss:$16 sps:$4 sm:$0xff]   ;;  %v808_v26 = vld [vmem:[%s1172_s1 + $0xc0] ss:$16 sps:$4 sm:$0xff]  }
   0xa   :  { %v809_v27 = vld [vmem:[%s1172_s1 + $0xc8] ss:$16 sps:$4 sm:$0xff]   ;;  %v810_v28 = vld [vmem:[%s1172_s1 + $0xe4] ss:$16 sps:$4 sm:$0xff]   ;;  %v812_v29 = vld [vmem:[%s1172_s1 + $0xec] ss:$16 sps:$4 sm:$0xff]  }
   0xb   :  { %435 = vmatpush1.bf16.msra.mxu0 %v784_v10  ;;  %478 = vmatpush1.bf16.msra.mxu1 %v785_v11  ;;  %v814_v30 = vld [vmem:[%s1172_s1 + $0xe0] ss:$16 sps:$4 sm:$0xff]   ;;  %v815_v31 = vld [vmem:[%s1172_s1 + $0xe8] ss:$16 sps:$4 sm:$0xff]   ;;  %v816_v32 = vld [vmem:[%s1172_s1 + $0x104] ss:$16 sps:$4 sm:$0xff]  }
   0xc   :  { %436 = vmatprep.subr.bf16.mxu0 %v786_v12  ;;  %479 = vmatprep.subr.bf16.mxu1 %v788_v13  ;;  %v818_v33 = vld [vmem:[%s1172_s1 + $0x10c] ss:$16 sps:$4 sm:$0xff]   ;;  %v820_v34 = vld [vmem:[%s1172_s1 + $0x100] ss:$16 sps:$4 sm:$0xff]   ;;  %v821_v35 = vld [vmem:[%s1172_s1 + $0x108] ss:$16 sps:$4 sm:$0xff]  }
   0xd   :  { %v822_v36 = vld [vmem:[%s1172_s1 + $0x124] ss:$16 sps:$4 sm:$0xff]   ;;  %v824_v37 = vld [vmem:[%s1172_s1 + $0x12c] ss:$16 sps:$4 sm:$0xff]   ;;  %v826_v38 = vld [vmem:[%s1172_s1 + $0x120] ss:$16 sps:$4 sm:$0xff]  }
   0xe   :  { %v827_v39 = vld [vmem:[%s1172_s1 + $0x128] ss:$16 sps:$4 sm:$0xff]   ;;  %v828_v40 = vld [vmem:[%s1172_s1 + $0x144] ss:$16 sps:$4 sm:$0xff]   ;;  %v830_v41 = vld [vmem:[%s1172_s1 + $0x14c] ss:$16 sps:$4 sm:$0xff]  }
   0xf   :  { %437 = vmatpush1.bf16.msra.mxu0 %v790_v14  ;;  %480 = vmatpush1.bf16.msra.mxu1 %v791_v15  ;;  %v832_v42 = vld [vmem:[%s1172_s1 + $0x140] ss:$16 sps:$4 sm:$0xff]   ;;  %v833_v43 = vld [vmem:[%s1172_s1 + $0x148] ss:$16 sps:$4 sm:$0xff]   ;;  %v834_v44 = vld [vmem:[%s1172_s1 + $0x164] ss:$16 sps:$4 sm:$0xff]  }
  0x10   :  { %438 = vmatprep.subr.bf16.mxu0 %v792_v16  ;;  %481 = vmatprep.subr.bf16.mxu1 %v794_v17  ;;  %v836_v45 = vld [vmem:[%s1172_s1 + $0x16c] ss:$16 sps:$4 sm:$0xff]   ;;  %v838_v47 = vld [vmem:[%s1172_s1 + $0x160] ss:$16 sps:$4 sm:$0xff]   ;;  %v839_v48 = vld [vmem:[%s1172_s1 + $0x168] ss:$16 sps:$4 sm:$0xff]  }
  0x11   :  { %v866_v46 = vld [vmem:[%s1173_s0 + $0x4] ss:$8 sps:$4 sm:$0xff]   ;;  %v844_v51 = vld [vmem:[%s1172_s1 + $0x180] ss:$16 sps:$4 sm:$0xff]   ;;  %v845_v52 = vld [vmem:[%s1172_s1 + $0x188] ss:$16 sps:$4 sm:$0xff]  }
  0x12   :  { %v840_v49 = vld [vmem:[%s1172_s1 + $0x184] ss:$16 sps:$4 sm:$0xff]   ;;  %v842_v50 = vld [vmem:[%s1172_s1 + $0x18c] ss:$16 sps:$4 sm:$0xff]   ;;  %462 = vmatprep.mubr.bf16.mxu0 %v866_v46  ;;  %505 = vmatprep.mubr.bf16.mxu1 %v866_v46  ;;  %v850_v55 = vld [vmem:[%s1172_s1 + $0x1a0] ss:$16 sps:$4 sm:$0xff]  }
  0x13   :  { %439 = vmatpush1.bf16.msra.mxu0 %v796_v18  ;;  %482 = vmatpush1.bf16.msra.mxu1 %v797_v19  ;;  %v846_v53 = vld [vmem:[%s1172_s1 + $0x1a4] ss:$16 sps:$4 sm:$0xff]   ;;  %v848_v54 = vld [vmem:[%s1172_s1 + $0x1ac] ss:$16 sps:$4 sm:$0xff]   ;;  %v851_v56 = vld [vmem:[%s1172_s1 + $0x1a8] ss:$16 sps:$4 sm:$0xff]  }
  0x14   :  { %440 = vmatprep.subr.bf16.mxu0 %v798_v20  ;;  %483 = vmatprep.subr.bf16.mxu1 %v800_v21  ;;  %v852_v57 = vld [vmem:[%s1172_s1 + $0x1c4] ss:$16 sps:$4 sm:$0xff]   ;;  %v854_v58 = vld [vmem:[%s1172_s1 + $0x1cc] ss:$16 sps:$4 sm:$0xff]   ;;  %v856_v59 = vld [vmem:[%s1172_s1 + $0x1c0] ss:$16 sps:$4 sm:$0xff]  }
  0x15   :  { %v857_v60 = vld [vmem:[%s1172_s1 + $0x1c8] ss:$16 sps:$4 sm:$0xff]   ;;  %v858_v61 = vld [vmem:[%s1172_s1 + $0x1e4] ss:$16 sps:$4 sm:$0xff]   ;;  %v860_v62 = vld [vmem:[%s1172_s1 + $0x1ec] ss:$16 sps:$4 sm:$0xff]  }
  0x16   :  { %v862_v63 = vld [vmem:[%s1172_s1 + $0x1e0] ss:$16 sps:$4 sm:$0xff]   ;;  %v863_v0 = vld [vmem:[%s1172_s1 + $0x1e8] ss:$16 sps:$4 sm:$0xff]   ;;  %v547_v3 = vshrl.u32 %v546_v2, 7 }
  0x17   :  { %441 = vmatpush1.bf16.msra.mxu0 %v802_v22  ;;  %484 = vmatpush1.bf16.msra.mxu1 %v803_v23  ;;  %v864_v1 = vld [vmem:[%s1173_s0] ss:$8 sps:$4 sm:$0xff]  }
  0x18   :  { %442 = vmatprep.subr.bf16.mxu0 %v804_v24  ;;  %485 = vmatprep.subr.bf16.mxu1 %v806_v25  ;;  %v543_v4 = vld [vmem:[%s1174_s2] sm:$0xf]  ;;  %v548_v6 = vsub.s32 0, %v547_v3  ;;  %v556_v7 = vsub.s32 4, %v547_v3  ;;  %v552_v8 = vsub.s32 2, %v547_v3  ;;  %v560_v9 = vsub.s32 6, %v547_v3 }
  0x19   :  { %v544_v5 = vunpack.c.l.bf16 %v543_v4 }
  0x1b   :  { %443 = vmatpush1.bf16.msra.mxu0 %v808_v26  ;;  %486 = vmatpush1.bf16.msra.mxu1 %v809_v27  ;;  %v549_v10 = vrot.slane %v544_v5, %v548_v6  ;;  %v557_v11 = vrot.slane %v544_v5, %v556_v7  ;;  %v553_v12 = vrot.slane %v544_v5, %v552_v8 }
  0x1c   :  { %444 = vmatprep.subr.bf16.mxu0 %v810_v28  ;;  %487 = vmatprep.subr.bf16.mxu1 %v812_v29  ;;  %v561_v13 = vrot.slane %v544_v5, %v560_v9 }
  0x1d   :  { %v569_v14 = vrot.slane %v549_v10, %v548_v6  ;;  %v577_v15 = vrot.slane %v557_v11, %v548_v6  ;;  %v573_v16 = vrot.slane %v553_v12, %v548_v6 }
  0x1e   :  { %v581_v17 = vrot.slane %v561_v13, %v548_v6 }
  0x1f   :  { %445 = vmatpush1.bf16.msra.mxu0 %v814_v30  ;;  %488 = vmatpush1.bf16.msra.mxu1 %v815_v31 }
  0x20   :  { %446 = vmatprep.subr.bf16.mxu0 %v816_v32  ;;  %489 = vmatprep.subr.bf16.mxu1 %v818_v33 }
  0x23   :  { %447 = vmatpush1.bf16.msra.mxu0 %v820_v34  ;;  %490 = vmatpush1.bf16.msra.mxu1 %v821_v35 }
  0x24   :  { %448 = vmatprep.subr.bf16.mxu0 %v822_v36  ;;  %491 = vmatprep.subr.bf16.mxu1 %v824_v37 }
  0x27   :  { %449 = vmatpush1.bf16.msra.mxu0 %v826_v38  ;;  %492 = vmatpush1.bf16.msra.mxu1 %v827_v39 }
  0x28   :  { %450 = vmatprep.subr.bf16.mxu0 %v828_v40  ;;  %493 = vmatprep.subr.bf16.mxu1 %v830_v41 }
  0x2b   :  { %451 = vmatpush1.bf16.msra.mxu0 %v832_v42  ;;  %494 = vmatpush1.bf16.msra.mxu1 %v833_v43 }
  0x2c   :  { %452 = vmatprep.subr.bf16.mxu0 %v834_v44  ;;  %495 = vmatprep.subr.bf16.mxu1 %v836_v45 }
  0x2f   :  { %453 = vmatpush1.bf16.msra.mxu0 %v838_v47  ;;  %496 = vmatpush1.bf16.msra.mxu1 %v839_v48 }
  0x30   :  { %454 = vmatprep.subr.bf16.mxu0 %v840_v49  ;;  %497 = vmatprep.subr.bf16.mxu1 %v842_v50 }
  0x33   :  { %455 = vmatpush1.bf16.msra.mxu0 %v844_v51  ;;  %498 = vmatpush1.bf16.msra.mxu1 %v845_v52 }
  0x34   :  { %456 = vmatprep.subr.bf16.mxu0 %v846_v53  ;;  %499 = vmatprep.subr.bf16.mxu1 %v848_v54 }
  0x37   :  { %457 = vmatpush1.bf16.msra.mxu0 %v850_v55  ;;  %500 = vmatpush1.bf16.msra.mxu1 %v851_v56 }
  0x38   :  { %458 = vmatprep.subr.bf16.mxu0 %v852_v57  ;;  %501 = vmatprep.subr.bf16.mxu1 %v854_v58 }
  0x3b   :  { %459 = vmatpush1.bf16.msra.mxu0 %v856_v59  ;;  %502 = vmatpush1.bf16.msra.mxu1 %v857_v60 }
  0x3c   :  { %460 = vmatprep.subr.bf16.mxu0 %v858_v61  ;;  %503 = vmatprep.subr.bf16.mxu1 %v860_v62 }
  0x3f   :  { %461 = vmatpush1.bf16.msra.mxu0 %v862_v63  ;;  %504 = vmatpush1.bf16.msra.mxu1 %v863_v0 }
  0x42   :  { %463 = vmatmul.mubr.bf16.vlgmr.msra.gmra.mrb[0].mxu0 %v864_v1  ;;  %506 = vmatmul.mubr.bf16.vlgmr.msra.gmra.mrb[0].mxu1 %v864_v1 }
 0x115   :  { %v464_v18 = vpop.f32.mrb[0].mxu0  ;;  %v507_v19 = vpop.f32.mrb[0].mxu1 }
 0x116   :  { %v1104_v20 = vadd.f32 %v569_v14, %v464_v18  ;;  %v1106_v21 = vadd.f32 %v577_v15, %v507_v19  ;;  %v466_v22 = vpop.f32.mrb[1].mxu0  ;;  %v509_v23 = vpop.f32.mrb[1].mxu1 }
 0x117   :  { %v1108_v24 = vadd.f32 %v573_v16, %v466_v22  ;;  %v1110_v25 = vadd.f32 %v581_v17, %v509_v23  ;;  %v468_v26 = vpop.f32.mrb[2].mxu0  ;;  %v511_v27 = vpop.f32.mrb[2].mxu1 }
 0x118   :  { %v590_v28 = vmul.f32 %v1104_v20, %v1104_v20  ;;  %v592_v29 = vmul.f32 %v1106_v21, %v1106_v21  ;;  %v1116_v30 = vadd.f32 %v569_v14, %v468_v26  ;;  %v1118_v31 = vadd.f32 %v577_v15, %v511_v27  ;;  %v470_v32 = vpop.f32.mrb[3].mxu0  ;;  %v513_v33 = vpop.f32.mrb[3].mxu1 }
 0x119   :  { %v591_v34 = vmul.f32 %v1108_v24, %v1108_v24  ;;  %v593_v35 = vmul.f32 %v1110_v25, %v1110_v25  ;;  %v1124_v36 = vadd.f32 %v573_v16, %v470_v32  ;;  %v1126_v37 = vadd.f32 %v581_v17, %v513_v33 }
 0x11a   :  { %v598_v38 = vmul.f32 %v590_v28, %v1104_v20  ;;  %v600_v39 = vmul.f32 %v592_v29, %v1106_v21  ;;  %v594_v40 = vmul.f32 %v1116_v30, %v1116_v30  ;;  %v596_v41 = vmul.f32 %v1118_v31, %v1118_v31 }
 0x11b   :  { %v599_v42 = vmul.f32 %v591_v34, %v1108_v24  ;;  %v601_v43 = vmul.f32 %v593_v35, %v1110_v25  ;;  %v595_v44 = vmul.f32 %v1124_v36, %v1124_v36  ;;  %v597_v45 = vmul.f32 %v1126_v37, %v1126_v37 }
 0x11c   :  { %v606_v46 = vmul.f32 0.044715, %v598_v38  ;;  %v608_v47 = vmul.f32 0.044715, %v600_v39  ;;  %v602_v48 = vmul.f32 %v594_v40, %v1116_v30  ;;  %v604_v49 = vmul.f32 %v596_v41, %v1118_v31 }
 0x11d   :  { %v607_v50 = vmul.f32 0.044715, %v599_v42  ;;  %v609_v51 = vmul.f32 0.044715, %v601_v43  ;;  %v603_v52 = vmul.f32 %v595_v44, %v1124_v36  ;;  %v605_v53 = vmul.f32 %v597_v45, %v1126_v37 }
 0x11e   :  { %v614_v54 = vadd.f32 %v606_v46, %v1104_v20  ;;  %v616_v55 = vadd.f32 %v608_v47, %v1106_v21  ;;  %v610_v56 = vmul.f32 0.044715, %v602_v48  ;;  %v612_v57 = vmul.f32 0.044715, %v604_v49 }
 0x11f   :  { %v615_v58 = vadd.f32 %v607_v50, %v1108_v24  ;;  %v617_v59 = vadd.f32 %v609_v51, %v1110_v25  ;;  %v611_v60 = vmul.f32 0.044715, %v603_v52  ;;  %v613_v61 = vmul.f32 0.044715, %v605_v53 }
 0x120   :  { %v622_v62 = vmul.f32 0.7978846, %v614_v54  ;;  %v624_v63 = vmul.f32 0.7978846, %v616_v55  ;;  %v618_v0 = vadd.f32 %v610_v56, %v1116_v30  ;;  %v620_v1 = vadd.f32 %v612_v57, %v1118_v31 }
 0x121   :  { %v623_v2 = vmul.f32 0.7978846, %v615_v58  ;;  %v625_v3 = vmul.f32 0.7978846, %v617_v59  ;;  %v619_v4 = vadd.f32 %v611_v60, %v1124_v36  ;;  %v621_v5 = vadd.f32 %v613_v61, %v1126_v37 }
 0x122   :  { %867 = vtanh.f32 %v622_v62  ;;  %v626_v6 = vmul.f32 0.7978846, %v618_v0  ;;  %v628_v7 = vmul.f32 0.7978846, %v620_v1 }
 0x123   :  { %869 = vtanh.f32 %v624_v63  ;;  %v627_v8 = vmul.f32 0.7978846, %v619_v4  ;;  %v629_v9 = vmul.f32 0.7978846, %v621_v5 }
 0x124   :  { %871 = vtanh.f32 %v623_v2 }
 0x125   :  { %873 = vtanh.f32 %v625_v3 }
 0x126   :  { %875 = vtanh.f32 %v626_v6 }
 0x127   :  { %877 = vtanh.f32 %v628_v7 }
 0x128   :  { %879 = vtanh.f32 %v627_v8 }
 0x129   :  { %881 = vtanh.f32 %v629_v9 }
 0x12c   :  { %v868_v10 = vpop.eup %867 }
 0x12d   :  { %v870_v11 = vpop.eup %869  ;;  %v638_v12 = vadd.f32 1.0, %v868_v10 }
 0x12e   :  { %v872_v13 = vpop.eup %871  ;;  %v640_v14 = vadd.f32 1.0, %v870_v11 }
 0x12f   :  { %v874_v15 = vpop.eup %873  ;;  %v646_v16 = vmul.f32 0.5, %v638_v12  ;;  %v639_v17 = vadd.f32 1.0, %v872_v13 }
 0x130   :  { %v876_v18 = vpop.eup %875  ;;  %v648_v19 = vmul.f32 0.5, %v640_v14  ;;  %v641_v22 = vadd.f32 1.0, %v874_v15 }
 0x131   :  { %v878_v23 = vpop.eup %877  ;;  %v654_v26 = vmul.f32 %v646_v16, %v1104_v20  ;;  %v647_v27 = vmul.f32 0.5, %v639_v17  ;;  %v642_v28 = vadd.f32 1.0, %v876_v18 }
 0x132   :  { %v880_v29 = vpop.eup %879  ;;  %v656_v32 = vmul.f32 %v648_v19, %v1106_v21  ;;  %v649_v33 = vmul.f32 0.5, %v641_v22  ;;  %v644_v34 = vadd.f32 1.0, %v878_v23 }
 0x133   :  { %v882_v35 = vpop.eup %881  ;;  %v655_v38 = vmul.f32 %v647_v27, %v1108_v24  ;;  %v650_v39 = vmul.f32 0.5, %v642_v28  ;;  %v643_v40 = vadd.f32 1.0, %v880_v29 }
 0x134   :  { %v657_v41 = vmul.f32 %v649_v33, %v1110_v25  ;;  %v652_v42 = vmul.f32 0.5, %v644_v34  ;;  %v645_v43 = vadd.f32 1.0, %v882_v35 }
 0x135   :  { %v764_v44 = vpack.c.bf16 %v655_v38, %v654_v26  ;;  %v658_v45 = vmul.f32 %v650_v39, %v1116_v30  ;;  %v651_v20 = vmul.f32 0.5, %v643_v40 }
 0x136   :  { %v765_v46 = vpack.c.bf16 %v657_v41, %v656_v32  ;;  %v660_v47 = vmul.f32 %v652_v42, %v1118_v31  ;;  %v653_v48 = vmul.f32 0.5, %v645_v43 }
 0x137   :  { %686 = vst [vmem:[%s1175_s3] sm:$0xff] %v764_v44  ;;  %v659_v21 = vmul.f32 %v651_v20, %v1124_v36 }
 0x138   :  { %687 = vst [vmem:[%s1175_s3 + $0x8] sm:$0xff] %v765_v46  ;;  %v661_v24 = vmul.f32 %v653_v48, %v1126_v37 }
 0x139   :  { %v766_v25 = vpack.c.bf16 %v659_v21, %v658_v45 }
 0x13a   :  { %v767_v49 = vpack.c.bf16 %v661_v24, %v660_v47 }
 0x13b   :  { %688 = vst [vmem:[%s1175_s3 + $0x10] sm:$0xff] %v766_v25 }
 0x13c   :  { %689 = vst [vmem:[%s1175_s3 + $0x18] sm:$0xff] %v767_v49 }

// kernel: transformer_lm_forward.15
= control target key start
LH: loop header
LB: loop body
LE: loop exit
PB: predicated region body
PF: predicated region fallthrough
CT: control target
= control target key end

     0   :  { %v302_v34 = vlaneseq  ;;  %s713_s1 = inlined_call_operand.vmem [shape: bf16[256,256], index: 1, kind: input, shape index: {}]   ;;  %s714_s0 = inlined_call_operand.vmem [shape: bf16[16,256], index: 0, kind: input, shape index: {}]   ;;  %s715_s2 = inlined_call_operand.vmem [shape: bf16[1,256], index: 2, kind: input, shape index: {}]   ;;  %s716_s3 = inlined_call_operand.vmem [shape: bf16[16,256], index: 3, kind: input, shape index: {}]   ;;  %s717_s6 = inlined_call_operand.vmem [shape: bf16[16,256], index: 6, kind: output, shape index: {0}]   ;;  %s718_s4 = inlined_call_operand.vmem [shape: f32[1,256], index: 4, kind: input, shape index: {}]   ;;  %s719_s5 = inlined_call_operand.vmem [shape: f32[1,256], index: 5, kind: input, shape index: {}]   ;;  %s720_s7 = inlined_call_operand.vmem [shape: bf16[16,256], index: 7, kind: output, shape index: {1}]  }
   0x1   :  { %v477_v0 = vld [vmem:[%s713_s1 + $0x4] ss:$8 sps:$4 sm:$0xff]   ;;  %v479_v1 = vld [vmem:[%s713_s1] ss:$8 sps:$4 sm:$0xff]   ;;  %v480_v2 = vld [vmem:[%s713_s1 + $0x14] ss:$8 sps:$4 sm:$0xff]  }
   0x2   :  { %241 = vmatprep.subr.bf16.mxu0 %v477_v0  ;;  %v482_v3 = vld [vmem:[%s713_s1 + $0x10] ss:$8 sps:$4 sm:$0xff]   ;;  %v483_v4 = vld [vmem:[%s713_s1 + $0x24] ss:$8 sps:$4 sm:$0xff]   ;;  %v485_v5 = vld [vmem:[%s713_s1 + $0x20] ss:$8 sps:$4 sm:$0xff]  }
   0x3   :  { %242 = vmatpush1.bf16.msra.mxu0 %v479_v1  ;;  %v486_v6 = vld [vmem:[%s713_s1 + $0x34] ss:$8 sps:$4 sm:$0xff]   ;;  %v488_v7 = vld [vmem:[%s713_s1 + $0x30] ss:$8 sps:$4 sm:$0xff]   ;;  %v489_v8 = vld [vmem:[%s713_s1 + $0x44] ss:$8 sps:$4 sm:$0xff]  }
   0x4   :  { %243 = vmatprep.subr.bf16.mxu0 %v480_v2  ;;  %v491_v9 = vld [vmem:[%s713_s1 + $0x40] ss:$8 sps:$4 sm:$0xff]   ;;  %v492_v10 = vld [vmem:[%s713_s1 + $0x54] ss:$8 sps:$4 sm:$0xff]   ;;  %v494_v11 = vld [vmem:[%s713_s1 + $0x50] ss:$8 sps:$4 sm:$0xff]  }
   0x5   :  { %v495_v12 = vld [vmem:[%s713_s1 + $0x64] ss:$8 sps:$4 sm:$0xff]   ;;  %v497_v14 = vld [vmem:[%s713_s1 + $0x60] ss:$8 sps:$4 sm:$0xff]   ;;  %v498_v15 = vld [vmem:[%s713_s1 + $0x74] ss:$8 sps:$4 sm:$0xff]  }
   0x6   :  { %v527_v13 = vld [vmem:[%s714_s0 + $0x4] ss:$8 sps:$4 sm:$0xff]   ;;  %v500_v16 = vld [vmem:[%s713_s1 + $0x70] ss:$8 sps:$4 sm:$0xff]   ;;  %v503_v18 = vld [vmem:[%s713_s1 + $0x80] ss:$8 sps:$4 sm:$0xff]  }
   0x7   :  { %244 = vmatpush1.bf16.msra.mxu0 %v482_v3  ;;  %273 = vmatprep.mubr.bf16.mxu0 %v527_v13  ;;  %v501_v17 = vld [vmem:[%s713_s1 + $0x84] ss:$8 sps:$4 sm:$0xff]   ;;  %v504_v19 = vld [vmem:[%s713_s1 + $0x94] ss:$8 sps:$4 sm:$0xff]   ;;  %v506_v20 = vld [vmem:[%s713_s1 + $0x90] ss:$8 sps:$4 sm:$0xff]  }
   0x8   :  { %245 = vmatprep.subr.bf16.mxu0 %v483_v4  ;;  %v507_v21 = vld [vmem:[%s713_s1 + $0xa4] ss:$8 sps:$4 sm:$0xff]   ;;  %v509_v22 = vld [vmem:[%s713_s1 + $0xa0] ss:$8 sps:$4 sm:$0xff]   ;;  %v510_v23 = vld [vmem:[%s713_s1 + $0xb4] ss:$8 sps:$4 sm:$0xff]  }
   0x9   :  { %v512_v24 = vld [vmem:[%s713_s1 + $0xb0] ss:$8 sps:$4 sm:$0xff]   ;;  %v513_v25 = vld [vmem:[%s713_s1 + $0xc4] ss:$8 sps:$4 sm:$0xff]   ;;  %v515_v26 = vld [vmem:[%s713_s1 + $0xc0] ss:$8 sps:$4 sm:$0xff]  }
   0xa   :  { %v516_v27 = vld [vmem:[%s713_s1 + $0xd4] ss:$8 sps:$4 sm:$0xff]   ;;  %v518_v28 = vld [vmem:[%s713_s1 + $0xd0] ss:$8 sps:$4 sm:$0xff]   ;;  %v519_v29 = vld [vmem:[%s713_s1 + $0xe4] ss:$8 sps:$4 sm:$0xff]  }
   0xb   :  { %246 = vmatpush1.bf16.msra.mxu0 %v485_v5  ;;  %v521_v30 = vld [vmem:[%s713_s1 + $0xe0] ss:$8 sps:$4 sm:$0xff]   ;;  %v522_v31 = vld [vmem:[%s713_s1 + $0xf4] ss:$8 sps:$4 sm:$0xff]   ;;  %v524_v32 = vld [vmem:[%s713_s1 + $0xf0] ss:$8 sps:$4 sm:$0xff]  }
   0xc   :  { %247 = vmatprep.subr.bf16.mxu0 %v486_v6  ;;  %v525_v33 = vld [vmem:[%s714_s0] ss:$8 sps:$4 sm:$0xff]   ;;  %v674_v35 = vshrl.u32 %v302_v34, 7 }
   0xd   :  { %v299_v36 = vld [vmem:[%s715_s2] sm:$0x3]  ;;  %v325_v45 = vld [vmem:[%s716_s3 + $0x8] sm:$0xff] }
   0xe   :  { %v300_v37 = vunpack.c.l.bf16 %v299_v36  ;;  %v680_v38 = vsub.s32 0, %v674_v35  ;;  %v308_v39 = vsub.s32 2, %v674_v35  ;;  %v324_v42 = vld [vmem:[%s716_s3] sm:$0xff]  ;;  %v328_v51 = vunpack.c.l.bf16 %v325_v45 }
   0xf   :  { %248 = vmatpush1.bf16.msra.mxu0 %v488_v7  ;;  %v326_v46 = vunpack.c.l.bf16 %v324_v42  ;;  %v327_v48 = vunpack.c.h.bf16 %v324_v42  ;;  %v329_v54 = vunpack.c.h.bf16 %v325_v45 }
  0x10   :  { %249 = vmatprep.subr.bf16.mxu0 %v489_v8  ;;  %v305_v40 = vrot.slane %v300_v37, %v680_v38  ;;  %v309_v41 = vrot.slane %v300_v37, %v308_v39 }
  0x12   :  { %v315_v43 = vrot.slane %v305_v40, %v680_v38  ;;  %v319_v44 = vrot.slane %v309_v41, %v680_v38 }
  0x13   :  { %250 = vmatpush1.bf16.msra.mxu0 %v491_v9 }
  0x14   :  { %251 = vmatprep.subr.bf16.mxu0 %v492_v10 }
  0x17   :  { %252 = vmatpush1.bf16.msra.mxu0 %v494_v11 }
  0x18   :  { %253 = vmatprep.subr.bf16.mxu0 %v495_v12 }
  0x1b   :  { %254 = vmatpush1.bf16.msra.mxu0 %v497_v14 }
  0x1c   :  { %255 = vmatprep.subr.bf16.mxu0 %v498_v15 }
  0x1f   :  { %256 = vmatpush1.bf16.msra.mxu0 %v500_v16 }
  0x20   :  { %257 = vmatprep.subr.bf16.mxu0 %v501_v17 }
  0x23   :  { %258 = vmatpush1.bf16.msra.mxu0 %v503_v18 }
  0x24   :  { %259 = vmatprep.subr.bf16.mxu0 %v504_v19 }
  0x27   :  { %260 = vmatpush1.bf16.msra.mxu0 %v506_v20 }
  0x28   :  { %261 = vmatprep.subr.bf16.mxu0 %v507_v21 }
  0x2b   :  { %262 = vmatpush1.bf16.msra.mxu0 %v509_v22  ;;  %v389_v22 = vsub.s32 1, %v674_v35 }
  0x2c   :  { %263 = vmatprep.subr.bf16.mxu0 %v510_v23  ;;  %v381_v23 = vld [vmem:[%s718_s4] sm:$0x3] }
  0x2f   :  { %264 = vmatpush1.bf16.msra.mxu0 %v512_v24  ;;  %v397_v24 = vld [vmem:[%s719_s5] sm:$0x3] }
  0x30   :  { %265 = vmatprep.subr.bf16.mxu0 %v513_v25  ;;  %v386_v25 = vrot.slane %v381_v23, %v680_v38 }
  0x33   :  { %266 = vmatpush1.bf16.msra.mxu0 %v515_v26  ;;  %v390_v26 = vrot.slane %v381_v23, %v389_v22 }
  0x34   :  { %267 = vmatprep.subr.bf16.mxu0 %v516_v27 }
  0x37   :  { %268 = vmatpush1.bf16.msra.mxu0 %v518_v28  ;;  %v402_v28 = vrot.slane %v397_v24, %v680_v38 }
  0x38   :  { %269 = vmatprep.subr.bf16.mxu0 %v519_v29  ;;  %v406_v29 = vrot.slane %v397_v24, %v389_v22 }
  0x3b   :  { %270 = vmatpush1.bf16.msra.mxu0 %v521_v30 }
  0x3c   :  { %271 = vmatprep.subr.bf16.mxu0 %v522_v31 }
  0x3f   :  { %272 = vmatpush1.bf16.msra.mxu0 %v524_v32 }
  0x42   :  { %274 = vmatmul.mubr.bf16.vlgmr.msra.gmra.mrb[0].mxu0 %v525_v33 }
 0x115   :  { %v275_v47 = vpop.f32.mrb[0].mxu0 }
 0x116   :  { %v320_v49 = vadd.f32 %v315_v43, %v275_v47  ;;  %v277_v50 = vpop.f32.mrb[1].mxu0 }
 0x117   :  { %v321_v52 = vadd.f32 %v319_v44, %v277_v50  ;;  %v279_v53 = vpop.f32.mrb[2].mxu0 }
 0x118   :  { %v330_v55 = vadd.f32 %v326_v46, %v320_v49  ;;  %v322_v56 = vadd.f32 %v315_v43, %v279_v53  ;;  %v281_v57 = vpop.f32.mrb[3].mxu0 }
 0x119   :  { %v331_v58 = vadd.f32 %v327_v48, %v321_v52  ;;  %v323_v59 = vadd.f32 %v319_v44, %v281_v57 }
 0x11a   :  { %v332_v60 = vadd.f32 %v328_v51, %v322_v56 }
 0x11b   :  { %v473_v61 = vpack.c.bf16 %v331_v58, %v330_v55  ;;  %v333_v62 = vadd.f32 %v329_v54, %v323_v59  ;;  %v348_v63 = vadd.f32 %v331_v58, %v330_v55 }
 0x11d   :  { %346 = vst [vmem:[%s717_s6] sm:$0xff] %v473_v61  ;;  %v474_v0 = vpack.c.bf16 %v333_v62, %v332_v60  ;;  %349 = vadd.xlane.f32.xlu0 %v348_v63  ;;  %v351_v1 = vadd.f32 %v333_v62, %v332_v60 }
 0x11f   :  { %347 = vst [vmem:[%s717_s6 + $0x8] sm:$0xff] %v474_v0 }
 0x121   :  { %352 = vadd.xlane.f32.xlu0 %v351_v1 }
 0x1aa   :  { %v350_v2 = vpop.xlane.xlu0 %349 }
 0x1ab   :  { %v355_v3 = vmul.f32 0.00390625, %v350_v2 }
 0x1ad   :  { %v357_v4 = vsub.f32 %v330_v55, %v355_v3  ;;  %v358_v5 = vsub.f32 %v331_v58, %v355_v3 }
 0x1ae   :  { %v353_v6 = vpop.xlane.xlu0 %352 }
 0x1af   :  { %v356_v7 = vmul.f32 0.00390625, %v353_v6  ;;  %v361_v8 = vmul.f32 %v357_v4, %v357_v4  ;;  %v362_v9 = vmul.f32 %v358_v5, %v358_v5 }
 0x1b1   :  { %v359_v10 = vsub.f32 %v332_v60, %v356_v7  ;;  %v360_v11 = vsub.f32 %v333_v62, %v356_v7  ;;  %v365_v12 = vadd.f32 %v362_v9, %v361_v8 }
 0x1b3   :  { %366 = vadd.xlane.f32.xlu1 %v365_v12  ;;  %v363_v13 = vmul.f32 %v359_v10, %v359_v10  ;;  %v364_v14 = vmul.f32 %v360_v11, %v360_v11 }
 0x1b5   :  { %v368_v15 = vadd.f32 %v364_v14, %v363_v13 }
 0x1b7   :  { %369 = vadd.xlane.f32.xlu1 %v368_v15 }
 0x240   :  { %v367_v16 = vpop.xlane.xlu1 %366 }
 0x241   :  { %v371_v17 = vmul.f32 0.00390625, %v367_v16 }
 0x243   :  { %v373_v18 = vadd.f32 1e-05, %v371_v17 }
 0x244   :  { %v370_v19 = vpop.xlane.xlu1 %369 }
 0x245   :  { %528 = vrsqrt.f32 %v373_v18  ;;  %v372_v20 = vmul.f32 0.00390625, %v370_v19 }
 0x247   :  { %v374_v21 = vadd.f32 1e-05, %v372_v20 }
 0x249   :  { %530 = vrsqrt.f32 %v374_v21 }
 0x24f   :  { %v529_v27 = vpop.eup %528 }
 0x250   :  { %v377_v30 = vmul.f32 %v529_v27, %v357_v4  ;;  %v378_v31 = vmul.f32 %v529_v27, %v358_v5 }
 0x252   :  { %v393_v32 = vmul.f32 %v386_v25, %v377_v30  ;;  %v394_v33 = vmul.f32 %v390_v26, %v378_v31 }
 0x253   :  { %v531_v34 = vpop.eup %530 }
 0x254   :  { %v409_v35 = vadd.f32 %v402_v28, %v393_v32  ;;  %v410_v36 = vadd.f32 %v406_v29, %v394_v33  ;;  %v379_v37 = vmul.f32 %v531_v34, %v359_v10  ;;  %v380_v39 = vmul.f32 %v531_v34, %v360_v11 }
 0x256   :  { %v475_v40 = vpack.c.bf16 %v410_v36, %v409_v35  ;;  %v395_v41 = vmul.f32 %v386_v25, %v379_v37  ;;  %v396_v42 = vmul.f32 %v390_v26, %v380_v39 }
 0x258   :  { %425 = vst [vmem:[%s720_s7] sm:$0xff] %v475_v40  ;;  %v411_v43 = vadd.f32 %v402_v28, %v395_v41  ;;  %v412_v44 = vadd.f32 %v406_v29, %v396_v42 }
 0x25a   :  { %v476_v38 = vpack.c.bf16 %v412_v44, %v411_v43 }
 0x25c   :  { %426 = vst [vmem:[%s720_s7 + $0x8] sm:$0xff] %v476_v38 }

// kernel: transformer_lm_forward.17
= control target key start
LH: loop header
LB: loop body
LE: loop exit
PB: predicated region body
PF: predicated region fallthrough
CT: control target
= control target key end

     0   :  { %s1151_s1 = inlined_call_operand.vmem [shape: bf16[512,256], index: 1, kind: input, shape index: {}]   ;;  %s1152_s0 = inlined_call_operand.vmem [shape: bf16[16,512], index: 0, kind: input, shape index: {}]   ;;  %s1153_s2 = inlined_call_operand.vmem [shape: bf16[1,256], index: 2, kind: input, shape index: {}]   ;;  %s1154_s3 = inlined_call_operand.vmem [shape: bf16[16,256], index: 3, kind: input, shape index: {}]   ;;  %s1155_s6 = inlined_call_operand.vmem [shape: bf16[16,256], index: 6, kind: output, shape index: {0}]   ;;  %s1156_s4 = inlined_call_operand.vmem [shape: f32[1,256], index: 4, kind: input, shape index: {}]   ;;  %s1157_s5 = inlined_call_operand.vmem [shape: f32[1,256], index: 5, kind: input, shape index: {}]   ;;  %s1158_s7 = inlined_call_operand.vmem [shape: bf16[16,256], index: 7, kind: output, shape index: {1}]  }
   0x1   :  { %v762_v0 = vld [vmem:[%s1151_s1 + $0x4] ss:$8 sps:$4 sm:$0xff]   ;;  %v766_v2 = vld [vmem:[%s1151_s1] ss:$8 sps:$4 sm:$0xff]   ;;  %v768_v4 = vld [vmem:[%s1151_s1 + $0x14] ss:$8 sps:$4 sm:$0xff]  }
   0x2   :  { %v764_v1 = vld [vmem:[%s1151_s1 + $0x104] ss:$8 sps:$4 sm:$0xff]   ;;  %445 = vmatprep.subr.bf16.mxu1 %v762_v0  ;;  %v767_v3 = vld [vmem:[%s1151_s1 + $0x100] ss:$8 sps:$4 sm:$0xff]   ;;  %v770_v5 = vld [vmem:[%s1151_s1 + $0x114] ss:$8 sps:$4 sm:$0xff]  }
   0x3   :  { %488 = vmatprep.subr.bf16.mxu0 %v764_v1  ;;  %446 = vmatpush1.bf16.msra.mxu1 %v766_v2  ;;  %v772_v6 = vld [vmem:[%s1151_s1 + $0x10] ss:$8 sps:$4 sm:$0xff]   ;;  %v774_v8 = vld [vmem:[%s1151_s1 + $0x24] ss:$8 sps:$4 sm:$0xff]   ;;  %v778_v10 = vld [vmem:[%s1151_s1 + $0x20] ss:$8 sps:$4 sm:$0xff]  }
   0x4   :  { %489 = vmatpush1.bf16.msra.mxu0 %v767_v3  ;;  %447 = vmatprep.subr.bf16.mxu1 %v768_v4  ;;  %v773_v7 = vld [vmem:[%s1151_s1 + $0x110] ss:$8 sps:$4 sm:$0xff]   ;;  %v776_v9 = vld [vmem:[%s1151_s1 + $0x124] ss:$8 sps:$4 sm:$0xff]   ;;  %v779_v11 = vld [vmem:[%s1151_s1 + $0x120] ss:$8 sps:$4 sm:$0xff]   ;;  %v549_v4 = vlaneseq }
   0x5   :  { %490 = vmatprep.subr.bf16.mxu0 %v770_v5  ;;  %v780_v12 = vld [vmem:[%s1151_s1 + $0x34] ss:$8 sps:$4 sm:$0xff]   ;;  %v784_v14 = vld [vmem:[%s1151_s1 + $0x30] ss:$8 sps:$4 sm:$0xff]   ;;  %v786_v16 = vld [vmem:[%s1151_s1 + $0x44] ss:$8 sps:$4 sm:$0xff]  }
   0x6   :  { %v782_v13 = vld [vmem:[%s1151_s1 + $0x134] ss:$8 sps:$4 sm:$0xff]   ;;  %v785_v15 = vld [vmem:[%s1151_s1 + $0x130] ss:$8 sps:$4 sm:$0xff]   ;;  %v788_v17 = vld [vmem:[%s1151_s1 + $0x144] ss:$8 sps:$4 sm:$0xff]  }
   0x7   :  { %448 = vmatpush1.bf16.msra.mxu1 %v772_v6  ;;  %v790_v18 = vld [vmem:[%s1151_s1 + $0x40] ss:$8 sps:$4 sm:$0xff]   ;;  %v792_v20 = vld [vmem:[%s1151_s1 + $0x54] ss:$8 sps:$4 sm:$0xff]   ;;  %v796_v22 = vld [vmem:[%s1151_s1 + $0x50] ss:$8 sps:$4 sm:$0xff]  }
   0x8   :  { %491 = vmatpush1.bf16.msra.mxu0 %v773_v7  ;;  %449 = vmatprep.subr.bf16.mxu1 %v774_v8  ;;  %v791_v19 = vld [vmem:[%s1151_s1 + $0x140] ss:$8 sps:$4 sm:$0xff]   ;;  %v794_v21 = vld [vmem:[%s1151_s1 + $0x154] ss:$8 sps:$4 sm:$0xff]   ;;  %v797_v23 = vld [vmem:[%s1151_s1 + $0x150] ss:$8 sps:$4 sm:$0xff]  }
   0x9   :  { %492 = vmatprep.subr.bf16.mxu0 %v776_v9  ;;  %v798_v24 = vld [vmem:[%s1151_s1 + $0x64] ss:$8 sps:$4 sm:$0xff]   ;;  %v802_v26 = vld [vmem:[%s1151_s1 + $0x60] ss:$8 sps:$4 sm:$0xff]   ;;  %v804_v28 = vld [vmem:[%s1151_s1 + $0x74] ss:$8 sps:$4 sm:$0xff]  }
   0xa   :  { %v800_v25 = vld [vmem:[%s1151_s1 + $0x164] ss:$8 sps:$4 sm:$0xff]   ;;  %v803_v27 = vld [vmem:[%s1151_s1 + $0x160] ss:$8 sps:$4 sm:$0xff]   ;;  %v806_v29 = vld [vmem:[%s1151_s1 + $0x174] ss:$8 sps:$4 sm:$0xff]  }
   0xb   :  { %450 = vmatpush1.bf16.msra.mxu1 %v778_v10  ;;  %v808_v30 = vld [vmem:[%s1151_s1 + $0x70] ss:$8 sps:$4 sm:$0xff]   ;;  %v810_v32 = vld [vmem:[%s1151_s1 + $0x84] ss:$8 sps:$4 sm:$0xff]   ;;  %v814_v34 = vld [vmem:[%s1151_s1 + $0x80] ss:$8 sps:$4 sm:$0xff]  }
   0xc   :  { %493 = vmatpush1.bf16.msra.mxu0 %v779_v11  ;;  %451 = vmatprep.subr.bf16.mxu1 %v780_v12  ;;  %v809_v31 = vld [vmem:[%s1151_s1 + $0x170] ss:$8 sps:$4 sm:$0xff]   ;;  %v812_v33 = vld [vmem:[%s1151_s1 + $0x184] ss:$8 sps:$4 sm:$0xff]   ;;  %v815_v35 = vld [vmem:[%s1151_s1 + $0x180] ss:$8 sps:$4 sm:$0xff]  }
   0xd   :  { %494 = vmatprep.subr.bf16.mxu0 %v782_v13  ;;  %v816_v36 = vld [vmem:[%s1151_s1 + $0x94] ss:$8 sps:$4 sm:$0xff]   ;;  %v820_v38 = vld [vmem:[%s1151_s1 + $0x90] ss:$8 sps:$4 sm:$0xff]   ;;  %v822_v40 = vld [vmem:[%s1151_s1 + $0xa4] ss:$8 sps:$4 sm:$0xff]  }
   0xe   :  { %v818_v37 = vld [vmem:[%s1151_s1 + $0x194] ss:$8 sps:$4 sm:$0xff]   ;;  %v821_v39 = vld [vmem:[%s1151_s1 + $0x190] ss:$8 sps:$4 sm:$0xff]   ;;  %v824_v41 = vld [vmem:[%s1151_s1 + $0x1a4] ss:$8 sps:$4 sm:$0xff]  }
   0xf   :  { %452 = vmatpush1.bf16.msra.mxu1 %v784_v14  ;;  %v826_v42 = vld [vmem:[%s1151_s1 + $0xa0] ss:$8 sps:$4 sm:$0xff]   ;;  %v828_v44 = vld [vmem:[%s1151_s1 + $0xb4] ss:$8 sps:$4 sm:$0xff]   ;;  %v832_v46 = vld [vmem:[%s1151_s1 + $0xb0] ss:$8 sps:$4 sm:$0xff]  }
  0x10   :  { %495 = vmatpush1.bf16.msra.mxu0 %v785_v15  ;;  %453 = vmatprep.subr.bf16.mxu1 %v786_v16  ;;  %v827_v43 = vld [vmem:[%s1151_s1 + $0x1a0] ss:$8 sps:$4 sm:$0xff]   ;;  %v830_v45 = vld [vmem:[%s1151_s1 + $0x1b4] ss:$8 sps:$4 sm:$0xff]   ;;  %v833_v48 = vld [vmem:[%s1151_s1 + $0x1b0] ss:$8 sps:$4 sm:$0xff]  }
  0x11   :  { %496 = vmatprep.subr.bf16.mxu0 %v788_v17  ;;  %v860_v47 = vld [vmem:[%s1152_s0 + $0x4] ss:$16 sps:$4 sm:$0xff]   ;;  %v863_v51 = vld [vmem:[%s1152_s0 + $0xc] ss:$16 sps:$4 sm:$0xff]   ;;  %v838_v52 = vld [vmem:[%s1151_s1 + $0xc0] ss:$8 sps:$4 sm:$0xff]  }
  0x12   :  { %v834_v49 = vld [vmem:[%s1151_s1 + $0xc4] ss:$8 sps:$4 sm:$0xff]   ;;  %477 = vmatprep.mubr.bf16.mxu1 %v860_v47  ;;  %520 = vmatprep.mubr.bf16.mxu0 %v863_v51  ;;  %v839_v53 = vld [vmem:[%s1151_s1 + $0x1c0] ss:$8 sps:$4 sm:$0xff]   ;;  %v840_v54 = vld [vmem:[%s1151_s1 + $0xd4] ss:$8 sps:$4 sm:$0xff]  }
  0x13   :  { %454 = vmatpush1.bf16.msra.mxu1 %v790_v18  ;;  %v836_v50 = vld [vmem:[%s1151_s1 + $0x1c4] ss:$8 sps:$4 sm:$0xff]   ;;  %v842_v55 = vld [vmem:[%s1151_s1 + $0x1d4] ss:$8 sps:$4 sm:$0xff]   ;;  %v844_v56 = vld [vmem:[%s1151_s1 + $0xd0] ss:$8 sps:$4 sm:$0xff]  }
  0x14   :  { %497 = vmatpush1.bf16.msra.mxu0 %v791_v19  ;;  %455 = vmatprep.subr.bf16.mxu1 %v792_v20  ;;  %v845_v57 = vld [vmem:[%s1151_s1 + $0x1d0] ss:$8 sps:$4 sm:$0xff]   ;;  %v846_v58 = vld [vmem:[%s1151_s1 + $0xe4] ss:$8 sps:$4 sm:$0xff]   ;;  %v850_v60 = vld [vmem:[%s1151_s1 + $0xe0] ss:$8 sps:$4 sm:$0xff]  }
  0x15   :  { %498 = vmatprep.subr.bf16.mxu0 %v794_v21  ;;  %v848_v59 = vld [vmem:[%s1151_s1 + $0x1e4] ss:$8 sps:$4 sm:$0xff]   ;;  %v851_v61 = vld [vmem:[%s1151_s1 + $0x1e0] ss:$8 sps:$4 sm:$0xff]   ;;  %v852_v62 = vld [vmem:[%s1151_s1 + $0xf4] ss:$8 sps:$4 sm:$0xff]  }
  0x16   :  { %v854_v63 = vld [vmem:[%s1151_s1 + $0x1f4] ss:$8 sps:$4 sm:$0xff]   ;;  %v856_v0 = vld [vmem:[%s1151_s1 + $0xf0] ss:$8 sps:$4 sm:$0xff]   ;;  %v1112_v5 = vshrl.u32 %v549_v4, 7  ;;  %v571_v12 = vld [vmem:[%s1154_s3] sm:$0xff] }
  0x17   :  { %456 = vmatpush1.bf16.msra.mxu1 %v796_v22  ;;  %v857_v1 = vld [vmem:[%s1151_s1 + $0x1f0] ss:$8 sps:$4 sm:$0xff]   ;;  %v546_v6 = vld [vmem:[%s1153_s2] sm:$0x3]  ;;  %v572_v17 = vld [vmem:[%s1154_s3 + $0x8] sm:$0xff]  ;;  %v573_v21 = vunpack.c.l.bf16 %v571_v12 }
  0x18   :  { %499 = vmatpush1.bf16.msra.mxu0 %v797_v23  ;;  %457 = vmatprep.subr.bf16.mxu1 %v798_v24  ;;  %v858_v2 = vld [vmem:[%s1152_s0] ss:$16 sps:$4 sm:$0xff]   ;;  %v861_v3 = vld [vmem:[%s1152_s0 + $0x8] ss:$16 sps:$4 sm:$0xff]   ;;  %v547_v7 = vunpack.c.l.bf16 %v546_v6  ;;  %v1118_v8 = vsub.s32 0, %v1112_v5  ;;  %v555_v9 = vsub.s32 2, %v1112_v5 }
  0x19   :  { %500 = vmatprep.subr.bf16.mxu0 %v800_v25  ;;  %v574_v25 = vunpack.c.h.bf16 %v571_v12 }
  0x1a   :  { %v552_v10 = vrot.slane %v547_v7, %v1118_v8  ;;  %v556_v11 = vrot.slane %v547_v7, %v555_v9 }
  0x1b   :  { %458 = vmatpush1.bf16.msra.mxu1 %v802_v26 }
  0x1c   :  { %501 = vmatpush1.bf16.msra.mxu0 %v803_v27  ;;  %459 = vmatprep.subr.bf16.mxu1 %v804_v28  ;;  %v562_v13 = vrot.slane %v552_v10, %v1118_v8  ;;  %v566_v16 = vrot.slane %v556_v11, %v1118_v8  ;;  %v575_v28 = vunpack.c.l.bf16 %v572_v17 }
  0x1d   :  { %502 = vmatprep.subr.bf16.mxu0 %v806_v29 }
  0x1f   :  { %460 = vmatpush1.bf16.msra.mxu1 %v808_v30 }
  0x20   :  { %503 = vmatpush1.bf16.msra.mxu0 %v809_v31  ;;  %461 = vmatprep.subr.bf16.mxu1 %v810_v32 }
  0x21   :  { %504 = vmatprep.subr.bf16.mxu0 %v812_v33  ;;  %v576_v33 = vunpack.c.h.bf16 %v572_v17 }
  0x23   :  { %462 = vmatpush1.bf16.msra.mxu1 %v814_v34 }
  0x24   :  { %505 = vmatpush1.bf16.msra.mxu0 %v815_v35  ;;  %463 = vmatprep.subr.bf16.mxu1 %v816_v36 }
  0x25   :  { %506 = vmatprep.subr.bf16.mxu0 %v818_v37 }
  0x27   :  { %464 = vmatpush1.bf16.msra.mxu1 %v820_v38 }
  0x28   :  { %507 = vmatpush1.bf16.msra.mxu0 %v821_v39  ;;  %465 = vmatprep.subr.bf16.mxu1 %v822_v40 }
  0x29   :  { %508 = vmatprep.subr.bf16.mxu0 %v824_v41 }
  0x2b   :  { %466 = vmatpush1.bf16.msra.mxu1 %v826_v42 }
  0x2c   :  { %509 = vmatpush1.bf16.msra.mxu0 %v827_v43  ;;  %467 = vmatprep.subr.bf16.mxu1 %v828_v44 }
  0x2d   :  { %510 = vmatprep.subr.bf16.mxu0 %v830_v45 }
  0x2f   :  { %468 = vmatpush1.bf16.msra.mxu1 %v832_v46 }
  0x30   :  { %511 = vmatpush1.bf16.msra.mxu0 %v833_v48  ;;  %469 = vmatprep.subr.bf16.mxu1 %v834_v49 }
  0x31   :  { %512 = vmatprep.subr.bf16.mxu0 %v836_v50 }
  0x33   :  { %470 = vmatpush1.bf16.msra.mxu1 %v838_v52 }
  0x34   :  { %513 = vmatpush1.bf16.msra.mxu0 %v839_v53  ;;  %471 = vmatprep.subr.bf16.mxu1 %v840_v54 }
  0x35   :  { %514 = vmatprep.subr.bf16.mxu0 %v842_v55 }
  0x37   :  { %472 = vmatpush1.bf16.msra.mxu1 %v844_v56 }
  0x38   :  { %515 = vmatpush1.bf16.msra.mxu0 %v845_v57  ;;  %473 = vmatprep.subr.bf16.mxu1 %v846_v58 }
  0x39   :  { %516 = vmatprep.subr.bf16.mxu0 %v848_v59 }
  0x3b   :  { %474 = vmatpush1.bf16.msra.mxu1 %v850_v60 }
  0x3c   :  { %517 = vmatpush1.bf16.msra.mxu0 %v851_v61  ;;  %475 = vmatprep.subr.bf16.mxu1 %v852_v62 }
  0x3d   :  { %518 = vmatprep.subr.bf16.mxu0 %v854_v63 }
  0x3f   :  { %476 = vmatpush1.bf16.msra.mxu1 %v856_v0  ;;  %v636_v0 = vsub.s32 1, %v1112_v5 }
  0x40   :  { %519 = vmatpush1.bf16.msra.mxu0 %v857_v1  ;;  %v628_v1 = vld [vmem:[%s1156_s4] sm:$0x3] }
  0x41   :  { %v637_v4 = vrot.slane %v628_v1, %v636_v0 }
  0x42   :  { %478 = vmatmul.mubr.bf16.vlgmr.msra.gmra.mrb[0].mxu1 %v858_v2  ;;  %v644_v2 = vld [vmem:[%s1157_s5] sm:$0x3] }
  0x43   :  { %521 = vmatmul.mubr.bf16.vlgmr.msra.gmra.mrb[0].mxu0 %v861_v3  ;;  %v633_v3 = vrot.slane %v628_v1, %v1118_v8  ;;  %v649_v7 = vrot.slane %v644_v2, %v1118_v8  ;;  %v653_v9 = vrot.slane %v644_v2, %v636_v0 }
 0x115   :  { %v479_v14 = vpop.f32.mrb[0].mxu1 }
 0x116   :  { %v522_v15 = vpop.f32.mrb[0].mxu0  ;;  %v481_v19 = vpop.f32.mrb[1].mxu1 }
 0x117   :  { %v523_v18 = vadd.f32 %v522_v15, %v479_v14  ;;  %v524_v20 = vpop.f32.mrb[1].mxu0  ;;  %v483_v23 = vpop.f32.mrb[2].mxu1 }
 0x118   :  { %v525_v22 = vadd.f32 %v524_v20, %v481_v19  ;;  %v526_v24 = vpop.f32.mrb[2].mxu0  ;;  %v485_v29 = vpop.f32.mrb[3].mxu1 }
 0x119   :  { %v567_v26 = vadd.f32 %v562_v13, %v523_v18  ;;  %v527_v27 = vadd.f32 %v526_v24, %v483_v23  ;;  %v528_v30 = vpop.f32.mrb[3].mxu0 }
 0x11a   :  { %v568_v31 = vadd.f32 %v566_v16, %v525_v22  ;;  %v529_v32 = vadd.f32 %v528_v30, %v485_v29 }
 0x11b   :  { %v569_v34 = vadd.f32 %v562_v13, %v527_v27  ;;  %v577_v35 = vadd.f32 %v573_v21, %v567_v26 }
 0x11c   :  { %v570_v36 = vadd.f32 %v566_v16, %v529_v32  ;;  %v578_v37 = vadd.f32 %v574_v25, %v568_v31 }
 0x11d   :  { %v579_v38 = vadd.f32 %v575_v28, %v569_v34 }
 0x11e   :  { %v580_v39 = vadd.f32 %v576_v33, %v570_v36  ;;  %v595_v40 = vadd.f32 %v578_v37, %v577_v35  ;;  %v754_v41 = vpack.c.bf16 %v578_v37, %v577_v35 }
 0x120   :  { %v755_v42 = vpack.c.bf16 %v580_v39, %v579_v38  ;;  %596 = vadd.xlane.f32.xlu0 %v595_v40  ;;  %593 = vst [vmem:[%s1155_s6] sm:$0xff] %v754_v41  ;;  %v598_v43 = vadd.f32 %v580_v39, %v579_v38 }
 0x122   :  { %594 = vst [vmem:[%s1155_s6 + $0x8] sm:$0xff] %v755_v42 }
 0x124   :  { %599 = vadd.xlane.f32.xlu0 %v598_v43 }
 0x1ad   :  { %v597_v44 = vpop.xlane.xlu0 %596 }
 0x1ae   :  { %v602_v45 = vmul.f32 0.00390625, %v597_v44 }
 0x1b0   :  { %v604_v46 = vsub.f32 %v577_v35, %v602_v45  ;;  %v605_v47 = vsub.f32 %v578_v37, %v602_v45 }
 0x1b1   :  { %v600_v48 = vpop.xlane.xlu0 %599 }
 0x1b2   :  { %v603_v49 = vmul.f32 0.00390625, %v600_v48  ;;  %v608_v50 = vmul.f32 %v604_v46, %v604_v46  ;;  %v609_v51 = vmul.f32 %v605_v47, %v605_v47 }
 0x1b4   :  { %v606_v52 = vsub.f32 %v579_v38, %v603_v49  ;;  %v607_v53 = vsub.f32 %v580_v39, %v603_v49  ;;  %v612_v54 = vadd.f32 %v609_v51, %v608_v50 }
 0x1b6   :  { %613 = vadd.xlane.f32.xlu1 %v612_v54  ;;  %v610_v55 = vmul.f32 %v606_v52, %v606_v52  ;;  %v611_v56 = vmul.f32 %v607_v53, %v607_v53 }
 0x1b8   :  { %v615_v57 = vadd.f32 %v611_v56, %v610_v55 }
 0x1ba   :  { %616 = vadd.xlane.f32.xlu1 %v615_v57 }
 0x243   :  { %v614_v58 = vpop.xlane.xlu1 %613 }
 0x244   :  { %v618_v59 = vmul.f32 0.00390625, %v614_v58 }
 0x246   :  { %v620_v60 = vadd.f32 1e-05, %v618_v59 }
 0x247   :  { %v617_v61 = vpop.xlane.xlu1 %616 }
 0x248   :  { %864 = vrsqrt.f32 %v620_v60  ;;  %v619_v62 = vmul.f32 0.00390625, %v617_v61 }
 0x24a   :  { %v621_v63 = vadd.f32 1e-05, %v619_v62 }
 0x24c   :  { %866 = vrsqrt.f32 %v621_v63 }
 0x252   :  { %v865_v6 = vpop.eup %864 }
 0x253   :  { %v624_v10 = vmul.f32 %v865_v6, %v604_v46  ;;  %v625_v11 = vmul.f32 %v865_v6, %v605_v47 }
 0x255   :  { %v640_v12 = vmul.f32 %v633_v3, %v624_v10  ;;  %v641_v13 = vmul.f32 %v637_v4, %v625_v11 }
 0x256   :  { %v867_v5 = vpop.eup %866 }
 0x257   :  { %v656_v14 = vadd.f32 %v649_v7, %v640_v12  ;;  %v657_v15 = vadd.f32 %v653_v9, %v641_v13  ;;  %v626_v16 = vmul.f32 %v867_v5, %v606_v52  ;;  %v627_v17 = vmul.f32 %v867_v5, %v607_v53 }
 0x259   :  { %v756_v18 = vpack.c.bf16 %v657_v15, %v656_v14  ;;  %v642_v19 = vmul.f32 %v633_v3, %v626_v16  ;;  %v643_v20 = vmul.f32 %v637_v4, %v627_v17 }
 0x25b   :  { %672 = vst [vmem:[%s1158_s7] sm:$0xff] %v756_v18  ;;  %v658_v21 = vadd.f32 %v649_v7, %v642_v19  ;;  %v659_v22 = vadd.f32 %v653_v9, %v643_v20 }
 0x25d   :  { %v757_v8 = vpack.c.bf16 %v659_v22, %v658_v21 }
 0x25f   :  { %673 = vst [vmem:[%s1158_s7 + $0x8] sm:$0xff] %v757_v8 }

// kernel: transformer_lm_forward.23
= control target key start
LH: loop header
LB: loop body
LE: loop exit
PB: predicated region body
PF: predicated region fallthrough
CT: control target
= control target key end

     0   :  { %s985_s0 = inlined_call_operand.vmem [shape: bf16[16,256], index: 0, kind: input, shape index: {}]   ;;  %s986_s1 = inlined_call_operand.vmem [shape: bf16[256,512], index: 1, kind: input, shape index: {}]   ;;  %s987_s2 = inlined_call_operand.hbm [shape: f32[16,512], index: 2, kind: output, shape index: {}]  }
   0x1   :  { %v634_v0 = vld [vmem:[%s986_s1 + $0x4] ss:$16 sps:$4 sm:$0xff]   ;;  %v636_v1 = vld [vmem:[%s986_s1 + $0xc] ss:$16 sps:$4 sm:$0xff]   ;;  %v638_v2 = vld [vmem:[%s986_s1] ss:$16 sps:$4 sm:$0xff]  }
   0x2   :  { %428 = vmatprep.subr.bf16.mxu0 %v634_v0  ;;  %v639_v3 = vld [vmem:[%s986_s1 + $0x8] ss:$16 sps:$4 sm:$0xff]   ;;  %471 = vmatprep.subr.bf16.mxu1 %v636_v1  ;;  %v640_v4 = vld [vmem:[%s986_s1 + $0x24] ss:$16 sps:$4 sm:$0xff]   ;;  %v642_v5 = vld [vmem:[%s986_s1 + $0x2c] ss:$16 sps:$4 sm:$0xff]  }
   0x3   :  { %429 = vmatpush1.bf16.msra.mxu0 %v638_v2  ;;  %472 = vmatpush1.bf16.msra.mxu1 %v639_v3  ;;  %v644_v6 = vld [vmem:[%s986_s1 + $0x20] ss:$16 sps:$4 sm:$0xff]   ;;  %v645_v7 = vld [vmem:[%s986_s1 + $0x28] ss:$16 sps:$4 sm:$0xff]   ;;  %v646_v8 = vld [vmem:[%s986_s1 + $0x44] ss:$16 sps:$4 sm:$0xff]  }
   0x4   :  { %430 = vmatprep.subr.bf16.mxu0 %v640_v4  ;;  %473 = vmatprep.subr.bf16.mxu1 %v642_v5  ;;  %v648_v9 = vld [vmem:[%s986_s1 + $0x4c] ss:$16 sps:$4 sm:$0xff]   ;;  %v650_v10 = vld [vmem:[%s986_s1 + $0x40] ss:$16 sps:$4 sm:$0xff]   ;;  %v651_v11 = vld [vmem:[%s986_s1 + $0x48] ss:$16 sps:$4 sm:$0xff]  }
   0x5   :  { %v652_v12 = vld [vmem:[%s986_s1 + $0x64] ss:$16 sps:$4 sm:$0xff]   ;;  %v654_v13 = vld [vmem:[%s986_s1 + $0x6c] ss:$16 sps:$4 sm:$0xff]   ;;  %v656_v14 = vld [vmem:[%s986_s1 + $0x60] ss:$16 sps:$4 sm:$0xff]  }
   0x6   :  { %v657_v15 = vld [vmem:[%s986_s1 + $0x68] ss:$16 sps:$4 sm:$0xff]   ;;  %v658_v16 = vld [vmem:[%s986_s1 + $0x84] ss:$16 sps:$4 sm:$0xff]   ;;  %v660_v17 = vld [vmem:[%s986_s1 + $0x8c] ss:$16 sps:$4 sm:$0xff]  }
   0x7   :  { %431 = vmatpush1.bf16.msra.mxu0 %v644_v6  ;;  %474 = vmatpush1.bf16.msra.mxu1 %v645_v7  ;;  %v662_v18 = vld [vmem:[%s986_s1 + $0x80] ss:$16 sps:$4 sm:$0xff]   ;;  %v663_v19 = vld [vmem:[%s986_s1 + $0x88] ss:$16 sps:$4 sm:$0xff]   ;;  %v664_v20 = vld [vmem:[%s986_s1 + $0xa4] ss:$16 sps:$4 sm:$0xff]  }
   0x8   :  { %432 = vmatprep.subr.bf16.mxu0 %v646_v8  ;;  %475 = vmatprep.subr.bf16.mxu1 %v648_v9  ;;  %v666_v21 = vld [vmem:[%s986_s1 + $0xac] ss:$16 sps:$4 sm:$0xff]   ;;  %v668_v22 = vld [vmem:[%s986_s1 + $0xa0] ss:$16 sps:$4 sm:$0xff]   ;;  %v669_v23 = vld [vmem:[%s986_s1 + $0xa8] ss:$16 sps:$4 sm:$0xff]  }
   0x9   :  { %v670_v24 = vld [vmem:[%s986_s1 + $0xc4] ss:$16 sps:$4 sm:$0xff]   ;;  %v672_v25 = vld [vmem:[%s986_s1 + $0xcc] ss:$16 sps:$4 sm:$0xff]   ;;  %v674_v26 = vld [vmem:[%s986_s1 + $0xc0] ss:$16 sps:$4 sm:$0xff]  }
   0xa   :  { %v675_v27 = vld [vmem:[%s986_s1 + $0xc8] ss:$16 sps:$4 sm:$0xff]   ;;  %v676_v28 = vld [vmem:[%s986_s1 + $0xe4] ss:$16 sps:$4 sm:$0xff]   ;;  %v678_v29 = vld [vmem:[%s986_s1 + $0xec] ss:$16 sps:$4 sm:$0xff]  }
   0xb   :  { %433 = vmatpush1.bf16.msra.mxu0 %v650_v10  ;;  %476 = vmatpush1.bf16.msra.mxu1 %v651_v11  ;;  %v680_v30 = vld [vmem:[%s986_s1 + $0xe0] ss:$16 sps:$4 sm:$0xff]   ;;  %v681_v31 = vld [vmem:[%s986_s1 + $0xe8] ss:$16 sps:$4 sm:$0xff]   ;;  %v682_v32 = vld [vmem:[%s986_s1 + $0x104] ss:$16 sps:$4 sm:$0xff]  }
   0xc   :  { %434 = vmatprep.subr.bf16.mxu0 %v652_v12  ;;  %477 = vmatprep.subr.bf16.mxu1 %v654_v13  ;;  %v684_v33 = vld [vmem:[%s986_s1 + $0x10c] ss:$16 sps:$4 sm:$0xff]   ;;  %v686_v34 = vld [vmem:[%s986_s1 + $0x100] ss:$16 sps:$4 sm:$0xff]   ;;  %v687_v35 = vld [vmem:[%s986_s1 + $0x108] ss:$16 sps:$4 sm:$0xff]  }
   0xd   :  { %v688_v36 = vld [vmem:[%s986_s1 + $0x124] ss:$16 sps:$4 sm:$0xff]   ;;  %v690_v37 = vld [vmem:[%s986_s1 + $0x12c] ss:$16 sps:$4 sm:$0xff]   ;;  %v692_v38 = vld [vmem:[%s986_s1 + $0x120] ss:$16 sps:$4 sm:$0xff]  }
   0xe   :  { %v693_v39 = vld [vmem:[%s986_s1 + $0x128] ss:$16 sps:$4 sm:$0xff]   ;;  %v694_v40 = vld [vmem:[%s986_s1 + $0x144] ss:$16 sps:$4 sm:$0xff]   ;;  %v696_v41 = vld [vmem:[%s986_s1 + $0x14c] ss:$16 sps:$4 sm:$0xff]  }
   0xf   :  { %435 = vmatpush1.bf16.msra.mxu0 %v656_v14  ;;  %478 = vmatpush1.bf16.msra.mxu1 %v657_v15  ;;  %v698_v42 = vld [vmem:[%s986_s1 + $0x140] ss:$16 sps:$4 sm:$0xff]   ;;  %v699_v43 = vld [vmem:[%s986_s1 + $0x148] ss:$16 sps:$4 sm:$0xff]   ;;  %v700_v44 = vld [vmem:[%s986_s1 + $0x164] ss:$16 sps:$4 sm:$0xff]  }
  0x10   :  { %436 = vmatprep.subr.bf16.mxu0 %v658_v16  ;;  %479 = vmatprep.subr.bf16.mxu1 %v660_v17  ;;  %v702_v45 = vld [vmem:[%s986_s1 + $0x16c] ss:$16 sps:$4 sm:$0xff]   ;;  %v704_v47 = vld [vmem:[%s986_s1 + $0x160] ss:$16 sps:$4 sm:$0xff]   ;;  %v705_v48 = vld [vmem:[%s986_s1 + $0x168] ss:$16 sps:$4 sm:$0xff]  }
  0x11   :  { %v732_v46 = vld [vmem:[%s985_s0 + $0x4] ss:$8 sps:$4 sm:$0xff]  }
  0x13   :  { %437 = vmatpush1.bf16.msra.mxu0 %v662_v18  ;;  %480 = vmatpush1.bf16.msra.mxu1 %v663_v19 }
  0x14   :  { %438 = vmatprep.subr.bf16.mxu0 %v664_v20  ;;  %481 = vmatprep.subr.bf16.mxu1 %v666_v21 }
  0x17   :  { %439 = vmatpush1.bf16.msra.mxu0 %v668_v22  ;;  %482 = vmatpush1.bf16.msra.mxu1 %v669_v23 }
  0x18   :  { %440 = vmatprep.subr.bf16.mxu0 %v670_v24  ;;  %483 = vmatprep.subr.bf16.mxu1 %v672_v25 }
  0x1b   :  { %441 = vmatpush1.bf16.msra.mxu0 %v674_v26  ;;  %484 = vmatpush1.bf16.msra.mxu1 %v675_v27 }
  0x1c   :  { %442 = vmatprep.subr.bf16.mxu0 %v676_v28  ;;  %485 = vmatprep.subr.bf16.mxu1 %v678_v29 }
  0x1f   :  { %443 = vmatpush1.bf16.msra.mxu0 %v680_v30  ;;  %486 = vmatpush1.bf16.msra.mxu1 %v681_v31 }
  0x20   :  { %444 = vmatprep.subr.bf16.mxu0 %v682_v32  ;;  %487 = vmatprep.subr.bf16.mxu1 %v684_v33 }
  0x23   :  { %445 = vmatpush1.bf16.msra.mxu0 %v686_v34  ;;  %488 = vmatpush1.bf16.msra.mxu1 %v687_v35 }
  0x24   :  { %446 = vmatprep.subr.bf16.mxu0 %v688_v36  ;;  %489 = vmatprep.subr.bf16.mxu1 %v690_v37 }
  0x27   :  { %447 = vmatpush1.bf16.msra.mxu0 %v692_v38  ;;  %490 = vmatpush1.bf16.msra.mxu1 %v693_v39 }
  0x28   :  { %448 = vmatprep.subr.bf16.mxu0 %v694_v40  ;;  %491 = vmatprep.subr.bf16.mxu1 %v696_v41 }
  0x2b   :  { %449 = vmatpush1.bf16.msra.mxu0 %v698_v42  ;;  %492 = vmatpush1.bf16.msra.mxu1 %v699_v43 }
  0x2c   :  { %7 = vsyncpa [#allocation4], 0  ;;  %450 = vmatprep.subr.bf16.mxu0 %v700_v44  ;;  %493 = vmatprep.subr.bf16.mxu1 %v702_v45  ;;  %v706_v49 = vld [vmem:[%s986_s1 + $0x184] ss:$16 sps:$4 sm:$0xff]   ;;  %v708_v50 = vld [vmem:[%s986_s1 + $0x18c] ss:$16 sps:$4 sm:$0xff]  }
  0x2d   :  { %460 = vmatprep.mubr.bf16.mxu0 %v732_v46  ;;  %503 = vmatprep.mubr.bf16.mxu1 %v732_v46  ;;  %v710_v51 = vld [vmem:[%s986_s1 + $0x180] ss:$16 sps:$4 sm:$0xff]   ;;  %v711_v52 = vld [vmem:[%s986_s1 + $0x188] ss:$16 sps:$4 sm:$0xff]   ;;  %v712_v53 = vld [vmem:[%s986_s1 + $0x1a4] ss:$16 sps:$4 sm:$0xff]  }
  0x2e   :  { %v714_v54 = vld [vmem:[%s986_s1 + $0x1ac] ss:$16 sps:$4 sm:$0xff]   ;;  %v716_v55 = vld [vmem:[%s986_s1 + $0x1a0] ss:$16 sps:$4 sm:$0xff]   ;;  %v717_v56 = vld [vmem:[%s986_s1 + $0x1a8] ss:$16 sps:$4 sm:$0xff]  }
  0x2f   :  { %451 = vmatpush1.bf16.msra.mxu0 %v704_v47  ;;  %494 = vmatpush1.bf16.msra.mxu1 %v705_v48  ;;  %v718_v57 = vld [vmem:[%s986_s1 + $0x1c4] ss:$16 sps:$4 sm:$0xff]   ;;  %v720_v58 = vld [vmem:[%s986_s1 + $0x1cc] ss:$16 sps:$4 sm:$0xff]   ;;  %v722_v59 = vld [vmem:[%s986_s1 + $0x1c0] ss:$16 sps:$4 sm:$0xff]  }
  0x30   :  { %452 = vmatprep.subr.bf16.mxu0 %v706_v49  ;;  %495 = vmatprep.subr.bf16.mxu1 %v708_v50  ;;  %v723_v60 = vld [vmem:[%s986_s1 + $0x1c8] ss:$16 sps:$4 sm:$0xff]   ;;  %v724_v61 = vld [vmem:[%s986_s1 + $0x1e4] ss:$16 sps:$4 sm:$0xff]   ;;  %v726_v62 = vld [vmem:[%s986_s1 + $0x1ec] ss:$16 sps:$4 sm:$0xff]  }
  0x31   :  { %v728_v63 = vld [vmem:[%s986_s1 + $0x1e0] ss:$16 sps:$4 sm:$0xff]   ;;  %v729_v0 = vld [vmem:[%s986_s1 + $0x1e8] ss:$16 sps:$4 sm:$0xff]   ;;  %s757_s29 = smov [#allocation3]  }
  0x32   :  { %v730_v1 = vld [vmem:[%s985_s0] ss:$8 sps:$4 sm:$0xff]   ;;  %s554_s30 = sshll.u32 %s757_s29, 4  ;;  %s555_s30 = int_to_ptr.vmem [resolvable:$true] %s554_s30 }
  0x33   :  { %453 = vmatpush1.bf16.msra.mxu0 %v710_v51  ;;  %496 = vmatpush1.bf16.msra.mxu1 %v711_v52  ;;  %s733_s0 = scalar_lea.vmem %s555_s30, 1024  ;;  %p738_p1 = scmp.lt.s32.totalorder %s555_s30, %s555_s30 }
  0x34   :  { %454 = vmatprep.subr.bf16.mxu0 %v712_v53  ;;  %497 = vmatprep.subr.bf16.mxu1 %v714_v54  ;;  %p734_p0 = scmp.ne.s32.totalorder %s555_s30, %s733_s0  ;;  %p739_p2 = scmp.lt.s32.totalorder %s733_s0, %s733_s0 }
  0x36   :  { %p740_p3 = por %p739_p2, %p738_p1 }
  0x37   :  { %455 = vmatpush1.bf16.msra.mxu0 %v716_v55  ;;  %498 = vmatpush1.bf16.msra.mxu1 %v717_v56 }
  0x38   :  { %456 = vmatprep.subr.bf16.mxu0 %v718_v57  ;;  %499 = vmatprep.subr.bf16.mxu1 %v720_v58  ;;  %p741_p4 = pnand %p740_p3, %p734_p0 }
  0x3b   :  { %457 = vmatpush1.bf16.msra.mxu0 %v722_v59  ;;  %500 = vmatpush1.bf16.msra.mxu1 %v723_v60 }
  0x3c   :  { %458 = vmatprep.subr.bf16.mxu0 %v724_v61  ;;  %501 = vmatprep.subr.bf16.mxu1 %v726_v62 }
  0x3f   :  { %459 = vmatpush1.bf16.msra.mxu0 %v728_v63  ;;  %502 = vmatpush1.bf16.msra.mxu1 %v729_v0 }
  0x42   :  { %461 = vmatmul.mubr.bf16.vlgmr.msra.gmra.mrb[0].mxu0 %v730_v1  ;;  %504 = vmatmul.mubr.bf16.vlgmr.msra.gmra.mrb[0].mxu1 %v730_v1 }
 0x115   :  { %v462_v2 = vpop.f32.mrb[0].mxu0  ;;  %v505_v3 = vpop.f32.mrb[0].mxu1 }
 0x116   :  { %541 = vst [vmem:[#allocation3] sm:$0xff] %v462_v2  ;;  %543 = vst [vmem:[#allocation3 + $0x10] sm:$0xff] %v505_v3  ;;  %v464_v4 = vpop.f32.mrb[1].mxu0  ;;  %v507_v5 = vpop.f32.mrb[1].mxu1 }
 0x117   :  { %542 = vst [vmem:[#allocation3 + $0x8] sm:$0xff] %v464_v4  ;;  %544 = vst [vmem:[#allocation3 + $0x18] sm:$0xff] %v507_v5  ;;  %v466_v6 = vpop.f32.mrb[2].mxu0  ;;  %v509_v7 = vpop.f32.mrb[2].mxu1 }
 0x118   :  { %545 = vst [vmem:[#allocation3 + $0x20] sm:$0xff] %v466_v6  ;;  %547 = vst [vmem:[#allocation3 + $0x30] sm:$0xff] %v509_v7  ;;  %v468_v8 = vpop.f32.mrb[3].mxu0  ;;  %v511_v9 = vpop.f32.mrb[3].mxu1 }
 0x119   :  { %546 = vst [vmem:[#allocation3 + $0x28] sm:$0xff] %v468_v8  ;;  %548 = vst [vmem:[#allocation3 + $0x38] sm:$0xff] %v511_v9 }
 0x11a   :  { %744 = shalt.err (!%p741_p4)
}
 0x11b   :  { %s745_s4 = scalar_lea.hbm %s987_s2, 1024 }
 0x11c   :  { %p746_p5 = scmp.ne.s32.totalorder %s987_s2, %s745_s4  ;;  %p749_p6 = scmp.lt.u32.totalorder %s745_s4, %s987_s2 }
 0x11e   :  { %p751_p7 = pnand %p749_p6, %p746_p5 }
 0x120   :  { %754 = shalt.err (!%p751_p7)
}
 0x121   :  { %s758_s9 = smov 512   ;;  %s759_s10 = smov 32  }
 0x122   :  { %560 = dma.vmem_to_hbm [thread:$0]  %s555_s30, 1024, %s987_s2, [#allocation4], %s758_s9, %s758_s9, %s759_s10  }
 0x123   :  { %755 = dma.done.wait [#allocation4], 1024  }
 0x124   :  { %756 = vsyncadd [#allocation4], 4294966272 }
 0x125   :  { %564 = vsyncpa [#allocation4], 1 }

// kernel: transformer_lm_forward.22
= control target key start
LH: loop header
LB: loop body
LE: loop exit
PB: predicated region body
PF: predicated region fallthrough
CT: control target
= control target key end

     0   :  { %s1200_s0 = inlined_call_operand.vmem [shape: bf16[16,512], index: 0, kind: input, shape index: {}]   ;;  %s1201_s1 = inlined_call_operand.vmem [shape: bf16[512,256], index: 1, kind: input, shape index: {}]   ;;  %s1202_s2 = inlined_call_operand.vmem [shape: bf16[1,256], index: 2, kind: input, shape index: {}]   ;;  %s1203_s3 = inlined_call_operand.vmem [shape: bf16[16,256], index: 3, kind: input, shape index: {}]   ;;  %s1204_s4 = inlined_call_operand.vmem [shape: f32[1,256], index: 4, kind: input, shape index: {}]   ;;  %s1205_s5 = inlined_call_operand.vmem [shape: f32[1,256], index: 5, kind: input, shape index: {}]   ;;  %s1206_s6 = inlined_call_operand.hbm [shape: bf16[16,256], index: 6, kind: output, shape index: {0}]   ;;  %s1207_s7 = inlined_call_operand.vmem [shape: bf16[16,256], index: 7, kind: output, shape index: {1}]  }
   0x1   :  { %v778_v0 = vld [vmem:[%s1201_s1 + $0x4] ss:$8 sps:$4 sm:$0xff]   ;;  %v782_v2 = vld [vmem:[%s1201_s1] ss:$8 sps:$4 sm:$0xff]   ;;  %v784_v4 = vld [vmem:[%s1201_s1 + $0x14] ss:$8 sps:$4 sm:$0xff]  }
   0x2   :  { %v780_v1 = vld [vmem:[%s1201_s1 + $0x104] ss:$8 sps:$4 sm:$0xff]   ;;  %446 = vmatprep.subr.bf16.mxu1 %v778_v0  ;;  %v783_v3 = vld [vmem:[%s1201_s1 + $0x100] ss:$8 sps:$4 sm:$0xff]   ;;  %v786_v5 = vld [vmem:[%s1201_s1 + $0x114] ss:$8 sps:$4 sm:$0xff]  }
   0x3   :  { %489 = vmatprep.subr.bf16.mxu0 %v780_v1  ;;  %447 = vmatpush1.bf16.msra.mxu1 %v782_v2  ;;  %v788_v6 = vld [vmem:[%s1201_s1 + $0x10] ss:$8 sps:$4 sm:$0xff]   ;;  %v790_v8 = vld [vmem:[%s1201_s1 + $0x24] ss:$8 sps:$4 sm:$0xff]   ;;  %v794_v10 = vld [vmem:[%s1201_s1 + $0x20] ss:$8 sps:$4 sm:$0xff]  }
   0x4   :  { %490 = vmatpush1.bf16.msra.mxu0 %v783_v3  ;;  %448 = vmatprep.subr.bf16.mxu1 %v784_v4  ;;  %v789_v7 = vld [vmem:[%s1201_s1 + $0x110] ss:$8 sps:$4 sm:$0xff]   ;;  %v792_v9 = vld [vmem:[%s1201_s1 + $0x124] ss:$8 sps:$4 sm:$0xff]   ;;  %v795_v11 = vld [vmem:[%s1201_s1 + $0x120] ss:$8 sps:$4 sm:$0xff]  }
   0x5   :  { %491 = vmatprep.subr.bf16.mxu0 %v786_v5  ;;  %v796_v12 = vld [vmem:[%s1201_s1 + $0x34] ss:$8 sps:$4 sm:$0xff]   ;;  %v800_v14 = vld [vmem:[%s1201_s1 + $0x30] ss:$8 sps:$4 sm:$0xff]   ;;  %v802_v16 = vld [vmem:[%s1201_s1 + $0x44] ss:$8 sps:$4 sm:$0xff]  }
   0x6   :  { %v798_v13 = vld [vmem:[%s1201_s1 + $0x134] ss:$8 sps:$4 sm:$0xff]   ;;  %v801_v15 = vld [vmem:[%s1201_s1 + $0x130] ss:$8 sps:$4 sm:$0xff]   ;;  %v804_v17 = vld [vmem:[%s1201_s1 + $0x144] ss:$8 sps:$4 sm:$0xff]  }
   0x7   :  { %449 = vmatpush1.bf16.msra.mxu1 %v788_v6  ;;  %v806_v18 = vld [vmem:[%s1201_s1 + $0x40] ss:$8 sps:$4 sm:$0xff]   ;;  %v808_v20 = vld [vmem:[%s1201_s1 + $0x54] ss:$8 sps:$4 sm:$0xff]   ;;  %v812_v22 = vld [vmem:[%s1201_s1 + $0x50] ss:$8 sps:$4 sm:$0xff]  }
   0x8   :  { %492 = vmatpush1.bf16.msra.mxu0 %v789_v7  ;;  %450 = vmatprep.subr.bf16.mxu1 %v790_v8  ;;  %v807_v19 = vld [vmem:[%s1201_s1 + $0x140] ss:$8 sps:$4 sm:$0xff]   ;;  %v810_v21 = vld [vmem:[%s1201_s1 + $0x154] ss:$8 sps:$4 sm:$0xff]   ;;  %v813_v23 = vld [vmem:[%s1201_s1 + $0x150] ss:$8 sps:$4 sm:$0xff]  }
   0x9   :  { %493 = vmatprep.subr.bf16.mxu0 %v792_v9  ;;  %v814_v24 = vld [vmem:[%s1201_s1 + $0x64] ss:$8 sps:$4 sm:$0xff]   ;;  %v818_v26 = vld [vmem:[%s1201_s1 + $0x60] ss:$8 sps:$4 sm:$0xff]   ;;  %v820_v28 = vld [vmem:[%s1201_s1 + $0x74] ss:$8 sps:$4 sm:$0xff]  }
   0xa   :  { %v816_v25 = vld [vmem:[%s1201_s1 + $0x164] ss:$8 sps:$4 sm:$0xff]   ;;  %v819_v27 = vld [vmem:[%s1201_s1 + $0x160] ss:$8 sps:$4 sm:$0xff]   ;;  %v822_v29 = vld [vmem:[%s1201_s1 + $0x174] ss:$8 sps:$4 sm:$0xff]  }
   0xb   :  { %451 = vmatpush1.bf16.msra.mxu1 %v794_v10  ;;  %v824_v30 = vld [vmem:[%s1201_s1 + $0x70] ss:$8 sps:$4 sm:$0xff]   ;;  %v826_v32 = vld [vmem:[%s1201_s1 + $0x84] ss:$8 sps:$4 sm:$0xff]   ;;  %v830_v34 = vld [vmem:[%s1201_s1 + $0x80] ss:$8 sps:$4 sm:$0xff]  }
   0xc   :  { %494 = vmatpush1.bf16.msra.mxu0 %v795_v11  ;;  %452 = vmatprep.subr.bf16.mxu1 %v796_v12  ;;  %v825_v31 = vld [vmem:[%s1201_s1 + $0x170] ss:$8 sps:$4 sm:$0xff]   ;;  %v828_v33 = vld [vmem:[%s1201_s1 + $0x184] ss:$8 sps:$4 sm:$0xff]   ;;  %v831_v35 = vld [vmem:[%s1201_s1 + $0x180] ss:$8 sps:$4 sm:$0xff]  }
   0xd   :  { %495 = vmatprep.subr.bf16.mxu0 %v798_v13  ;;  %v832_v36 = vld [vmem:[%s1201_s1 + $0x94] ss:$8 sps:$4 sm:$0xff]   ;;  %v836_v38 = vld [vmem:[%s1201_s1 + $0x90] ss:$8 sps:$4 sm:$0xff]   ;;  %v838_v40 = vld [vmem:[%s1201_s1 + $0xa4] ss:$8 sps:$4 sm:$0xff]  }
   0xe   :  { %v834_v37 = vld [vmem:[%s1201_s1 + $0x194] ss:$8 sps:$4 sm:$0xff]   ;;  %v837_v39 = vld [vmem:[%s1201_s1 + $0x190] ss:$8 sps:$4 sm:$0xff]   ;;  %v840_v41 = vld [vmem:[%s1201_s1 + $0x1a4] ss:$8 sps:$4 sm:$0xff]  }
   0xf   :  { %453 = vmatpush1.bf16.msra.mxu1 %v800_v14  ;;  %v842_v42 = vld [vmem:[%s1201_s1 + $0xa0] ss:$8 sps:$4 sm:$0xff]   ;;  %v844_v44 = vld [vmem:[%s1201_s1 + $0xb4] ss:$8 sps:$4 sm:$0xff]   ;;  %v848_v46 = vld [vmem:[%s1201_s1 + $0xb0] ss:$8 sps:$4 sm:$0xff]  }
  0x10   :  { %496 = vmatpush1.bf16.msra.mxu0 %v801_v15  ;;  %454 = vmatprep.subr.bf16.mxu1 %v802_v16  ;;  %v843_v43 = vld [vmem:[%s1201_s1 + $0x1a0] ss:$8 sps:$4 sm:$0xff]   ;;  %v846_v45 = vld [vmem:[%s1201_s1 + $0x1b4] ss:$8 sps:$4 sm:$0xff]   ;;  %v849_v47 = vld [vmem:[%s1201_s1 + $0x1b0] ss:$8 sps:$4 sm:$0xff]  }
  0x11   :  { %497 = vmatprep.subr.bf16.mxu0 %v804_v17  ;;  %v876_v48 = vld [vmem:[%s1200_s0 + $0x4] ss:$16 sps:$4 sm:$0xff]   ;;  %v879_v51 = vld [vmem:[%s1200_s0 + $0xc] ss:$16 sps:$4 sm:$0xff]  }
  0x12   :  { %v850_v49 = vld [vmem:[%s1201_s1 + $0xc4] ss:$8 sps:$4 sm:$0xff]  }
  0x13   :  { %455 = vmatpush1.bf16.msra.mxu1 %v806_v18  ;;  %v852_v50 = vld [vmem:[%s1201_s1 + $0x1c4] ss:$8 sps:$4 sm:$0xff]  }
  0x14   :  { %498 = vmatpush1.bf16.msra.mxu0 %v807_v19  ;;  %456 = vmatprep.subr.bf16.mxu1 %v808_v20 }
  0x15   :  { %499 = vmatprep.subr.bf16.mxu0 %v810_v21 }
  0x17   :  { %457 = vmatpush1.bf16.msra.mxu1 %v812_v22 }
  0x18   :  { %500 = vmatpush1.bf16.msra.mxu0 %v813_v23  ;;  %458 = vmatprep.subr.bf16.mxu1 %v814_v24 }
  0x19   :  { %501 = vmatprep.subr.bf16.mxu0 %v816_v25 }
  0x1b   :  { %459 = vmatpush1.bf16.msra.mxu1 %v818_v26 }
  0x1c   :  { %502 = vmatpush1.bf16.msra.mxu0 %v819_v27  ;;  %460 = vmatprep.subr.bf16.mxu1 %v820_v28 }
  0x1d   :  { %503 = vmatprep.subr.bf16.mxu0 %v822_v29 }
  0x1f   :  { %461 = vmatpush1.bf16.msra.mxu1 %v824_v30 }
  0x20   :  { %504 = vmatpush1.bf16.msra.mxu0 %v825_v31  ;;  %462 = vmatprep.subr.bf16.mxu1 %v826_v32 }
  0x21   :  { %505 = vmatprep.subr.bf16.mxu0 %v828_v33 }
  0x23   :  { %463 = vmatpush1.bf16.msra.mxu1 %v830_v34 }
  0x24   :  { %506 = vmatpush1.bf16.msra.mxu0 %v831_v35  ;;  %464 = vmatprep.subr.bf16.mxu1 %v832_v36 }
  0x25   :  { %507 = vmatprep.subr.bf16.mxu0 %v834_v37 }
  0x27   :  { %465 = vmatpush1.bf16.msra.mxu1 %v836_v38 }
  0x28   :  { %508 = vmatpush1.bf16.msra.mxu0 %v837_v39  ;;  %466 = vmatprep.subr.bf16.mxu1 %v838_v40 }
  0x29   :  { %509 = vmatprep.subr.bf16.mxu0 %v840_v41 }
  0x2b   :  { %467 = vmatpush1.bf16.msra.mxu1 %v842_v42 }
  0x2c   :  { %510 = vmatpush1.bf16.msra.mxu0 %v843_v43  ;;  %468 = vmatprep.subr.bf16.mxu1 %v844_v44 }
  0x2d   :  { %511 = vmatprep.subr.bf16.mxu0 %v846_v45 }
  0x2e   :  { %13 = vsyncpa [#allocation4], 0  ;;  %478 = vmatprep.mubr.bf16.mxu1 %v876_v48  ;;  %521 = vmatprep.mubr.bf16.mxu0 %v879_v51  ;;  %v854_v52 = vld [vmem:[%s1201_s1 + $0xc0] ss:$8 sps:$4 sm:$0xff]   ;;  %v856_v54 = vld [vmem:[%s1201_s1 + $0xd4] ss:$8 sps:$4 sm:$0xff]   ;;  %v550_v4 = vlaneseq }
  0x2f   :  { %469 = vmatpush1.bf16.msra.mxu1 %v848_v46  ;;  %v855_v53 = vld [vmem:[%s1201_s1 + $0x1c0] ss:$8 sps:$4 sm:$0xff]   ;;  %v858_v55 = vld [vmem:[%s1201_s1 + $0x1d4] ss:$8 sps:$4 sm:$0xff]   ;;  %v860_v56 = vld [vmem:[%s1201_s1 + $0xd0] ss:$8 sps:$4 sm:$0xff]  }
  0x30   :  { %512 = vmatpush1.bf16.msra.mxu0 %v849_v47  ;;  %470 = vmatprep.subr.bf16.mxu1 %v850_v49  ;;  %v861_v57 = vld [vmem:[%s1201_s1 + $0x1d0] ss:$8 sps:$4 sm:$0xff]   ;;  %v862_v58 = vld [vmem:[%s1201_s1 + $0xe4] ss:$8 sps:$4 sm:$0xff]   ;;  %v866_v60 = vld [vmem:[%s1201_s1 + $0xe0] ss:$8 sps:$4 sm:$0xff]  }
  0x31   :  { %513 = vmatprep.subr.bf16.mxu0 %v852_v50  ;;  %v864_v59 = vld [vmem:[%s1201_s1 + $0x1e4] ss:$8 sps:$4 sm:$0xff]   ;;  %v867_v61 = vld [vmem:[%s1201_s1 + $0x1e0] ss:$8 sps:$4 sm:$0xff]   ;;  %v868_v62 = vld [vmem:[%s1201_s1 + $0xf4] ss:$8 sps:$4 sm:$0xff]  }
  0x32   :  { %v870_v63 = vld [vmem:[%s1201_s1 + $0x1f4] ss:$8 sps:$4 sm:$0xff]   ;;  %v872_v0 = vld [vmem:[%s1201_s1 + $0xf0] ss:$8 sps:$4 sm:$0xff]   ;;  %v1155_v5 = vshrl.u32 %v550_v4, 7  ;;  %v572_v12 = vld [vmem:[%s1203_s3] sm:$0xff] }
  0x33   :  { %471 = vmatpush1.bf16.msra.mxu1 %v854_v52  ;;  %v873_v1 = vld [vmem:[%s1201_s1 + $0x1f0] ss:$8 sps:$4 sm:$0xff]   ;;  %v547_v6 = vld [vmem:[%s1202_s2] sm:$0x3]  ;;  %v573_v17 = vld [vmem:[%s1203_s3 + $0x8] sm:$0xff]  ;;  %v574_v21 = vunpack.c.l.bf16 %v572_v12  ;;  %v575_v25 = vunpack.c.h.bf16 %v572_v12  ;;  %s908_s3 = smov [#allocation3]  }
  0x34   :  { %514 = vmatpush1.bf16.msra.mxu0 %v855_v53  ;;  %472 = vmatprep.subr.bf16.mxu1 %v856_v54  ;;  %v874_v2 = vld [vmem:[%s1200_s0] ss:$16 sps:$4 sm:$0xff]   ;;  %v877_v3 = vld [vmem:[%s1200_s0 + $0x8] ss:$16 sps:$4 sm:$0xff]   ;;  %v548_v7 = vunpack.c.l.bf16 %v547_v6  ;;  %v1161_v8 = vsub.s32 0, %v1155_v5  ;;  %v556_v9 = vsub.s32 2, %v1155_v5  ;;  %v576_v28 = vunpack.c.l.bf16 %v573_v17 }
  0x35   :  { %515 = vmatprep.subr.bf16.mxu0 %v858_v55  ;;  %v577_v33 = vunpack.c.h.bf16 %v573_v17  ;;  %s680_s25 = sshll.u32 %s908_s3, 4  ;;  %s681_s25 = int_to_ptr.vmem [resolvable:$true] %s680_s25 }
  0x36   :  { %v553_v10 = vrot.slane %v548_v7, %v1161_v8  ;;  %v557_v11 = vrot.slane %v548_v7, %v556_v9  ;;  %s884_s26 = scalar_lea.vmem %s681_s25, 256  ;;  %p889_p1 = scmp.lt.s32.totalorder %s681_s25, %s681_s25 }
  0x37   :  { %473 = vmatpush1.bf16.msra.mxu1 %v860_v56  ;;  %p885_p0 = scmp.ne.s32.totalorder %s681_s25, %s884_s26  ;;  %p890_p2 = scmp.lt.s32.totalorder %s884_s26, %s884_s26 }
  0x38   :  { %516 = vmatpush1.bf16.msra.mxu0 %v861_v57  ;;  %474 = vmatprep.subr.bf16.mxu1 %v862_v58  ;;  %v563_v13 = vrot.slane %v553_v10, %v1161_v8  ;;  %v567_v16 = vrot.slane %v557_v11, %v1161_v8 }
  0x39   :  { %517 = vmatprep.subr.bf16.mxu0 %v864_v59  ;;  %p891_p3 = por %p890_p2, %p889_p1 }
  0x3b   :  { %475 = vmatpush1.bf16.msra.mxu1 %v866_v60  ;;  %p892_p4 = pnand %p891_p3, %p885_p0 }
  0x3c   :  { %518 = vmatpush1.bf16.msra.mxu0 %v867_v61  ;;  %476 = vmatprep.subr.bf16.mxu1 %v868_v62 }
  0x3d   :  { %519 = vmatprep.subr.bf16.mxu0 %v870_v63 }
  0x3f   :  { %477 = vmatpush1.bf16.msra.mxu1 %v872_v0 }
  0x40   :  { %520 = vmatpush1.bf16.msra.mxu0 %v873_v1 }
  0x42   :  { %479 = vmatmul.mubr.bf16.vlgmr.msra.gmra.mrb[0].mxu1 %v874_v2 }
  0x43   :  { %522 = vmatmul.mubr.bf16.vlgmr.msra.gmra.mrb[0].mxu0 %v877_v3 }
 0x115   :  { %v480_v14 = vpop.f32.mrb[0].mxu1 }
 0x116   :  { %v523_v15 = vpop.f32.mrb[0].mxu0  ;;  %v482_v19 = vpop.f32.mrb[1].mxu1 }
 0x117   :  { %v524_v18 = vadd.f32 %v523_v15, %v480_v14  ;;  %v525_v20 = vpop.f32.mrb[1].mxu0  ;;  %v484_v23 = vpop.f32.mrb[2].mxu1 }
 0x118   :  { %v526_v22 = vadd.f32 %v525_v20, %v482_v19  ;;  %v527_v24 = vpop.f32.mrb[2].mxu0  ;;  %v486_v29 = vpop.f32.mrb[3].mxu1 }
 0x119   :  { %v568_v26 = vadd.f32 %v563_v13, %v524_v18  ;;  %v528_v27 = vadd.f32 %v527_v24, %v484_v23  ;;  %v529_v30 = vpop.f32.mrb[3].mxu0 }
 0x11a   :  { %v569_v31 = vadd.f32 %v567_v16, %v526_v22  ;;  %v530_v32 = vadd.f32 %v529_v30, %v486_v29 }
 0x11b   :  { %v570_v34 = vadd.f32 %v563_v13, %v528_v27  ;;  %v578_v35 = vadd.f32 %v574_v21, %v568_v26 }
 0x11c   :  { %v571_v36 = vadd.f32 %v567_v16, %v530_v32  ;;  %v579_v37 = vadd.f32 %v575_v25, %v569_v31 }
 0x11d   :  { %v580_v38 = vadd.f32 %v576_v28, %v570_v34 }
 0x11e   :  { %v581_v39 = vadd.f32 %v577_v33, %v571_v36  ;;  %v596_v40 = vadd.f32 %v579_v37, %v578_v35  ;;  %v767_v41 = vpack.c.bf16 %v579_v37, %v578_v35 }
 0x120   :  { %597 = vadd.xlane.f32.xlu0 %v596_v40  ;;  %v768_v42 = vpack.c.bf16 %v581_v39, %v580_v38  ;;  %594 = vst [vmem:[#allocation3] sm:$0xff] %v767_v41  ;;  %v599_v43 = vadd.f32 %v581_v39, %v580_v38 }
 0x122   :  { %595 = vst [vmem:[#allocation3 + $0x8] sm:$0xff] %v768_v42 }
 0x124   :  { %600 = vadd.xlane.f32.xlu0 %v599_v43 }
 0x1ad   :  { %v598_v44 = vpop.xlane.xlu0 %597 }
 0x1ae   :  { %v603_v45 = vmul.f32 0.00390625, %v598_v44 }
 0x1b0   :  { %v605_v46 = vsub.f32 %v578_v35, %v603_v45  ;;  %v606_v47 = vsub.f32 %v579_v37, %v603_v45 }
 0x1b1   :  { %v601_v48 = vpop.xlane.xlu0 %600 }
 0x1b2   :  { %v604_v49 = vmul.f32 0.00390625, %v601_v48  ;;  %v609_v50 = vmul.f32 %v605_v46, %v605_v46  ;;  %v610_v51 = vmul.f32 %v606_v47, %v606_v47 }
 0x1b4   :  { %v607_v52 = vsub.f32 %v580_v38, %v604_v49  ;;  %v608_v53 = vsub.f32 %v581_v39, %v604_v49  ;;  %v613_v54 = vadd.f32 %v610_v51, %v609_v50 }
 0x1b6   :  { %614 = vadd.xlane.f32.xlu1 %v613_v54  ;;  %v611_v55 = vmul.f32 %v607_v52, %v607_v52  ;;  %v612_v56 = vmul.f32 %v608_v53, %v608_v53 }
 0x1b8   :  { %v616_v57 = vadd.f32 %v612_v56, %v611_v55 }
 0x1ba   :  { %617 = vadd.xlane.f32.xlu1 %v616_v57 }
 0x1bb   :  { %895 = shalt.err (!%p892_p4)
}
 0x1bc   :  { %s896_s29 = scalar_lea.hbm %s1206_s6, 256 }
 0x1bd   :  { %p897_p5 = scmp.ne.s32.totalorder %s1206_s6, %s896_s29  ;;  %p900_p6 = scmp.lt.u32.totalorder %s896_s29, %s1206_s6 }
 0x1bf   :  { %p902_p7 = pnand %p900_p6, %p897_p5 }
 0x1c1   :  { %905 = shalt.err (!%p902_p7)
}
 0x1c2   :  { %s909_s11 = smov 128   ;;  %s910_s12 = smov 8   ;;  %v637_v0 = vsub.s32 1, %v1155_v5  ;;  %v629_v1 = vld [vmem:[%s1204_s4] sm:$0x3] }
 0x1c3   :  { %686 = dma.vmem_to_hbm [thread:$0]  %s681_s25, 256, %s1206_s6, [#allocation4], %s909_s11, %s909_s11, %s910_s12   ;;  %v634_v3 = vrot.slane %v629_v1, %v1161_v8 }
 0x1c4   :  { %v645_v2 = vld [vmem:[%s1205_s5] sm:$0x3]  ;;  %v638_v4 = vrot.slane %v629_v1, %v637_v0 }
 0x1c5   :  { %v650_v7 = vrot.slane %v645_v2, %v1161_v8  ;;  %v654_v9 = vrot.slane %v645_v2, %v637_v0 }
 0x243   :  { %v615_v58 = vpop.xlane.xlu1 %614 }
 0x244   :  { %v619_v59 = vmul.f32 0.00390625, %v615_v58 }
 0x246   :  { %v621_v60 = vadd.f32 1e-05, %v619_v59 }
 0x247   :  { %v618_v61 = vpop.xlane.xlu1 %617 }
 0x248   :  { %880 = vrsqrt.f32 %v621_v60  ;;  %v620_v62 = vmul.f32 0.00390625, %v618_v61 }
 0x24a   :  { %v622_v63 = vadd.f32 1e-05, %v620_v62 }
 0x24c   :  { %882 = vrsqrt.f32 %v622_v63 }
 0x252   :  { %v881_v6 = vpop.eup %880 }
 0x253   :  { %v625_v10 = vmul.f32 %v881_v6, %v605_v46  ;;  %v626_v11 = vmul.f32 %v881_v6, %v606_v47 }
 0x255   :  { %v641_v12 = vmul.f32 %v634_v3, %v625_v10  ;;  %v642_v13 = vmul.f32 %v638_v4, %v626_v11 }
 0x256   :  { %v883_v5 = vpop.eup %882 }
 0x257   :  { %v657_v14 = vadd.f32 %v650_v7, %v641_v12  ;;  %v658_v15 = vadd.f32 %v654_v9, %v642_v13  ;;  %v627_v16 = vmul.f32 %v883_v5, %v607_v52  ;;  %v628_v17 = vmul.f32 %v883_v5, %v608_v53 }
 0x259   :  { %v769_v18 = vpack.c.bf16 %v658_v15, %v657_v14  ;;  %v643_v19 = vmul.f32 %v634_v3, %v627_v16  ;;  %v644_v20 = vmul.f32 %v638_v4, %v628_v17 }
 0x25b   :  { %673 = vst [vmem:[%s1207_s7] sm:$0xff] %v769_v18  ;;  %v659_v21 = vadd.f32 %v650_v7, %v643_v19  ;;  %v660_v22 = vadd.f32 %v654_v9, %v644_v20 }
 0x25d   :  { %v770_v8 = vpack.c.bf16 %v660_v22, %v659_v21 }
 0x25f   :  { %674 = vst [vmem:[%s1207_s7 + $0x8] sm:$0xff] %v770_v8 }
 0x260   :  { %906 = dma.done.wait [#allocation4], 256  }
 0x261   :  { %907 = vsyncadd [#allocation4], 4294967040 }
 0x262   :  { %694 = vsyncpa [#allocation4], 1 }

</bundles_post_ra>
